<compile_context>
chip_gen: v7x
topology: tpu7x:2x2x1
jax: 0.10.0
libtpu: 0.0.40
codegen_flags: <defaults>
</compile_context>

<pallas_src>
import jax
import jax.numpy as jnp
from jax.experimental import pallas as pl
from jax.experimental.pallas import tpu as pltpu

HIDDEN = 256        # self.hidden_size
EMBED = 128         # self.embedding_dim (per-step decoder input feature size)
CTX = 512           # context feature size (640 - 128, from LSTMCell(640, 256))
GATES4 = 4 * HIDDEN  # i, f, g, o  (PyTorch gate order)
GATES3 = 3 * HIDDEN  # i, g, o     (forget gate dropped: cell state is always 0)


def _duo_decoder_kernel(x_ref, ctx_ref, wx_ref, wc_ref, wh_ref, b_ref,
                        wp_ref, bp_ref, h0_ref, out_ref, h_all):
    """One grid step == one decoder branch (prev or next).

    x_ref:  (T, B, EMBED)  bf16      ctx_ref: (B, CTX)      bf16
    wx_ref: (EMBED, 3H)    bf16      wc_ref:  (CTX, 3H)     bf16
    wh_ref: (HIDDEN, 3H)   bf16      b_ref:   (1, 3H)       f32
    wp_ref: (HIDDEN, V)    bf16      bp_ref:  (1, V)        f32
    h0_ref: (B, HIDDEN)    f32       out_ref: (T, B, V)     f32
    h_all:  (T*B, HIDDEN)  bf16 VMEM scratch
    """
    T, B, E = x_ref.shape
    H = h0_ref.shape[-1]
    V = out_ref.shape[-1]

    # (1) Time-invariant projections, batched over all time steps (done once).
    x_flat = x_ref[...].reshape(T * B, E)                                # bf16
    gates_x = jnp.dot(x_flat, wx_ref[...],
                      preferred_element_type=jnp.float32)                # (T*B, 3H)
    gates_c = (jnp.dot(ctx_ref[...], wc_ref[...],
                       preferred_element_type=jnp.float32)
               + b_ref[...])                                             # (B, 3H)

    wh = wh_ref[...]                                                     # (H, 3H) bf16

    # (2) Recurrence: only h @ W_hh + pointwise remains inside the loop.
    #     T is 5-6, so a static (trace-time) unroll is cheap and gives the
    #     scheduler full cross-step visibility.
    h = h0_ref[...]                                                      # (B, H) f32
    for t in range(T):
        gates = (gates_x[t * B:(t + 1) * B, :] + gates_c
                 + jnp.dot(h.astype(wh.dtype), wh,
                           preferred_element_type=jnp.float32))          # (B, 3H)
        i_g = jax.nn.sigmoid(gates[:, 0:H])
        g_g = jnp.tanh(gates[:, H:2 * H])
        o_g = jax.nn.sigmoid(gates[:, 2 * H:3 * H])
        # cell state is always zero in the PyTorch module -> c_new = i * g
        h = o_g * jnp.tanh(i_g * g_g)
        h_all[t * B:(t + 1) * B, :] = h.astype(h_all.dtype)

    # (3) Batched wordProject across all time steps (one lane-dense store).
    logits = (jnp.dot(h_all[...], wp_ref[...],
                      preferred_element_type=jnp.float32)
              + bp_ref[...])                                             # (T*B, V)
    out_ref[...] = logits.reshape(T, B, V).astype(out_ref.dtype)


def _prep_branch(w_ih, w_hh, b_ih, b_hh, hidden_param, B):
    """Drop the forget gate, transpose to (in, 3H), cast weights to bf16."""
    # PyTorch gate row order is [i | f | g | o]; keep [i | g | o].
    w_ih_k = jnp.concatenate([w_ih[:HIDDEN], w_ih[2 * HIDDEN:]], axis=0)  # (3H, 640)
    w_hh_k = jnp.concatenate([w_hh[:HIDDEN], w_hh[2 * HIDDEN:]], axis=0)  # (3H, H)
    b = b_ih + b_hh
    b_k = jnp.concatenate([b[:HIDDEN], b[2 * HIDDEN:]], axis=0)           # (3H,)

    wx = jnp.transpose(w_ih_k[:, :EMBED]).astype(jnp.bfloat16)            # (E, 3H)
    wc = jnp.transpose(w_ih_k[:, EMBED:]).astype(jnp.bfloat16)            # (CTX, 3H)
    wh = jnp.transpose(w_hh_k).astype(jnp.bfloat16)                       # (H, 3H)
    bias = b_k.reshape(1, GATES3).astype(jnp.float32)                     # (1, 3H)
    h0 = jnp.broadcast_to(hidden_param, (B, HIDDEN)).astype(jnp.float32)  # (B, H)
    return wx, wc, wh, bias, h0


def st_duo_decoder_attn_forward(input_prev, input_next, context, params):
    """Equivalent of STDuoDecoderAttn.forward -> (logits_prev, logits_next)."""
    T_prev, B, _ = input_prev.shape
    T_next = input_next.shape[0]
    T_max = max(T_prev, T_next)
    V = params["w_proj"].shape[0]

    # --- wrapper-side glue (no meaningful FLOPs) -----------------------------
    def pad_t(x):
        return jnp.pad(x, ((0, T_max - x.shape[0]), (0, 0), (0, 0)))

    x_stacked = jnp.stack([pad_t(input_prev), pad_t(input_next)]
                          ).astype(jnp.bfloat16)                          # (2, T, B, E)

    wx_p, wc_p, wh_p, b_p, h0_p = _prep_branch(
        params["w_ih_prev"], params["w_hh_prev"],
        params["b_ih_prev"], params["b_hh_prev"], params["hidden1"], B)
    wx_n, wc_n, wh_n, b_n, h0_n = _prep_branch(
        params["w_ih_next"], params["w_hh_next"],
        params["b_ih_next"], params["b_hh_next"], params["hidden2"], B)

    wx_s = jnp.stack([wx_p, wx_n])                                        # (2, E, 3H)
    wc_s = jnp.stack([wc_p, wc_n])                                        # (2, CTX, 3H)
    wh_s = jnp.stack([wh_p, wh_n])                                        # (2, H, 3H)
    b_s = jnp.stack([b_p, b_n])                                           # (2, 1, 3H)
    h0_s = jnp.stack([h0_p, h0_n])                                        # (2, B, H)

    ctx = context.astype(jnp.bfloat16)                                    # (B, CTX)
    wp = jnp.transpose(params["w_proj"]).astype(jnp.bfloat16)             # (H, V)
    bp = params["b_proj"].reshape(1, V).astype(jnp.float32)               # (1, V)

    # --- one pallas_call, grid = (branch,) -----------------------------------
    grid_spec = pltpu.PrefetchScalarGridSpec(
        num_scalar_prefetch=0,
        grid=(2,),
        in_specs=[
            pl.BlockSpec((None, T_max, B, EMBED), lambda n: (n, 0, 0, 0)),  # x (per branch)
            pl.BlockSpec((B, CTX), lambda n: (0, 0)),                       # context (shared)
            pl.BlockSpec((None, EMBED, GATES3), lambda n: (n, 0, 0)),       # W_x^T
            pl.BlockSpec((None, CTX, GATES3), lambda n: (n, 0, 0)),         # W_c^T
            pl.BlockSpec((None, HIDDEN, GATES3), lambda n: (n, 0, 0)),      # W_hh^T
            pl.BlockSpec((None, 1, GATES3), lambda n: (n, 0, 0)),           # bias
            pl.BlockSpec((HIDDEN, V), lambda n: (0, 0)),                    # W_proj^T (shared)
            pl.BlockSpec((1, V), lambda n: (0, 0)),                         # b_proj (shared)
            pl.BlockSpec((None, B, HIDDEN), lambda n: (n, 0, 0)),           # h0
        ],
        out_specs=pl.BlockSpec((None, T_max, B, V), lambda n: (n, 0, 0, 0)),
        scratch_shapes=[pltpu.VMEM((T_max * B, HIDDEN), jnp.bfloat16)],     # h over all t
    )

    out = pl.pallas_call(
        _duo_decoder_kernel,
        out_shape=jax.ShapeDtypeStruct((2, T_max, B, V), jnp.float32),
        grid_spec=grid_spec,
        compiler_params=pltpu.CompilerParams(
            dimension_semantics=("parallel",)),   # 2 independent branches -> 2 TCs on v7x
    )(x_stacked, ctx, wx_s, wc_s, wh_s, b_s, wp, bp, h0_s)

    # Padded time steps (if T_prev != T_next) are simply sliced off.
    logits_prev = out[0, :T_prev]
    logits_next = out[1, :T_next]
    return logits_prev, logits_next


def _reference_branch(x_seq, context, w_ih, w_hh, b_ih, b_hh, w_proj, b_proj,
                      hidden_param):
    """Pure-JAX f32 reference mirroring the PyTorch loop (for verification)."""
    B = x_seq.shape[1]
    h0 = jnp.broadcast_to(hidden_param, (B, HIDDEN))
    bias = b_ih + b_hh

    def step(h, x_t):
        inp = jnp.concatenate([x_t, context], axis=1)         # (B, 640)
        gates = inp @ w_ih.T + h @ w_hh.T + bias
        i = jax.nn.sigmoid(gates[:, 0 * HIDDEN:1 * HIDDEN])
        g = jnp.tanh(gates[:, 2 * HIDDEN:3 * HIDDEN])
        o = jax.nn.sigmoid(gates[:, 3 * HIDDEN:4 * HIDDEN])
        c_new = i * g                                          # c_prev always 0
        h_new = o * jnp.tanh(c_new)
        return h_new, h_new @ w_proj.T + b_proj

    _, logits = jax.lax.scan(step, h0, x_seq)
    return logits


if __name__ == "__main__":
    VOCAB = 128
    B = 8
    T_PREV, T_NEXT = 6, 5

    key = jax.random.PRNGKey(0)
    ks = jax.random.split(key, 16)
    s = 0.05  # small deterministic init scale

    params = {
        "hidden1": jax.random.normal(ks[0], (1, HIDDEN), jnp.float32) * s,
        "hidden2": jax.random.normal(ks[1], (1, HIDDEN), jnp.float32) * s,
        "w_ih_prev": jax.random.normal(ks[2], (GATES4, EMBED + CTX), jnp.float32) * s,
        "w_hh_prev": jax.random.normal(ks[3], (GATES4, HIDDEN), jnp.float32) * s,
        "b_ih_prev": jax.random.normal(ks[4], (GATES4,), jnp.float32) * s,
        "b_hh_prev": jax.random.normal(ks[5], (GATES4,), jnp.float32) * s,
        "w_ih_next": jax.random.normal(ks[6], (GATES4, EMBED + CTX), jnp.float32) * s,
        "w_hh_next": jax.random.normal(ks[7], (GATES4, HIDDEN), jnp.float32) * s,
        "b_ih_next": jax.random.normal(ks[8], (GATES4,), jnp.float32) * s,
        "b_hh_next": jax.random.normal(ks[9], (GATES4,), jnp.float32) * s,
        "w_proj": jax.random.normal(ks[10], (VOCAB, HIDDEN), jnp.float32) * s,
        "b_proj": jax.random.normal(ks[11], (VOCAB,), jnp.float32) * s,
    }

    input_prev = jax.random.normal(ks[12], (T_PREV, B, EMBED), jnp.float32)
    input_next = jax.random.normal(ks[13], (T_NEXT, B, EMBED), jnp.float32)
    context = jax.random.normal(ks[14], (B, CTX), jnp.float32)

    fwd = jax.jit(st_duo_decoder_attn_forward)
    logits_prev, logits_next = fwd(input_prev, input_next, context, params)
    jax.block_until_ready((logits_prev, logits_next))

    # Verify against a pure-JAX f32 reference of the PyTorch loop.
    ref_prev = _reference_branch(
        input_prev, context, params["w_ih_prev"], params["w_hh_prev"],
        params["b_ih_prev"], params["b_hh_prev"],
        params["w_proj"], params["b_proj"], params["hidden1"])
    ref_next = _reference_branch(
        input_next, context, params["w_ih_next"], params["w_hh_next"],
        params["b_ih_next"], params["b_hh_next"],
        params["w_proj"], params["b_proj"], params["hidden2"])

    assert logits_prev.shape == (T_PREV, B, VOCAB)
    assert logits_next.shape == (T_NEXT, B, VOCAB)
    assert jnp.allclose(logits_prev, ref_prev, atol=2e-2, rtol=2e-2)
    assert jnp.allclose(logits_next, ref_next, atol=2e-2, rtol=2e-2)

    print("KERNEL_OK")
</pallas_src>

<mosaic_0001>
module attributes {stable_mosaic.version = 11 : i64} {
  func.func @_duo_decoder_kernel(%arg0: i32, %arg1: memref<1x6x8x128xbf16, #tpu.memory_space<vmem>>, %arg2: memref<8x512xbf16, #tpu.memory_space<vmem>>, %arg3: memref<1x128x768xbf16, #tpu.memory_space<vmem>>, %arg4: memref<1x512x768xbf16, #tpu.memory_space<vmem>>, %arg5: memref<1x256x768xbf16, #tpu.memory_space<vmem>>, %arg6: memref<1x1x768xf32, #tpu.memory_space<vmem>>, %arg7: memref<256x128xbf16, #tpu.memory_space<vmem>>, %arg8: memref<1x128xf32, #tpu.memory_space<vmem>>, %arg9: memref<1x8x256xf32, #tpu.memory_space<vmem>>, %arg10: memref<1x6x8x128xf32, #tpu.memory_space<vmem>>, %arg11: memref<48x256xbf16, #tpu.memory_space<vmem>>) attributes {dimension_semantics = [#tpu.dimension_semantics<parallel>], iteration_bounds = array<i64: 2>, scalar_prefetch = 0 : i64, scratch_operands = 1 : i64, tpu.core_type = #tpu.core_type<tc>, window_params = [{transform_indices = @transform_0, window_bounds = array<i64: 1, 6, 8, 128>}, {pipeline_mode = #tpu.pipeline_mode<synchronous>, transform_indices = @transform_1, window_bounds = array<i64: 8, 512>}, {transform_indices = @transform_2, window_bounds = array<i64: 1, 128, 768>}, {transform_indices = @transform_3, window_bounds = array<i64: 1, 512, 768>}, {transform_indices = @transform_4, window_bounds = array<i64: 1, 256, 768>}, {transform_indices = @transform_5, window_bounds = array<i64: 1, 1, 768>}, {pipeline_mode = #tpu.pipeline_mode<synchronous>, transform_indices = @transform_6, window_bounds = array<i64: 256, 128>}, {pipeline_mode = #tpu.pipeline_mode<synchronous>, transform_indices = @transform_7, window_bounds = array<i64: 1, 128>}, {transform_indices = @transform_8, window_bounds = array<i64: 1, 8, 256>}, {transform_indices = @transform_9, window_bounds = array<i64: 1, 6, 8, 128>}]} {
    %c0 = arith.constant 0 : index
    %c0_0 = arith.constant 0 : index
    %c0_1 = arith.constant 0 : index
    %c0_2 = arith.constant 0 : index
    %0 = vector.load %arg1[%c0, %c0_0, %c0_1, %c0_2] : memref<1x6x8x128xbf16, #tpu.memory_space<vmem>>, vector<1x6x8x128xbf16>
    %1 = vector.shape_cast %0 : vector<1x6x8x128xbf16> to vector<6x8x128xbf16>
    %2 = vector.shape_cast %1 : vector<6x8x128xbf16> to vector<48x128xbf16>
    %c0_3 = arith.constant 0 : index
    %c0_4 = arith.constant 0 : index
    %c0_5 = arith.constant 0 : index
    %3 = vector.load %arg3[%c0_3, %c0_4, %c0_5] : memref<1x128x768xbf16, #tpu.memory_space<vmem>>, vector<1x128x768xbf16>
    %4 = vector.shape_cast %3 : vector<1x128x768xbf16> to vector<128x768xbf16>
    %cst = arith.constant dense<0.000000e+00> : vector<48x768xf32>
    %5 = tpu.matmul %2, %4, %cst {dimension_numbers = #tpu.dot_dimension_numbers<[1], [0], [0], [1], [0, 0, 1, 1], [], []>} : vector<48x128xbf16>, vector<128x768xbf16>, vector<48x768xf32> -> vector<48x768xf32>
    %c0_6 = arith.constant 0 : index
    %c0_7 = arith.constant 0 : index
    %6 = vector.load %arg2[%c0_6, %c0_7] : memref<8x512xbf16, #tpu.memory_space<vmem>>, vector<8x512xbf16>
    %c0_8 = arith.constant 0 : index
    %c0_9 = arith.constant 0 : index
    %c0_10 = arith.constant 0 : index
    %7 = vector.load %arg4[%c0_8, %c0_9, %c0_10] : memref<1x512x768xbf16, #tpu.memory_space<vmem>>, vector<1x512x768xbf16>
    %8 = vector.shape_cast %7 : vector<1x512x768xbf16> to vector<512x768xbf16>
    %cst_11 = arith.constant dense<0.000000e+00> : vector<8x768xf32>
    %9 = tpu.matmul %6, %8, %cst_11 {dimension_numbers = #tpu.dot_dimension_numbers<[1], [0], [0], [1], [0, 0, 1, 1], [], []>} : vector<8x512xbf16>, vector<512x768xbf16>, vector<8x768xf32> -> vector<8x768xf32>
    %c0_12 = arith.constant 0 : index
    %c0_13 = arith.constant 0 : index
    %c0_14 = arith.constant 0 : index
    %10 = vector.load %arg6[%c0_12, %c0_13, %c0_14] : memref<1x1x768xf32, #tpu.memory_space<vmem>>, vector<1x1x768xf32>
    %11 = vector.shape_cast %10 : vector<1x1x768xf32> to vector<1x768xf32>
    %12 = vector.broadcast %11 : vector<1x768xf32> to vector<8x768xf32>
    %13 = arith.addf %9, %12 : vector<8x768xf32>
    %c0_15 = arith.constant 0 : index
    %c0_16 = arith.constant 0 : index
    %c0_17 = arith.constant 0 : index
    %14 = vector.load %arg5[%c0_15, %c0_16, %c0_17] : memref<1x256x768xbf16, #tpu.memory_space<vmem>>, vector<1x256x768xbf16>
    %15 = vector.shape_cast %14 : vector<1x256x768xbf16> to vector<256x768xbf16>
    %c0_18 = arith.constant 0 : index
    %c0_19 = arith.constant 0 : index
    %c0_20 = arith.constant 0 : index
    %16 = vector.load %arg9[%c0_18, %c0_19, %c0_20] : memref<1x8x256xf32, #tpu.memory_space<vmem>>, vector<1x8x256xf32>
    %17 = vector.shape_cast %16 : vector<1x8x256xf32> to vector<8x256xf32>
    %18 = vector.extract_strided_slice %5 {offsets = [0, 0], sizes = [8, 768], strides = [1, 1]} : vector<48x768xf32> to vector<8x768xf32>
    %19 = arith.addf %18, %13 : vector<8x768xf32>
    %20 = arith.truncf %17 : vector<8x256xf32> to vector<8x256xbf16>
    %cst_21 = arith.constant dense<0.000000e+00> : vector<8x768xf32>
    %21 = tpu.matmul %20, %15, %cst_21 {dimension_numbers = #tpu.dot_dimension_numbers<[1], [0], [0], [1], [0, 0, 1, 1], [], []>} : vector<8x256xbf16>, vector<256x768xbf16>, vector<8x768xf32> -> vector<8x768xf32>
    %22 = arith.addf %19, %21 : vector<8x768xf32>
    %23 = vector.extract_strided_slice %22 {offsets = [0, 0], sizes = [8, 256], strides = [1, 1]} : vector<8x768xf32> to vector<8x256xf32>
    %24 = arith.negf %23 : vector<8x256xf32>
    %25 = math.exp %24 : vector<8x256xf32>
    %cst_22 = arith.constant 1.000000e+00 : f32
    %26 = vector.broadcast %cst_22 : f32 to vector<8x256xf32>
    %27 = arith.addf %26, %25 : vector<8x256xf32>
    %28 = arith.divf %26, %27 : vector<8x256xf32>
    %29 = vector.extract_strided_slice %22 {offsets = [0, 256], sizes = [8, 256], strides = [1, 1]} : vector<8x768xf32> to vector<8x256xf32>
    %30 = math.tanh %29 : vector<8x256xf32>
    %31 = vector.extract_strided_slice %22 {offsets = [0, 512], sizes = [8, 256], strides = [1, 1]} : vector<8x768xf32> to vector<8x256xf32>
    %32 = arith.negf %31 : vector<8x256xf32>
    %33 = math.exp %32 : vector<8x256xf32>
    %cst_23 = arith.constant 1.000000e+00 : f32
    %34 = vector.broadcast %cst_23 : f32 to vector<8x256xf32>
    %35 = arith.addf %34, %33 : vector<8x256xf32>
    %36 = arith.divf %34, %35 : vector<8x256xf32>
    %37 = arith.mulf %28, %30 : vector<8x256xf32>
    %38 = math.tanh %37 : vector<8x256xf32>
    %39 = arith.mulf %36, %38 : vector<8x256xf32>
    %40 = arith.truncf %39 : vector<8x256xf32> to vector<8x256xbf16>
    %c0_24 = arith.constant 0 : index
    %c0_25 = arith.constant 0 : index
    %41 = vector.load %arg11[%c0_24, %c0_25] : memref<48x256xbf16, #tpu.memory_space<vmem>>, vector<8x256xbf16>
    tpu.vector_store %arg11[%c0_24, %c0_25], %40 {strides = array<i32>} : memref<48x256xbf16, #tpu.memory_space<vmem>>, vector<8x256xbf16>,
    %42 = vector.extract_strided_slice %5 {offsets = [8, 0], sizes = [8, 768], strides = [1, 1]} : vector<48x768xf32> to vector<8x768xf32>
    %43 = arith.addf %42, %13 : vector<8x768xf32>
    %44 = arith.truncf %39 : vector<8x256xf32> to vector<8x256xbf16>
    %cst_26 = arith.constant dense<0.000000e+00> : vector<8x768xf32>
    %45 = tpu.matmul %44, %15, %cst_26 {dimension_numbers = #tpu.dot_dimension_numbers<[1], [0], [0], [1], [0, 0, 1, 1], [], []>} : vector<8x256xbf16>, vector<256x768xbf16>, vector<8x768xf32> -> vector<8x768xf32>
    %46 = arith.addf %43, %45 : vector<8x768xf32>
    %47 = vector.extract_strided_slice %46 {offsets = [0, 0], sizes = [8, 256], strides = [1, 1]} : vector<8x768xf32> to vector<8x256xf32>
    %48 = arith.negf %47 : vector<8x256xf32>
    %49 = math.exp %48 : vector<8x256xf32>
    %cst_27 = arith.constant 1.000000e+00 : f32
    %50 = vector.broadcast %cst_27 : f32 to vector<8x256xf32>
    %51 = arith.addf %50, %49 : vector<8x256xf32>
    %52 = arith.divf %50, %51 : vector<8x256xf32>
    %53 = vector.extract_strided_slice %46 {offsets = [0, 256], sizes = [8, 256], strides = [1, 1]} : vector<8x768xf32> to vector<8x256xf32>
    %54 = math.tanh %53 : vector<8x256xf32>
    %55 = vector.extract_strided_slice %46 {offsets = [0, 512], sizes = [8, 256], strides = [1, 1]} : vector<8x768xf32> to vector<8x256xf32>
    %56 = arith.negf %55 : vector<8x256xf32>
    %57 = math.exp %56 : vector<8x256xf32>
    %cst_28 = arith.constant 1.000000e+00 : f32
    %58 = vector.broadcast %cst_28 : f32 to vector<8x256xf32>
    %59 = arith.addf %58, %57 : vector<8x256xf32>
    %60 = arith.divf %58, %59 : vector<8x256xf32>
    %61 = arith.mulf %52, %54 : vector<8x256xf32>
    %62 = math.tanh %61 : vector<8x256xf32>
    %63 = arith.mulf %60, %62 : vector<8x256xf32>
    %64 = arith.truncf %63 : vector<8x256xf32> to vector<8x256xbf16>
    %c8 = arith.constant 8 : index
    %c0_29 = arith.constant 0 : index
    %65 = vector.load %arg11[%c8, %c0_29] : memref<48x256xbf16, #tpu.memory_space<vmem>>, vector<8x256xbf16>
    tpu.vector_store %arg11[%c8, %c0_29], %64 {strides = array<i32>} : memref<48x256xbf16, #tpu.memory_space<vmem>>, vector<8x256xbf16>,
    %66 = vector.extract_strided_slice %5 {offsets = [16, 0], sizes = [8, 768], strides = [1, 1]} : vector<48x768xf32> to vector<8x768xf32>
    %67 = arith.addf %66, %13 : vector<8x768xf32>
    %68 = arith.truncf %63 : vector<8x256xf32> to vector<8x256xbf16>
    %cst_30 = arith.constant dense<0.000000e+00> : vector<8x768xf32>
    %69 = tpu.matmul %68, %15, %cst_30 {dimension_numbers = #tpu.dot_dimension_numbers<[1], [0], [0], [1], [0, 0, 1, 1], [], []>} : vector<8x256xbf16>, vector<256x768xbf16>, vector<8x768xf32> -> vector<8x768xf32>
    %70 = arith.addf %67, %69 : vector<8x768xf32>
    %71 = vector.extract_strided_slice %70 {offsets = [0, 0], sizes = [8, 256], strides = [1, 1]} : vector<8x768xf32> to vector<8x256xf32>
    %72 = arith.negf %71 : vector<8x256xf32>
    %73 = math.exp %72 : vector<8x256xf32>
    %cst_31 = arith.constant 1.000000e+00 : f32
    %74 = vector.broadcast %cst_31 : f32 to vector<8x256xf32>
    %75 = arith.addf %74, %73 : vector<8x256xf32>
    %76 = arith.divf %74, %75 : vector<8x256xf32>
    %77 = vector.extract_strided_slice %70 {offsets = [0, 256], sizes = [8, 256], strides = [1, 1]} : vector<8x768xf32> to vector<8x256xf32>
    %78 = math.tanh %77 : vector<8x256xf32>
    %79 = vector.extract_strided_slice %70 {offsets = [0, 512], sizes = [8, 256], strides = [1, 1]} : vector<8x768xf32> to vector<8x256xf32>
    %80 = arith.negf %79 : vector<8x256xf32>
    %81 = math.exp %80 : vector<8x256xf32>
    %cst_32 = arith.constant 1.000000e+00 : f32
    %82 = vector.broadcast %cst_32 : f32 to vector<8x256xf32>
    %83 = arith.addf %82, %81 : vector<8x256xf32>
    %84 = arith.divf %82, %83 : vector<8x256xf32>
    %85 = arith.mulf %76, %78 : vector<8x256xf32>
    %86 = math.tanh %85 : vector<8x256xf32>
    %87 = arith.mulf %84, %86 : vector<8x256xf32>
    %88 = arith.truncf %87 : vector<8x256xf32> to vector<8x256xbf16>
    %c16 = arith.constant 16 : index
    %c0_33 = arith.constant 0 : index
    %89 = vector.load %arg11[%c16, %c0_33] : memref<48x256xbf16, #tpu.memory_space<vmem>>, vector<8x256xbf16>
    tpu.vector_store %arg11[%c16, %c0_33], %88 {strides = array<i32>} : memref<48x256xbf16, #tpu.memory_space<vmem>>, vector<8x256xbf16>,
    %90 = vector.extract_strided_slice %5 {offsets = [24, 0], sizes = [8, 768], strides = [1, 1]} : vector<48x768xf32> to vector<8x768xf32>
    %91 = arith.addf %90, %13 : vector<8x768xf32>
    %92 = arith.truncf %87 : vector<8x256xf32> to vector<8x256xbf16>
    %cst_34 = arith.constant dense<0.000000e+00> : vector<8x768xf32>
    %93 = tpu.matmul %92, %15, %cst_34 {dimension_numbers = #tpu.dot_dimension_numbers<[1], [0], [0], [1], [0, 0, 1, 1], [], []>} : vector<8x256xbf16>, vector<256x768xbf16>, vector<8x768xf32> -> vector<8x768xf32>
    %94 = arith.addf %91, %93 : vector<8x768xf32>
    %95 = vector.extract_strided_slice %94 {offsets = [0, 0], sizes = [8, 256], strides = [1, 1]} : vector<8x768xf32> to vector<8x256xf32>
    %96 = arith.negf %95 : vector<8x256xf32>
    %97 = math.exp %96 : vector<8x256xf32>
    %cst_35 = arith.constant 1.000000e+00 : f32
    %98 = vector.broadcast %cst_35 : f32 to vector<8x256xf32>
    %99 = arith.addf %98, %97 : vector<8x256xf32>
    %100 = arith.divf %98, %99 : vector<8x256xf32>
    %101 = vector.extract_strided_slice %94 {offsets = [0, 256], sizes = [8, 256], strides = [1, 1]} : vector<8x768xf32> to vector<8x256xf32>
    %102 = math.tanh %101 : vector<8x256xf32>
    %103 = vector.extract_strided_slice %94 {offsets = [0, 512], sizes = [8, 256], strides = [1, 1]} : vector<8x768xf32> to vector<8x256xf32>
    %104 = arith.negf %103 : vector<8x256xf32>
    %105 = math.exp %104 : vector<8x256xf32>
    %cst_36 = arith.constant 1.000000e+00 : f32
    %106 = vector.broadcast %cst_36 : f32 to vector<8x256xf32>
    %107 = arith.addf %106, %105 : vector<8x256xf32>
    %108 = arith.divf %106, %107 : vector<8x256xf32>
    %109 = arith.mulf %100, %102 : vector<8x256xf32>
    %110 = math.tanh %109 : vector<8x256xf32>
    %111 = arith.mulf %108, %110 : vector<8x256xf32>
    %112 = arith.truncf %111 : vector<8x256xf32> to vector<8x256xbf16>
    %c24 = arith.constant 24 : index
    %c0_37 = arith.constant 0 : index
    %113 = vector.load %arg11[%c24, %c0_37] : memref<48x256xbf16, #tpu.memory_space<vmem>>, vector<8x256xbf16>
    tpu.vector_store %arg11[%c24, %c0_37], %112 {strides = array<i32>} : memref<48x256xbf16, #tpu.memory_space<vmem>>, vector<8x256xbf16>,
    %114 = vector.extract_strided_slice %5 {offsets = [32, 0], sizes = [8, 768], strides = [1, 1]} : vector<48x768xf32> to vector<8x768xf32>
    %115 = arith.addf %114, %13 : vector<8x768xf32>
    %116 = arith.truncf %111 : vector<8x256xf32> to vector<8x256xbf16>
    %cst_38 = arith.constant dense<0.000000e+00> : vector<8x768xf32>
    %117 = tpu.matmul %116, %15, %cst_38 {dimension_numbers = #tpu.dot_dimension_numbers<[1], [0], [0], [1], [0, 0, 1, 1], [], []>} : vector<8x256xbf16>, vector<256x768xbf16>, vector<8x768xf32> -> vector<8x768xf32>
    %118 = arith.addf %115, %117 : vector<8x768xf32>
    %119 = vector.extract_strided_slice %118 {offsets = [0, 0], sizes = [8, 256], strides = [1, 1]} : vector<8x768xf32> to vector<8x256xf32>
    %120 = arith.negf %119 : vector<8x256xf32>
    %121 = math.exp %120 : vector<8x256xf32>
    %cst_39 = arith.constant 1.000000e+00 : f32
    %122 = vector.broadcast %cst_39 : f32 to vector<8x256xf32>
    %123 = arith.addf %122, %121 : vector<8x256xf32>
    %124 = arith.divf %122, %123 : vector<8x256xf32>
    %125 = vector.extract_strided_slice %118 {offsets = [0, 256], sizes = [8, 256], strides = [1, 1]} : vector<8x768xf32> to vector<8x256xf32>
    %126 = math.tanh %125 : vector<8x256xf32>
    %127 = vector.extract_strided_slice %118 {offsets = [0, 512], sizes = [8, 256], strides = [1, 1]} : vector<8x768xf32> to vector<8x256xf32>
    %128 = arith.negf %127 : vector<8x256xf32>
    %129 = math.exp %128 : vector<8x256xf32>
    %cst_40 = arith.constant 1.000000e+00 : f32
    %130 = vector.broadcast %cst_40 : f32 to vector<8x256xf32>
    %131 = arith.addf %130, %129 : vector<8x256xf32>
    %132 = arith.divf %130, %131 : vector<8x256xf32>
    %133 = arith.mulf %124, %126 : vector<8x256xf32>
    %134 = math.tanh %133 : vector<8x256xf32>
    %135 = arith.mulf %132, %134 : vector<8x256xf32>
    %136 = arith.truncf %135 : vector<8x256xf32> to vector<8x256xbf16>
    %c32 = arith.constant 32 : index
    %c0_41 = arith.constant 0 : index
    %137 = vector.load %arg11[%c32, %c0_41] : memref<48x256xbf16, #tpu.memory_space<vmem>>, vector<8x256xbf16>
    tpu.vector_store %arg11[%c32, %c0_41], %136 {strides = array<i32>} : memref<48x256xbf16, #tpu.memory_space<vmem>>, vector<8x256xbf16>,
    %138 = vector.extract_strided_slice %5 {offsets = [40, 0], sizes = [8, 768], strides = [1, 1]} : vector<48x768xf32> to vector<8x768xf32>
    %139 = arith.addf %138, %13 : vector<8x768xf32>
    %140 = arith.truncf %135 : vector<8x256xf32> to vector<8x256xbf16>
    %cst_42 = arith.constant dense<0.000000e+00> : vector<8x768xf32>
    %141 = tpu.matmul %140, %15, %cst_42 {dimension_numbers = #tpu.dot_dimension_numbers<[1], [0], [0], [1], [0, 0, 1, 1], [], []>} : vector<8x256xbf16>, vector<256x768xbf16>, vector<8x768xf32> -> vector<8x768xf32>
    %142 = arith.addf %139, %141 : vector<8x768xf32>
    %143 = vector.extract_strided_slice %142 {offsets = [0, 0], sizes = [8, 256], strides = [1, 1]} : vector<8x768xf32> to vector<8x256xf32>
    %144 = arith.negf %143 : vector<8x256xf32>
    %145 = math.exp %144 : vector<8x256xf32>
    %cst_43 = arith.constant 1.000000e+00 : f32
    %146 = vector.broadcast %cst_43 : f32 to vector<8x256xf32>
    %147 = arith.addf %146, %145 : vector<8x256xf32>
    %148 = arith.divf %146, %147 : vector<8x256xf32>
    %149 = vector.extract_strided_slice %142 {offsets = [0, 256], sizes = [8, 256], strides = [1, 1]} : vector<8x768xf32> to vector<8x256xf32>
    %150 = math.tanh %149 : vector<8x256xf32>
    %151 = vector.extract_strided_slice %142 {offsets = [0, 512], sizes = [8, 256], strides = [1, 1]} : vector<8x768xf32> to vector<8x256xf32>
    %152 = arith.negf %151 : vector<8x256xf32>
    %153 = math.exp %152 : vector<8x256xf32>
    %cst_44 = arith.constant 1.000000e+00 : f32
    %154 = vector.broadcast %cst_44 : f32 to vector<8x256xf32>
    %155 = arith.addf %154, %153 : vector<8x256xf32>
    %156 = arith.divf %154, %155 : vector<8x256xf32>
    %157 = arith.mulf %148, %150 : vector<8x256xf32>
    %158 = math.tanh %157 : vector<8x256xf32>
    %159 = arith.mulf %156, %158 : vector<8x256xf32>
    %160 = arith.truncf %159 : vector<8x256xf32> to vector<8x256xbf16>
    %c40 = arith.constant 40 : index
    %c0_45 = arith.constant 0 : index
    %161 = vector.load %arg11[%c40, %c0_45] : memref<48x256xbf16, #tpu.memory_space<vmem>>, vector<8x256xbf16>
    tpu.vector_store %arg11[%c40, %c0_45], %160 {strides = array<i32>} : memref<48x256xbf16, #tpu.memory_space<vmem>>, vector<8x256xbf16>,
    %c0_46 = arith.constant 0 : index
    %c0_47 = arith.constant 0 : index
    %162 = vector.load %arg11[%c0_46, %c0_47] : memref<48x256xbf16, #tpu.memory_space<vmem>>, vector<48x256xbf16>
    %c0_48 = arith.constant 0 : index
    %c0_49 = arith.constant 0 : index
    %163 = vector.load %arg7[%c0_48, %c0_49] : memref<256x128xbf16, #tpu.memory_space<vmem>>, vector<256x128xbf16>
    %cst_50 = arith.constant dense<0.000000e+00> : vector<48x128xf32>
    %164 = tpu.matmul %162, %163, %cst_50 {dimension_numbers = #tpu.dot_dimension_numbers<[1], [0], [0], [1], [0, 0, 1, 1], [], []>} : vector<48x256xbf16>, vector<256x128xbf16>, vector<48x128xf32> -> vector<48x128xf32>
    %c0_51 = arith.constant 0 : index
    %c0_52 = arith.constant 0 : index
    %165 = vector.load %arg8[%c0_51, %c0_52] : memref<1x128xf32, #tpu.memory_space<vmem>>, vector<1x128xf32>
    %166 = vector.broadcast %165 : vector<1x128xf32> to vector<48x128xf32>
    %167 = arith.addf %164, %166 : vector<48x128xf32>
    %168 = vector.shape_cast %167 : vector<48x128xf32> to vector<6x8x128xf32>
    %c0_53 = arith.constant 0 : index
    %c0_54 = arith.constant 0 : index
    %c0_55 = arith.constant 0 : index
    %c0_56 = arith.constant 0 : index
    %169 = vector.load %arg10[%c0_53, %c0_54, %c0_55, %c0_56] : memref<1x6x8x128xf32, #tpu.memory_space<vmem>>, vector<1x6x8x128xf32>
    %170 = vector.shape_cast %169 : vector<1x6x8x128xf32> to vector<6x8x128xf32>
    %171 = vector.shape_cast %168 : vector<6x8x128xf32> to vector<1x6x8x128xf32>
    tpu.vector_store %arg10[%c0_53, %c0_54, %c0_55, %c0_56], %171 {strides = array<i32>} : memref<1x6x8x128xf32, #tpu.memory_space<vmem>>, vector<1x6x8x128xf32>,
    return
  }
  func.func @transform_0(%arg0: i32) -> (i32, i32, i32, i32) {
    %c0_i32 = arith.constant 0 : i32
    %c0_i32_0 = arith.constant 0 : i32
    %c0_i32_1 = arith.constant 0 : i32
    %c0_i32_2 = arith.constant 0 : i32
    return %arg0, %c0_i32, %c0_i32_0, %c0_i32_1 : i32, i32, i32, i32
  }
  func.func @transform_1(%arg0: i32) -> (i32, i32) {
    %c0_i32 = arith.constant 0 : i32
    %c0_i32_0 = arith.constant 0 : i32
    %c0_i32_1 = arith.constant 0 : i32
    return %c0_i32, %c0_i32_0 : i32, i32
  }
  func.func @transform_2(%arg0: i32) -> (i32, i32, i32) {
    %c0_i32 = arith.constant 0 : i32
    %c0_i32_0 = arith.constant 0 : i32
    %c0_i32_1 = arith.constant 0 : i32
    return %arg0, %c0_i32, %c0_i32_0 : i32, i32, i32
  }
  func.func @transform_3(%arg0: i32) -> (i32, i32, i32) {
    %c0_i32 = arith.constant 0 : i32
    %c0_i32_0 = arith.constant 0 : i32
    %c0_i32_1 = arith.constant 0 : i32
    return %arg0, %c0_i32, %c0_i32_0 : i32, i32, i32
  }
  func.func @transform_4(%arg0: i32) -> (i32, i32, i32) {
    %c0_i32 = arith.constant 0 : i32
    %c0_i32_0 = arith.constant 0 : i32
    %c0_i32_1 = arith.constant 0 : i32
    return %arg0, %c0_i32, %c0_i32_0 : i32, i32, i32
  }
  func.func @transform_5(%arg0: i32) -> (i32, i32, i32) {
    %c0_i32 = arith.constant 0 : i32
    %c0_i32_0 = arith.constant 0 : i32
    %c0_i32_1 = arith.constant 0 : i32
    return %arg0, %c0_i32, %c0_i32_0 : i32, i32, i32
  }
  func.func @transform_6(%arg0: i32) -> (i32, i32) {
    %c0_i32 = arith.constant 0 : i32
    %c0_i32_0 = arith.constant 0 : i32
    %c0_i32_1 = arith.constant 0 : i32
    return %c0_i32, %c0_i32_0 : i32, i32
  }
  func.func @transform_7(%arg0: i32) -> (i32, i32) {
    %c0_i32 = arith.constant 0 : i32
    %c0_i32_0 = arith.constant 0 : i32
    %c0_i32_1 = arith.constant 0 : i32
    return %c0_i32, %c0_i32_0 : i32, i32
  }
  func.func @transform_8(%arg0: i32) -> (i32, i32, i32) {
    %c0_i32 = arith.constant 0 : i32
    %c0_i32_0 = arith.constant 0 : i32
    %c0_i32_1 = arith.constant 0 : i32
    return %arg0, %c0_i32, %c0_i32_0 : i32, i32, i32
  }
  func.func @transform_9(%arg0: i32) -> (i32, i32, i32, i32) {
    %c0_i32 = arith.constant 0 : i32
    %c0_i32_0 = arith.constant 0 : i32
    %c0_i32_1 = arith.constant 0 : i32
    %c0_i32_2 = arith.constant 0 : i32
    return %arg0, %c0_i32, %c0_i32_0, %c0_i32_1 : i32, i32, i32, i32
  }
}

</mosaic_0001>

<bundles_post_ra>
// kernel: st_duo_decoder_attn_forward.1
= control target key start
LH: loop header
LB: loop body
LE: loop exit
PB: predicated region body
PF: predicated region fallthrough
CT: control target
= control target key end

     0   :  { %s5613_s30 = smov 0   ;;  %s7444_s0 = inlined_call_operand.vmem [shape: bf16[2,6,8,128], index: 0, kind: input, shape index: {}]   ;;  %s7445_s1 = inlined_call_operand.vmem [shape: bf16[8,512], index: 1, kind: input, shape index: {}]   ;;  %s7446_s2 = inlined_call_operand.vmem [shape: bf16[2,128,768], index: 2, kind: input, shape index: {}]   ;;  %s7447_s3 = inlined_call_operand.vmem [shape: bf16[2,512,768], index: 3, kind: input, shape index: {}]   ;;  %s7448_s4 = inlined_call_operand.vmem [shape: bf16[2,256,768], index: 4, kind: input, shape index: {}]   ;;  %s7449_s5 = inlined_call_operand.vmem [shape: f32[2,1,768], index: 5, kind: input, shape index: {}]   ;;  %s7450_s6 = inlined_call_operand.vmem [shape: bf16[256,128], index: 6, kind: input, shape index: {}]   ;;  %s7451_s7 = inlined_call_operand.vmem [shape: f32[1,128], index: 7, kind: input, shape index: {}]   ;;  %s7452_s8 = inlined_call_operand.vmem [shape: f32[2,8,256], index: 8, kind: input, shape index: {}]   ;;  %s7453_s9 = inlined_call_operand.vmem [shape: f32[2,6,8,128], index: 9, kind: output, shape index: {}]  }
   0x1 LB: > { %s4321_s10 = sadd.s32 4294967295, %s5560_s30   ;;  %p4325_p0 = scmp.ge.s32.totalorder %s5560_s30, 1  ;;  %s5560_s30 = sphi %s5613_s30, %s19_s30  }
   0x2   : > { %p336_p1 = scmp.lt.s32.totalorder %s5560_s30, 3 }
   0x4   : > { %p337_p2 = pnand %p4325_p0, %p336_p1 }
   0x6   : > { %340 = sbr.rel (%p337_p2) target bundleno = 2399 (0x95f), region = 56 }
   0xd   : > { %p396_p3 = scmp.lt.s32.totalorder %s4321_s10, 1  ;;  %v5562_v0 = vmov 0   ;;  %v5711_v54 = vld [vmem:[%s7445_s1] sm:$0xff] }
   0xe   : > { %838 = vmatprep.mubr.bf16.mxu1 %v5562_v0  ;;  %775 = vmatprep.mubr.bf16.mxu0 %v5562_v0  ;;  %v5721_v59 = vcombine.high %v5711_v54, %v5711_v54 }
   0xf   : > { %s7974_s10 = smov (!%p396_p3, %s4321_s10), 1 }
  0x10   : > { %s4773_s11 = smul.u32 384, %s7974_s10  ;;  %s4719_s12 = sshll.u32 %s7974_s10, 4 }
  0x11   : > { %s4772_s15 = smul.u32 24, %s7974_s10 }
  0x12   : > { %s5629_s14 = scalar_lea.vmem %s7446_s2, %s4773_s11  ;;  %s4774_s16 = smul.u32 1536, %s7974_s10 }
  0x13   : > { %v4787_v1 = vld [vmem:[%s5629_s14 + $0x4] ss:$24 sps:$4 sm:$0xff]   ;;  %v4791_v3 = vld [vmem:[%s5629_s14] ss:$24 sps:$4 sm:$0xff]   ;;  %v4793_v5 = vld [vmem:[%s5629_s14 + $0x34] ss:$24 sps:$4 sm:$0xff]   ;;  %s5661_s19 = scalar_lea.vmem %s7444_s0, %s4772_s15  ;;  %s5905_s15 = scalar_lea.vmem %s7452_s8, %s4719_s12 }
  0x14   : > { %v4789_v2 = vld [vmem:[%s5629_s14 + $0xc] ss:$24 sps:$4 sm:$0xff]   ;;  %743 = vmatprep.subr.bf16.mxu0 %v4787_v1  ;;  %v4792_v4 = vld [vmem:[%s5629_s14 + $0x8] ss:$24 sps:$4 sm:$0xff]   ;;  %v4795_v6 = vld [vmem:[%s5629_s14 + $0x3c] ss:$24 sps:$4 sm:$0xff]   ;;  %s5667_s22 = scalar_lea.vmem %s7447_s3, %s4774_s16 }
  0x15   : > { %806 = vmatprep.subr.bf16.mxu1 %v4789_v2  ;;  %744 = vmatpush1.bf16.msra.mxu0 %v4791_v3  ;;  %v4797_v7 = vld [vmem:[%s5629_s14 + $0x30] ss:$24 sps:$4 sm:$0xff]   ;;  %v4799_v9 = vld [vmem:[%s5629_s14 + $0x64] ss:$24 sps:$4 sm:$0xff]   ;;  %v4803_v11 = vld [vmem:[%s5629_s14 + $0x60] ss:$24 sps:$4 sm:$0xff]  }
  0x16   : > { %807 = vmatpush1.bf16.msra.mxu1 %v4792_v4  ;;  %745 = vmatprep.subr.bf16.mxu0 %v4793_v5  ;;  %v4798_v8 = vld [vmem:[%s5629_s14 + $0x38] ss:$24 sps:$4 sm:$0xff]   ;;  %v4801_v10 = vld [vmem:[%s5629_s14 + $0x6c] ss:$24 sps:$4 sm:$0xff]   ;;  %v4804_v12 = vld [vmem:[%s5629_s14 + $0x68] ss:$24 sps:$4 sm:$0xff]  }
  0x17   : > { %808 = vmatprep.subr.bf16.mxu1 %v4795_v6  ;;  %v4805_v13 = vld [vmem:[%s5629_s14 + $0x94] ss:$24 sps:$4 sm:$0xff]   ;;  %v4809_v15 = vld [vmem:[%s5629_s14 + $0x90] ss:$24 sps:$4 sm:$0xff]   ;;  %v4811_v17 = vld [vmem:[%s5629_s14 + $0xc4] ss:$24 sps:$4 sm:$0xff]  }
  0x18   : > { %v4807_v14 = vld [vmem:[%s5629_s14 + $0x9c] ss:$24 sps:$4 sm:$0xff]   ;;  %v4810_v16 = vld [vmem:[%s5629_s14 + $0x98] ss:$24 sps:$4 sm:$0xff]   ;;  %v4813_v18 = vld [vmem:[%s5629_s14 + $0xcc] ss:$24 sps:$4 sm:$0xff]  }
  0x19   : > { %746 = vmatpush1.bf16.msra.mxu0 %v4797_v7  ;;  %v4815_v19 = vld [vmem:[%s5629_s14 + $0xc0] ss:$24 sps:$4 sm:$0xff]   ;;  %v4817_v21 = vld [vmem:[%s5629_s14 + $0xf4] ss:$24 sps:$4 sm:$0xff]   ;;  %v4821_v23 = vld [vmem:[%s5629_s14 + $0xf0] ss:$24 sps:$4 sm:$0xff]  }
  0x1a   : > { %809 = vmatpush1.bf16.msra.mxu1 %v4798_v8  ;;  %747 = vmatprep.subr.bf16.mxu0 %v4799_v9  ;;  %v4816_v20 = vld [vmem:[%s5629_s14 + $0xc8] ss:$24 sps:$4 sm:$0xff]   ;;  %v4819_v22 = vld [vmem:[%s5629_s14 + $0xfc] ss:$24 sps:$4 sm:$0xff]   ;;  %v4822_v24 = vld [vmem:[%s5629_s14 + $0xf8] ss:$24 sps:$4 sm:$0xff]  }
  0x1b   : > { %810 = vmatprep.subr.bf16.mxu1 %v4801_v10  ;;  %v4823_v25 = vld [vmem:[%s5629_s14 + $0x124] ss:$24 sps:$4 sm:$0xff]   ;;  %v4827_v27 = vld [vmem:[%s5629_s14 + $0x120] ss:$24 sps:$4 sm:$0xff]   ;;  %v4829_v29 = vld [vmem:[%s5629_s14 + $0x154] ss:$24 sps:$4 sm:$0xff]  }
  0x1c   : > { %v4825_v26 = vld [vmem:[%s5629_s14 + $0x12c] ss:$24 sps:$4 sm:$0xff]   ;;  %v4828_v28 = vld [vmem:[%s5629_s14 + $0x128] ss:$24 sps:$4 sm:$0xff]   ;;  %v4831_v30 = vld [vmem:[%s5629_s14 + $0x15c] ss:$24 sps:$4 sm:$0xff]  }
  0x1d   : > { %748 = vmatpush1.bf16.msra.mxu0 %v4803_v11  ;;  %v4833_v31 = vld [vmem:[%s5629_s14 + $0x150] ss:$24 sps:$4 sm:$0xff]   ;;  %v4838_v33 = vld [vmem:[%s5629_s14 + $0x14] ss:$24 sps:$4 sm:$0xff]   ;;  %v4841_v34 = vld [vmem:[%s5667_s22 + $0x4] ss:$24 sps:$4 sm:$0xff]  }
  0x1e   : > { %811 = vmatpush1.bf16.msra.mxu1 %v4804_v12  ;;  %749 = vmatprep.subr.bf16.mxu0 %v4805_v13  ;;  %v4834_v32 = vld [vmem:[%s5629_s14 + $0x158] ss:$24 sps:$4 sm:$0xff]   ;;  %v5678_v35 = vld [vmem:[%s5661_s19] sm:$0xff]   ;;  %v4847_v39 = vld [vmem:[%s5667_s22 + $0x34] ss:$24 sps:$4 sm:$0xff]   ;;  %s4775_s27 = smul.u32 768, %s7974_s10 }
  0x1f   : > { %812 = vmatprep.subr.bf16.mxu1 %v4807_v14  ;;  %v4836_v36 = vld [vmem:[%s5629_s14 + $0x10] ss:$24 sps:$4 sm:$0xff]   ;;  %v4839_v37 = vld [vmem:[%s5667_s22] ss:$24 sps:$4 sm:$0xff]   ;;  %v4844_v38 = vld [vmem:[%s5629_s14 + $0x44] ss:$24 sps:$4 sm:$0xff]  }
  0x20   : > { %v4842_v40 = vld [vmem:[%s5629_s14 + $0x40] ss:$24 sps:$4 sm:$0xff]   ;;  %v4845_v41 = vld [vmem:[%s5667_s22 + $0x30] ss:$24 sps:$4 sm:$0xff]   ;;  %v4850_v42 = vld [vmem:[%s5629_s14 + $0x74] ss:$24 sps:$4 sm:$0xff]   ;;  %s5832_s11 = scalar_lea.vmem %s7448_s4, %s4775_s27 }
  0x21   : > { %750 = vmatpush1.bf16.msra.mxu0 %v4809_v15  ;;  %v4853_v43 = vld [vmem:[%s5667_s22 + $0x64] ss:$24 sps:$4 sm:$0xff]   ;;  %v5693_v44 = vld [vmem:[%s5661_s19 + $0x8] sm:$0xff]   ;;  %v4851_v46 = vld [vmem:[%s5667_s22 + $0x60] ss:$24 sps:$4 sm:$0xff]   ;;  %s4776_s16 = smul.u32 6, %s7974_s10 }
  0x22   : > { %813 = vmatpush1.bf16.msra.mxu1 %v4810_v16  ;;  %751 = vmatprep.subr.bf16.mxu0 %v4811_v17  ;;  %v4848_v45 = vld [vmem:[%s5629_s14 + $0x70] ss:$24 sps:$4 sm:$0xff]   ;;  %v4856_v47 = vld [vmem:[%s5629_s14 + $0xa4] ss:$24 sps:$4 sm:$0xff]   ;;  %v4859_v48 = vld [vmem:[%s5667_s22 + $0x94] ss:$24 sps:$4 sm:$0xff]  }
  0x23   : > { %814 = vmatprep.subr.bf16.mxu1 %v4813_v18  ;;  %v4854_v49 = vld [vmem:[%s5629_s14 + $0xa0] ss:$24 sps:$4 sm:$0xff]   ;;  %v4857_v50 = vld [vmem:[%s5667_s22 + $0x90] ss:$24 sps:$4 sm:$0xff]   ;;  %v4862_v51 = vld [vmem:[%s5629_s14 + $0xd4] ss:$24 sps:$4 sm:$0xff]  }
  0x24   : > { %v4865_v52 = vld [vmem:[%s5667_s22 + $0xc4] ss:$24 sps:$4 sm:$0xff]   ;;  %v4860_v53 = vld [vmem:[%s5629_s14 + $0xd0] ss:$24 sps:$4 sm:$0xff]   ;;  %v4863_v56 = vld [vmem:[%s5667_s22 + $0xc0] ss:$24 sps:$4 sm:$0xff]  }
  0x25   : > { %752 = vmatpush1.bf16.msra.mxu0 %v4815_v19  ;;  %v5714_v55 = vld [vmem:[%s5661_s19 + $0x10] sm:$0xff]   ;;  %v4869_v57 = vld [vmem:[%s5629_s14 + $0x104] ss:$24 sps:$4 sm:$0xff]   ;;  %v4867_v60 = vld [vmem:[%s5629_s14 + $0x100] ss:$24 sps:$4 sm:$0xff]   ;;  %s419_s19 = scalar_lea.vmem %s7449_s5, %s4776_s16 }
  0x26   : > { %815 = vmatpush1.bf16.msra.mxu1 %v4816_v20  ;;  %753 = vmatprep.subr.bf16.mxu0 %v4817_v21  ;;  %v4872_v58 = vld [vmem:[%s5667_s22 + $0xf4] ss:$24 sps:$4 sm:$0xff]   ;;  %v4870_v61 = vld [vmem:[%s5667_s22 + $0xf0] ss:$24 sps:$4 sm:$0xff]   ;;  %v4878_v63 = vld [vmem:[%s5667_s22 + $0x124] ss:$24 sps:$4 sm:$0xff]  }
  0x27   : > { %816 = vmatprep.subr.bf16.mxu1 %v4819_v22  ;;  %v4875_v62 = vld [vmem:[%s5629_s14 + $0x134] ss:$24 sps:$4 sm:$0xff]   ;;  %v4873_v1 = vld [vmem:[%s5629_s14 + $0x130] ss:$24 sps:$4 sm:$0xff]   ;;  %v4876_v2 = vld [vmem:[%s5667_s22 + $0x120] ss:$24 sps:$4 sm:$0xff]  }
  0x28   : > { %v4882_v3 = vld [vmem:[%s5629_s14 + $0x164] ss:$24 sps:$4 sm:$0xff]   ;;  %v4885_v4 = vld [vmem:[%s5667_s22 + $0x154] ss:$24 sps:$4 sm:$0xff]   ;;  %v4880_v5 = vld [vmem:[%s5629_s14 + $0x160] ss:$24 sps:$4 sm:$0xff]  }
  0x29   : > { %754 = vmatpush1.bf16.msra.mxu0 %v4821_v23  ;;  %v4883_v6 = vld [vmem:[%s5667_s22 + $0x150] ss:$24 sps:$4 sm:$0xff]   ;;  %v4888_v7 = vld [vmem:[%s5667_s22 + $0x184] ss:$24 sps:$4 sm:$0xff]   ;;  %v4886_v9 = vld [vmem:[%s5667_s22 + $0x180] ss:$24 sps:$4 sm:$0xff]  }
  0x2a   : > { %817 = vmatpush1.bf16.msra.mxu1 %v4822_v24  ;;  %755 = vmatprep.subr.bf16.mxu0 %v4823_v25  ;;  %v4891_v8 = vld [vmem:[%s5667_s22 + $0xc] ss:$24 sps:$4 sm:$0xff]   ;;  %v4889_v10 = vld [vmem:[%s5667_s22 + $0x8] ss:$24 sps:$4 sm:$0xff]   ;;  %v4897_v12 = vld [vmem:[%s5667_s22 + $0x3c] ss:$24 sps:$4 sm:$0xff]  }
  0x2b   : > { %818 = vmatprep.subr.bf16.mxu1 %v4825_v26  ;;  %v4894_v11 = vld [vmem:[%s5667_s22 + $0x1b4] ss:$24 sps:$4 sm:$0xff]   ;;  %v4892_v13 = vld [vmem:[%s5667_s22 + $0x1b0] ss:$24 sps:$4 sm:$0xff]   ;;  %v4900_v15 = vld [vmem:[%s5667_s22 + $0x1e4] ss:$24 sps:$4 sm:$0xff]  }
  0x2c   : > { %v4895_v14 = vld [vmem:[%s5667_s22 + $0x38] ss:$24 sps:$4 sm:$0xff]   ;;  %v4903_v16 = vld [vmem:[%s5667_s22 + $0x6c] ss:$24 sps:$4 sm:$0xff]   ;;  %v4901_v18 = vld [vmem:[%s5667_s22 + $0x68] ss:$24 sps:$4 sm:$0xff]  }
  0x2d   : > { %756 = vmatpush1.bf16.msra.mxu0 %v4827_v27  ;;  %v4898_v17 = vld [vmem:[%s5667_s22 + $0x1e0] ss:$24 sps:$4 sm:$0xff]   ;;  %v4906_v19 = vld [vmem:[%s5667_s22 + $0x214] ss:$24 sps:$4 sm:$0xff]   ;;  %v4904_v21 = vld [vmem:[%s5667_s22 + $0x210] ss:$24 sps:$4 sm:$0xff]  }
  0x2e   : > { %819 = vmatpush1.bf16.msra.mxu1 %v4828_v28  ;;  %757 = vmatprep.subr.bf16.mxu0 %v4829_v29  ;;  %v4909_v20 = vld [vmem:[%s5667_s22 + $0x9c] ss:$24 sps:$4 sm:$0xff]   ;;  %v4907_v22 = vld [vmem:[%s5667_s22 + $0x98] ss:$24 sps:$4 sm:$0xff]   ;;  %v4915_v24 = vld [vmem:[%s5667_s22 + $0xcc] ss:$24 sps:$4 sm:$0xff]  }
  0x2f   : > { %820 = vmatprep.subr.bf16.mxu1 %v4831_v30  ;;  %v4912_v23 = vld [vmem:[%s5667_s22 + $0x244] ss:$24 sps:$4 sm:$0xff]   ;;  %v4910_v25 = vld [vmem:[%s5667_s22 + $0x240] ss:$24 sps:$4 sm:$0xff]   ;;  %v4918_v27 = vld [vmem:[%s5667_s22 + $0x274] ss:$24 sps:$4 sm:$0xff]  }
  0x30   : > { %v4913_v26 = vld [vmem:[%s5667_s22 + $0xc8] ss:$24 sps:$4 sm:$0xff]   ;;  %v4921_v28 = vld [vmem:[%s5667_s22 + $0xfc] ss:$24 sps:$4 sm:$0xff]   ;;  %s4777_s14 = smul.u32 48, %s7974_s10 }
  0x31   : > { %758 = vmatpush1.bf16.msra.mxu0 %v4833_v31  ;;  %v4916_v29 = vld [vmem:[%s5667_s22 + $0x270] ss:$24 sps:$4 sm:$0xff]   ;;  %v4924_v30 = vld [vmem:[%s5667_s22 + $0x2a4] ss:$24 sps:$4 sm:$0xff]  }
  0x32   : > { %821 = vmatpush1.bf16.msra.mxu1 %v4834_v32  ;;  %869 = vmatprep.subr.bf16.mxu0 %v4838_v33  ;;  %v4927_v31 = vld [vmem:[%s5667_s22 + $0x12c] ss:$24 sps:$4 sm:$0xff]   ;;  %v4922_v32 = vld [vmem:[%s5667_s22 + $0x2a0] ss:$24 sps:$4 sm:$0xff]  }
  0x33   : > { %2132 = vmatprep.subr.bf16.mxu1 %v4841_v34  ;;  %v4925_v33 = vld [vmem:[%s5667_s22 + $0x128] ss:$24 sps:$4 sm:$0xff]   ;;  %v4930_v34 = vld [vmem:[%s5667_s22 + $0x2d4] ss:$24 sps:$4 sm:$0xff]  }
  0x34   : > { %776 = vmatmul.mubr.bf16.vlgmr.msra.gmra.mrb[0].mxu0 %v5678_v35 }
  0x35   : > { %839 = vmatmul.mubr.bf16.vlgmr.msra.gmra.mrb[0].mxu1 %v5678_v35  ;;  %870 = vmatpush1.bf16.msra.mxu0 %v4836_v36  ;;  %v4928_v36 = vld [vmem:[%s5667_s22 + $0x2d0] ss:$24 sps:$4 sm:$0xff]  }
  0x36   : > { %2133 = vmatpush1.bf16.msra.mxu1 %v4839_v37  ;;  %871 = vmatprep.subr.bf16.mxu0 %v4844_v38  ;;  %v4931_v37 = vld [vmem:[%s5667_s22 + $0x158] ss:$24 sps:$4 sm:$0xff]   ;;  %v4938_v38 = vld [vmem:[%s5667_s22 + $0x304] ss:$24 sps:$4 sm:$0xff]  }
  0x37   : > { %2134 = vmatprep.subr.bf16.mxu1 %v4847_v39  ;;  %785 = vmatprep.mubr.bf16.mxu0 %v5562_v0  ;;  %v4941_v39 = vld [vmem:[%s5667_s22 + $0x18c] ss:$24 sps:$4 sm:$0xff]  }
  0x38   : > { %848 = vmatprep.mubr.bf16.mxu1 %v5562_v0 }
  0x39   : > { %872 = vmatpush1.bf16.msra.mxu0 %v4842_v40  ;;  %v5779_v40 = vcombine.low %v5711_v54, %v5711_v54  ;;  %v4957_v54 = vld [vmem:[%s5667_s22 + $0x218] ss:$24 sps:$4 sm:$0xff]  }
  0x3a   : > { %2135 = vmatpush1.bf16.msra.mxu1 %v4845_v41  ;;  %873 = vmatprep.subr.bf16.mxu0 %v4850_v42  ;;  %v4936_v41 = vld [vmem:[%s5667_s22 + $0x300] ss:$24 sps:$4 sm:$0xff]  }
  0x3b   : > { %2136 = vmatprep.subr.bf16.mxu1 %v4853_v43  ;;  %v4939_v42 = vld [vmem:[%s5667_s22 + $0x188] ss:$24 sps:$4 sm:$0xff]   ;;  %v4944_v43 = vld [vmem:[%s5667_s22 + $0x334] ss:$24 sps:$4 sm:$0xff]  }
  0x3c   : > { %786 = vmatmul.mubr.bf16.gmra.mrb[4].mxu0 %v5693_v44 }
  0x3d   : > { %849 = vmatmul.mubr.bf16.gmra.mrb[4].mxu1 %v5693_v44  ;;  %874 = vmatpush1.bf16.msra.mxu0 %v4848_v45  ;;  %v4942_v45 = vld [vmem:[%s5667_s22 + $0x330] ss:$24 sps:$4 sm:$0xff]  }
  0x3e   : > { %2137 = vmatpush1.bf16.msra.mxu1 %v4851_v46  ;;  %875 = vmatprep.subr.bf16.mxu0 %v4856_v47  ;;  %v4945_v46 = vld [vmem:[%s5667_s22 + $0x1b8] ss:$24 sps:$4 sm:$0xff]   ;;  %v4950_v47 = vld [vmem:[%s5667_s22 + $0x364] ss:$24 sps:$4 sm:$0xff]  }
  0x3f   : > { %2138 = vmatprep.subr.bf16.mxu1 %v4859_v48  ;;  %795 = vmatprep.mubr.bf16.mxu0 %v5562_v0  ;;  %v4953_v48 = vld [vmem:[%s5667_s22 + $0x1ec] ss:$24 sps:$4 sm:$0xff]  }
  0x40   : > { %858 = vmatprep.mubr.bf16.mxu1 %v5562_v0 }
  0x41   : > { %876 = vmatpush1.bf16.msra.mxu0 %v4854_v49  ;;  %v4948_v49 = vld [vmem:[%s5667_s22 + $0x360] ss:$24 sps:$4 sm:$0xff]  }
  0x42   : > { %2139 = vmatpush1.bf16.msra.mxu1 %v4857_v50  ;;  %877 = vmatprep.subr.bf16.mxu0 %v4862_v51  ;;  %v4951_v50 = vld [vmem:[%s5667_s22 + $0x1e8] ss:$24 sps:$4 sm:$0xff]   ;;  %v4956_v51 = vld [vmem:[%s5667_s22 + $0x394] ss:$24 sps:$4 sm:$0xff]  }
  0x43   : > { %2140 = vmatprep.subr.bf16.mxu1 %v4865_v52  ;;  %v4959_v52 = vld [vmem:[%s5667_s22 + $0x21c] ss:$24 sps:$4 sm:$0xff]  }
  0x44   : > { %796 = vmatmul.mubr.bf16.gmra.mrb[8].mxu0 %v5714_v55 }
  0x45   : > { %859 = vmatmul.mubr.bf16.gmra.mrb[8].mxu1 %v5714_v55  ;;  %878 = vmatpush1.bf16.msra.mxu0 %v4860_v53  ;;  %v4954_v53 = vld [vmem:[%s5667_s22 + $0x390] ss:$24 sps:$4 sm:$0xff]  }
  0x46   : > { %2141 = vmatpush1.bf16.msra.mxu1 %v4863_v56  ;;  %879 = vmatprep.subr.bf16.mxu0 %v4869_v57  ;;  %v4965_v56 = vld [vmem:[%s5667_s22 + $0x24c] ss:$24 sps:$4 sm:$0xff]  }
  0x47   : > { %2142 = vmatprep.subr.bf16.mxu1 %v4872_v58  ;;  %901 = vmatprep.mubr.bf16.mxu0 %v5562_v0  ;;  %v5801_v57 = vld [vmem:[%s7445_s1 + $0x8] sm:$0xff] }
  0x48   : > { %2164 = vmatprep.mubr.bf16.mxu1 %v5721_v59  ;;  %v5805_v58 = vcombine.high %v5801_v57, %v5801_v57 }
  0x49   : > { %880 = vmatpush1.bf16.msra.mxu0 %v4867_v60  ;;  %v4960_v60 = vld [vmem:[%s5667_s22 + $0x3c0] ss:$24 sps:$4 sm:$0xff]  }
  0x4a   : > { %2143 = vmatpush1.bf16.msra.mxu1 %v4870_v61  ;;  %881 = vmatprep.subr.bf16.mxu0 %v4875_v62  ;;  %v4963_v61 = vld [vmem:[%s5667_s22 + $0x248] ss:$24 sps:$4 sm:$0xff]   ;;  %v4968_v62 = vld [vmem:[%s5667_s22 + $0x3f4] ss:$24 sps:$4 sm:$0xff]  }
  0x4b   : > { %2144 = vmatprep.subr.bf16.mxu1 %v4878_v63  ;;  %v4971_v63 = vld [vmem:[%s5667_s22 + $0x27c] ss:$24 sps:$4 sm:$0xff]  }
  0x4d   : > { %882 = vmatpush1.bf16.msra.mxu0 %v4873_v1  ;;  %v4966_v1 = vld [vmem:[%s5667_s22 + $0x3f0] ss:$24 sps:$4 sm:$0xff]  }
  0x4e   : > { %2145 = vmatpush1.bf16.msra.mxu1 %v4876_v2  ;;  %883 = vmatprep.subr.bf16.mxu0 %v4882_v3  ;;  %v4969_v2 = vld [vmem:[%s5667_s22 + $0x278] ss:$24 sps:$4 sm:$0xff]   ;;  %v4974_v3 = vld [vmem:[%s5667_s22 + $0x424] ss:$24 sps:$4 sm:$0xff]  }
  0x4f   : > { %2146 = vmatprep.subr.bf16.mxu1 %v4885_v4  ;;  %v4977_v4 = vld [vmem:[%s5667_s22 + $0x2ac] ss:$24 sps:$4 sm:$0xff]  }
  0x51   : > { %884 = vmatpush1.bf16.msra.mxu0 %v4880_v5  ;;  %v4972_v5 = vld [vmem:[%s5667_s22 + $0x420] ss:$24 sps:$4 sm:$0xff]  }
  0x52   : > { %2147 = vmatpush1.bf16.msra.mxu1 %v4883_v6  ;;  %2214 = vmatprep.subr.bf16.mxu0 %v4891_v8  ;;  %v4975_v6 = vld [vmem:[%s5667_s22 + $0x2a8] ss:$24 sps:$4 sm:$0xff]   ;;  %v4983_v8 = vld [vmem:[%s5667_s22 + $0x2dc] ss:$24 sps:$4 sm:$0xff]  }
  0x53   : > { %2148 = vmatprep.subr.bf16.mxu1 %v4888_v7  ;;  %v4980_v7 = vld [vmem:[%s5667_s22 + $0x454] ss:$24 sps:$4 sm:$0xff]  }
  0x54   : > { %902 = vmatmul.mubr.bf16.vlgmr.msra.gmra.mrb[12].mxu0 %v5678_v35  ;;  %v4933_v35 = vld [vmem:[%s5667_s22 + $0x15c] ss:$24 sps:$4 sm:$0xff]  }
  0x55   : > { %2215 = vmatpush1.bf16.msra.mxu0 %v4889_v10  ;;  %911 = vmatprep.mubr.bf16.mxu0 %v5562_v0  ;;  %v4981_v10 = vld [vmem:[%s5667_s22 + $0x2d8] ss:$24 sps:$4 sm:$0xff]  }
  0x56   : > { %2149 = vmatpush1.bf16.msra.mxu1 %v4886_v9  ;;  %2216 = vmatprep.subr.bf16.mxu0 %v4897_v12  ;;  %v4978_v9 = vld [vmem:[%s5667_s22 + $0x450] ss:$24 sps:$4 sm:$0xff]   ;;  %v4989_v12 = vld [vmem:[%s5667_s22 + $0x30c] ss:$24 sps:$4 sm:$0xff]  }
  0x57   : > { %2150 = vmatprep.subr.bf16.mxu1 %v4894_v11  ;;  %v4986_v11 = vld [vmem:[%s5667_s22 + $0x484] ss:$24 sps:$4 sm:$0xff]  }
  0x59   : > { %2217 = vmatpush1.bf16.msra.mxu0 %v4895_v14  ;;  %v4987_v14 = vld [vmem:[%s5667_s22 + $0x308] ss:$24 sps:$4 sm:$0xff]  }
  0x5a   : > { %2151 = vmatpush1.bf16.msra.mxu1 %v4892_v13  ;;  %2218 = vmatprep.subr.bf16.mxu0 %v4903_v16  ;;  %v4984_v13 = vld [vmem:[%s5667_s22 + $0x480] ss:$24 sps:$4 sm:$0xff]   ;;  %v4995_v16 = vld [vmem:[%s5667_s22 + $0x33c] ss:$24 sps:$4 sm:$0xff]  }
  0x5b   : > { %2152 = vmatprep.subr.bf16.mxu1 %v4900_v15  ;;  %v4992_v15 = vld [vmem:[%s5667_s22 + $0x4b4] ss:$24 sps:$4 sm:$0xff]  }
  0x5c   : > { %912 = vmatmul.mubr.bf16.gmra.mrb[16].mxu0 %v5693_v44  ;;  %v4947_v44 = vld [vmem:[%s5667_s22 + $0x1bc] ss:$24 sps:$4 sm:$0xff]  }
  0x5d   : > { %2219 = vmatpush1.bf16.msra.mxu0 %v4901_v18  ;;  %921 = vmatprep.mubr.bf16.mxu0 %v5562_v0  ;;  %v4919_v0 = vld [vmem:[%s5667_s22 + $0xf8] ss:$24 sps:$4 sm:$0xff]  }
  0x5e   : > { %2153 = vmatpush1.bf16.msra.mxu1 %v4898_v17  ;;  %2220 = vmatprep.subr.bf16.mxu0 %v4909_v20  ;;  %v4990_v17 = vld [vmem:[%s5667_s22 + $0x4b0] ss:$24 sps:$4 sm:$0xff]   ;;  %v5001_v20 = vld [vmem:[%s5667_s22 + $0x36c] ss:$24 sps:$4 sm:$0xff]  }
  0x5f   : > { %2154 = vmatprep.subr.bf16.mxu1 %v4906_v19  ;;  %v4993_v18 = vld [vmem:[%s5667_s22 + $0x338] ss:$24 sps:$4 sm:$0xff]   ;;  %v4998_v19 = vld [vmem:[%s5667_s22 + $0x4e4] ss:$24 sps:$4 sm:$0xff]  }
  0x61   : > { %2221 = vmatpush1.bf16.msra.mxu0 %v4907_v22  ;;  %v4999_v22 = vld [vmem:[%s5667_s22 + $0x368] ss:$24 sps:$4 sm:$0xff]  }
  0x62   : > { %2155 = vmatpush1.bf16.msra.mxu1 %v4904_v21  ;;  %2222 = vmatprep.subr.bf16.mxu0 %v4915_v24  ;;  %v4996_v21 = vld [vmem:[%s5667_s22 + $0x4e0] ss:$24 sps:$4 sm:$0xff]   ;;  %v5007_v24 = vld [vmem:[%s5667_s22 + $0x39c] ss:$24 sps:$4 sm:$0xff]  }
  0x63   : > { %2156 = vmatprep.subr.bf16.mxu1 %v4912_v23  ;;  %v5004_v23 = vld [vmem:[%s5667_s22 + $0x514] ss:$24 sps:$4 sm:$0xff]  }
  0x64   : > { %922 = vmatmul.mubr.bf16.gmra.mrb[20].mxu0 %v5714_v55  ;;  %v4962_v55 = vld [vmem:[%s5667_s22 + $0x3c4] ss:$24 sps:$4 sm:$0xff]  }
  0x65   : > { %2223 = vmatpush1.bf16.msra.mxu0 %v4913_v26  ;;  %2246 = vmatprep.mubr.bf16.mxu0 %v5721_v59  ;;  %v5005_v26 = vld [vmem:[%s5667_s22 + $0x398] ss:$24 sps:$4 sm:$0xff]  }
  0x66   : > { %2157 = vmatpush1.bf16.msra.mxu1 %v4910_v25  ;;  %2224 = vmatprep.subr.bf16.mxu0 %v4921_v28  ;;  %v5002_v25 = vld [vmem:[%s5667_s22 + $0x510] ss:$24 sps:$4 sm:$0xff]   ;;  %v5013_v28 = vld [vmem:[%s5667_s22 + $0x3cc] ss:$24 sps:$4 sm:$0xff]  }
  0x67   : > { %2158 = vmatprep.subr.bf16.mxu1 %v4918_v27  ;;  %v5010_v27 = vld [vmem:[%s5667_s22 + $0x544] ss:$24 sps:$4 sm:$0xff]  }
  0x69   : > { %2225 = vmatpush1.bf16.msra.mxu0 %v4919_v0  ;;  %v5011_v0 = vld [vmem:[%s5667_s22 + $0x3c8] ss:$24 sps:$4 sm:$0xff]  }
  0x6a   : > { %2159 = vmatpush1.bf16.msra.mxu1 %v4916_v29  ;;  %2226 = vmatprep.subr.bf16.mxu0 %v4927_v31  ;;  %v5008_v29 = vld [vmem:[%s5667_s22 + $0x540] ss:$24 sps:$4 sm:$0xff]   ;;  %v5019_v31 = vld [vmem:[%s5667_s22 + $0x3fc] ss:$24 sps:$4 sm:$0xff]  }
  0x6b   : > { %2160 = vmatprep.subr.bf16.mxu1 %v4924_v30  ;;  %v5016_v30 = vld [vmem:[%s5667_s22 + $0x574] ss:$24 sps:$4 sm:$0xff]  }
  0x6d   : > { %2227 = vmatpush1.bf16.msra.mxu0 %v4925_v33  ;;  %v5017_v33 = vld [vmem:[%s5667_s22 + $0x3f8] ss:$24 sps:$4 sm:$0xff]  }
  0x6e   : > { %2161 = vmatpush1.bf16.msra.mxu1 %v4922_v32  ;;  %2228 = vmatprep.subr.bf16.mxu0 %v4933_v35  ;;  %v5014_v32 = vld [vmem:[%s5667_s22 + $0x570] ss:$24 sps:$4 sm:$0xff]   ;;  %v5025_v35 = vld [vmem:[%s5667_s22 + $0x42c] ss:$24 sps:$4 sm:$0xff]  }
  0x6f   : > { %2162 = vmatprep.subr.bf16.mxu1 %v4930_v34  ;;  %v5022_v34 = vld [vmem:[%s5667_s22 + $0x5a4] ss:$24 sps:$4 sm:$0xff]  }
  0x71   : > { %2229 = vmatpush1.bf16.msra.mxu0 %v4931_v37  ;;  %v5023_v37 = vld [vmem:[%s5667_s22 + $0x428] ss:$24 sps:$4 sm:$0xff]  }
  0x72   : > { %2163 = vmatpush1.bf16.msra.mxu1 %v4928_v36  ;;  %2230 = vmatprep.subr.bf16.mxu0 %v4941_v39  ;;  %v5020_v36 = vld [vmem:[%s5667_s22 + $0x5a0] ss:$24 sps:$4 sm:$0xff]   ;;  %v5031_v39 = vld [vmem:[%s5667_s22 + $0x45c] ss:$24 sps:$4 sm:$0xff]  }
  0x73   : > { %2173 = vmatprep.subr.bf16.mxu1 %v4938_v38  ;;  %v5028_v38 = vld [vmem:[%s5667_s22 + $0x5d4] ss:$24 sps:$4 sm:$0xff]  }
  0x75   : > { %2165 = vmatmul.mubr.bf16.vlgmr.msra.gmra.mrb[12].mxu1 %v5779_v40  ;;  %2231 = vmatpush1.bf16.msra.mxu0 %v4939_v42  ;;  %v5029_v42 = vld [vmem:[%s5667_s22 + $0x458] ss:$24 sps:$4 sm:$0xff]  }
  0x76   : > { %2174 = vmatpush1.bf16.msra.mxu1 %v4936_v41  ;;  %2232 = vmatprep.subr.bf16.mxu0 %v4947_v44  ;;  %v5026_v41 = vld [vmem:[%s5667_s22 + $0x5d0] ss:$24 sps:$4 sm:$0xff]   ;;  %v5039_v44 = vld [vmem:[%s5667_s22 + $0x14] ss:$24 sps:$4 sm:$0xff]  }
  0x77   : > { %2175 = vmatprep.subr.bf16.mxu1 %v4944_v43  ;;  %2205 = vmatprep.mubr.bf16.mxu1 %v5805_v58  ;;  %v5036_v43 = vld [vmem:[%s5667_s22 + $0x48c] ss:$24 sps:$4 sm:$0xff]  }
  0x79   : > { %2233 = vmatpush1.bf16.msra.mxu0 %v4945_v46  ;;  %v5034_v46 = vld [vmem:[%s5667_s22 + $0x488] ss:$24 sps:$4 sm:$0xff]  }
  0x7a   : > { %2176 = vmatpush1.bf16.msra.mxu1 %v4942_v45  ;;  %2234 = vmatprep.subr.bf16.mxu0 %v4953_v48  ;;  %v5866_v45 = vcombine.low %v5801_v57, %v5801_v57  ;;  %v5042_v48 = vld [vmem:[%s5667_s22 + $0x4bc] ss:$24 sps:$4 sm:$0xff]  }
  0x7b   : > { %2177 = vmatprep.subr.bf16.mxu1 %v4950_v47  ;;  %v5037_v47 = vld [vmem:[%s5667_s22 + $0x10] ss:$24 sps:$4 sm:$0xff]   ;;  %v5057_v57 = vld [vmem:[%s5667_s22 + $0xa4] ss:$24 sps:$4 sm:$0xff]  }
  0x7d   : > { %2235 = vmatpush1.bf16.msra.mxu0 %v4951_v50  ;;  %v5040_v50 = vld [vmem:[%s5667_s22 + $0x4b8] ss:$24 sps:$4 sm:$0xff]  }
  0x7e   : > { %2178 = vmatpush1.bf16.msra.mxu1 %v4948_v49  ;;  %2236 = vmatprep.subr.bf16.mxu0 %v4959_v52  ;;  %v5045_v49 = vld [vmem:[%s5667_s22 + $0x44] ss:$24 sps:$4 sm:$0xff]  }
  0x7f   : > { %2179 = vmatprep.subr.bf16.mxu1 %v4956_v51  ;;  %v5043_v51 = vld [vmem:[%s5667_s22 + $0x40] ss:$24 sps:$4 sm:$0xff]   ;;  %v5048_v52 = vld [vmem:[%s5667_s22 + $0x4ec] ss:$24 sps:$4 sm:$0xff]  }
  0x81   : > { %2237 = vmatpush1.bf16.msra.mxu0 %v4957_v54  ;;  %v5046_v54 = vld [vmem:[%s5667_s22 + $0x4e8] ss:$24 sps:$4 sm:$0xff]  }
  0x82   : > { %2180 = vmatpush1.bf16.msra.mxu1 %v4954_v53  ;;  %2238 = vmatprep.subr.bf16.mxu0 %v4965_v56  ;;  %v5051_v53 = vld [vmem:[%s5667_s22 + $0x74] ss:$24 sps:$4 sm:$0xff]  }
  0x83   : > { %2181 = vmatprep.subr.bf16.mxu1 %v4962_v55  ;;  %v5049_v55 = vld [vmem:[%s5667_s22 + $0x70] ss:$24 sps:$4 sm:$0xff]   ;;  %v5054_v56 = vld [vmem:[%s5667_s22 + $0x51c] ss:$24 sps:$4 sm:$0xff]  }
  0x85   : > { %2239 = vmatpush1.bf16.msra.mxu0 %v4963_v61  ;;  %v5055_v61 = vld [vmem:[%s5667_s22 + $0xa0] ss:$24 sps:$4 sm:$0xff]  }
  0x86   : > { %2182 = vmatpush1.bf16.msra.mxu1 %v4960_v60  ;;  %2240 = vmatprep.subr.bf16.mxu0 %v4971_v63  ;;  %v5052_v60 = vld [vmem:[%s5667_s22 + $0x518] ss:$24 sps:$4 sm:$0xff]   ;;  %v5058_v63 = vld [vmem:[%s5667_s22 + $0x548] ss:$24 sps:$4 sm:$0xff]  }
  0x87   : > { %2183 = vmatprep.subr.bf16.mxu1 %v4968_v62  ;;  %v5063_v62 = vld [vmem:[%s5667_s22 + $0xd4] ss:$24 sps:$4 sm:$0xff]  }
  0x89   : > { %2241 = vmatpush1.bf16.msra.mxu0 %v4969_v2  ;;  %v5066_v2 = vld [vmem:[%s5667_s22 + $0x57c] ss:$24 sps:$4 sm:$0xff]  }
  0x8a   : > { %2184 = vmatpush1.bf16.msra.mxu1 %v4966_v1  ;;  %2242 = vmatprep.subr.bf16.mxu0 %v4977_v4  ;;  %v5061_v1 = vld [vmem:[%s5667_s22 + $0xd0] ss:$24 sps:$4 sm:$0xff]  }
  0x8b   : > { %2185 = vmatprep.subr.bf16.mxu1 %v4974_v3  ;;  %v5069_v3 = vld [vmem:[%s5667_s22 + $0x104] ss:$24 sps:$4 sm:$0xff]   ;;  %v5064_v4 = vld [vmem:[%s5667_s22 + $0x578] ss:$24 sps:$4 sm:$0xff]  }
  0x8d   : > { %2243 = vmatpush1.bf16.msra.mxu0 %v4975_v6  ;;  %v5072_v6 = vld [vmem:[%s5667_s22 + $0x5ac] ss:$24 sps:$4 sm:$0xff]  }
  0x8e   : > { %2186 = vmatpush1.bf16.msra.mxu1 %v4972_v5  ;;  %2244 = vmatprep.subr.bf16.mxu0 %v4983_v8  ;;  %v5067_v5 = vld [vmem:[%s5667_s22 + $0x100] ss:$24 sps:$4 sm:$0xff]  }
  0x8f   : > { %2187 = vmatprep.subr.bf16.mxu1 %v4980_v7  ;;  %v5075_v7 = vld [vmem:[%s5667_s22 + $0x134] ss:$24 sps:$4 sm:$0xff]   ;;  %v5070_v8 = vld [vmem:[%s5667_s22 + $0x5a8] ss:$24 sps:$4 sm:$0xff]  }
  0x91   : > { %2245 = vmatpush1.bf16.msra.mxu0 %v4981_v10  ;;  %v5078_v10 = vld [vmem:[%s5667_s22 + $0x5dc] ss:$24 sps:$4 sm:$0xff]  }
  0x92   : > { %2188 = vmatpush1.bf16.msra.mxu1 %v4978_v9  ;;  %2255 = vmatprep.subr.bf16.mxu0 %v4989_v12  ;;  %v5073_v9 = vld [vmem:[%s5667_s22 + $0x130] ss:$24 sps:$4 sm:$0xff]  }
  0x93   : > { %2189 = vmatprep.subr.bf16.mxu1 %v4986_v11  ;;  %v5081_v11 = vld [vmem:[%s5667_s22 + $0x164] ss:$24 sps:$4 sm:$0xff]   ;;  %v5076_v12 = vld [vmem:[%s5667_s22 + $0x5d8] ss:$24 sps:$4 sm:$0xff]  }
  0x94   : > { %2247 = vmatmul.mubr.bf16.vlgmr.msra.gmra.mrb[24].mxu0 %v5779_v40 }
  0x95   : > { %2256 = vmatpush1.bf16.msra.mxu0 %v4987_v14  ;;  %2287 = vmatprep.mubr.bf16.mxu0 %v5805_v58  ;;  %v5084_v14 = vld [vmem:[%s5667_s22 + $0x194] ss:$24 sps:$4 sm:$0xff]  }
  0x96   : > { %2190 = vmatpush1.bf16.msra.mxu1 %v4984_v13  ;;  %2257 = vmatprep.subr.bf16.mxu0 %v4995_v16  ;;  %v5079_v13 = vld [vmem:[%s5667_s22 + $0x160] ss:$24 sps:$4 sm:$0xff]   ;;  %v5082_v16 = vld [vmem:[%s5667_s22 + $0x190] ss:$24 sps:$4 sm:$0xff]  }
  0x97   : > { %2191 = vmatprep.subr.bf16.mxu1 %v4992_v15  ;;  %v5908_v15 = vld [vmem:[%s5832_s11 + $0x4] ss:$24 sps:$4 sm:$0xff]  }
  0x99   : > { %2258 = vmatpush1.bf16.msra.mxu0 %v4993_v18  ;;  %v2475_v18 = vld [vmem:[%s5905_s15 + $0x8] sm:$0xff] }
  0x9a   : > { %2192 = vmatpush1.bf16.msra.mxu1 %v4990_v17  ;;  %2259 = vmatprep.subr.bf16.mxu0 %v5001_v20  ;;  %v5912_v17 = vld [vmem:[%s5832_s11] ss:$24 sps:$4 sm:$0xff]   ;;  %v5918_v20 = vld [vmem:[%s5832_s11 + $0x34] ss:$24 sps:$4 sm:$0xff]  }
  0x9b   : > { %2193 = vmatprep.subr.bf16.mxu1 %v4998_v19  ;;  %v5090_v19 = vld [vmem:[%s5667_s22 + $0x1c4] ss:$24 sps:$4 sm:$0xff]  }
  0x9d   : > { %2260 = vmatpush1.bf16.msra.mxu0 %v4999_v22  ;;  %v5088_v22 = vld [vmem:[%s5667_s22 + $0x1c0] ss:$24 sps:$4 sm:$0xff]  }
  0x9e   : > { %2194 = vmatpush1.bf16.msra.mxu1 %v4996_v21  ;;  %2261 = vmatprep.subr.bf16.mxu0 %v5007_v24  ;;  %v5920_v21 = vpack.c.bf16 %v2475_v18, %v2475_v18  ;;  %v5096_v24 = vld [vmem:[%s5667_s22 + $0x1f4] ss:$24 sps:$4 sm:$0xff]   ;;  %v5166_v18 = vld [vmem:[%s5667_s22 + $0x430] ss:$24 sps:$4 sm:$0xff]  }
  0x9f   : > { %2195 = vmatprep.subr.bf16.mxu1 %v5004_v23  ;;  %v5925_v23 = vld [vmem:[%s5832_s11 + $0x30] ss:$24 sps:$4 sm:$0xff]  }
  0xa1   : > { %2262 = vmatpush1.bf16.msra.mxu0 %v5005_v26  ;;  %v5094_v26 = vld [vmem:[%s5667_s22 + $0x1f0] ss:$24 sps:$4 sm:$0xff]  }
  0xa2   : > { %2196 = vmatpush1.bf16.msra.mxu1 %v5002_v25  ;;  %2263 = vmatprep.subr.bf16.mxu0 %v5013_v28  ;;  %v5931_v25 = vld [vmem:[%s5832_s11 + $0x64] ss:$24 sps:$4 sm:$0xff]  }
  0xa3   : > { %2197 = vmatprep.subr.bf16.mxu1 %v5010_v27  ;;  %v5937_v27 = vld [vmem:[%s5832_s11 + $0x60] ss:$24 sps:$4 sm:$0xff]   ;;  %v5102_v28 = vld [vmem:[%s5667_s22 + $0x224] ss:$24 sps:$4 sm:$0xff]  }
  0xa5   : > { %2264 = vmatpush1.bf16.msra.mxu0 %v5011_v0  ;;  %v5100_v0 = vld [vmem:[%s5667_s22 + $0x220] ss:$24 sps:$4 sm:$0xff]  }
  0xa6   : > { %2198 = vmatpush1.bf16.msra.mxu1 %v5008_v29  ;;  %2265 = vmatprep.subr.bf16.mxu0 %v5019_v31  ;;  %v5942_v29 = vld [vmem:[%s5832_s11 + $0x94] ss:$24 sps:$4 sm:$0xff]  }
  0xa7   : > { %2199 = vmatprep.subr.bf16.mxu1 %v5016_v30  ;;  %v5946_v30 = vld [vmem:[%s5832_s11 + $0x90] ss:$24 sps:$4 sm:$0xff]   ;;  %v5108_v31 = vld [vmem:[%s5667_s22 + $0x254] ss:$24 sps:$4 sm:$0xff]  }
  0xa9   : > { %2266 = vmatpush1.bf16.msra.mxu0 %v5017_v33  ;;  %v5106_v33 = vld [vmem:[%s5667_s22 + $0x250] ss:$24 sps:$4 sm:$0xff]  }
  0xaa   : > { %2200 = vmatpush1.bf16.msra.mxu1 %v5014_v32  ;;  %2267 = vmatprep.subr.bf16.mxu0 %v5025_v35  ;;  %v5952_v32 = vld [vmem:[%s5832_s11 + $0xc4] ss:$24 sps:$4 sm:$0xff]  }
  0xab   : > { %2201 = vmatprep.subr.bf16.mxu1 %v5022_v34  ;;  %v5957_v34 = vld [vmem:[%s5832_s11 + $0xc0] ss:$24 sps:$4 sm:$0xff]   ;;  %v5114_v35 = vld [vmem:[%s5667_s22 + $0x284] ss:$24 sps:$4 sm:$0xff]  }
  0xad   : > { %2268 = vmatpush1.bf16.msra.mxu0 %v5023_v37  ;;  %v5112_v37 = vld [vmem:[%s5667_s22 + $0x280] ss:$24 sps:$4 sm:$0xff]  }
  0xae   : > { %2202 = vmatpush1.bf16.msra.mxu1 %v5020_v36  ;;  %2269 = vmatprep.subr.bf16.mxu0 %v5031_v39  ;;  %v5962_v36 = vld [vmem:[%s5832_s11 + $0xf4] ss:$24 sps:$4 sm:$0xff]  }
  0xaf   : > { %2203 = vmatprep.subr.bf16.mxu1 %v5028_v38  ;;  %v5966_v38 = vld [vmem:[%s5832_s11 + $0xf0] ss:$24 sps:$4 sm:$0xff]   ;;  %v5120_v39 = vld [vmem:[%s5667_s22 + $0x2b4] ss:$24 sps:$4 sm:$0xff]  }
  0xb1   : > { %2270 = vmatpush1.bf16.msra.mxu0 %v5029_v42  ;;  %v5118_v42 = vld [vmem:[%s5667_s22 + $0x2b0] ss:$24 sps:$4 sm:$0xff]  }
  0xb2   : > { %2204 = vmatpush1.bf16.msra.mxu1 %v5026_v41  ;;  %2271 = vmatprep.subr.bf16.mxu0 %v5036_v43  ;;  %v5972_v41 = vld [vmem:[%s5832_s11 + $0x124] ss:$24 sps:$4 sm:$0xff]   ;;  %v5977_v43 = vld [vmem:[%s5832_s11 + $0x120] ss:$24 sps:$4 sm:$0xff]  }
  0xb3   : > { %2296 = vmatprep.subr.bf16.mxu1 %v5039_v44  ;;  %v5126_v44 = vld [vmem:[%s5667_s22 + $0x2e4] ss:$24 sps:$4 sm:$0xff]  }
  0xb5   : > { %2206 = vmatmul.mubr.bf16.vlgmr.msra.gmra.mrb[12].mxu1 %v5866_v45  ;;  %2272 = vmatpush1.bf16.msra.mxu0 %v5034_v46  ;;  %v5982_v46 = vld [vmem:[%s5832_s11 + $0x154] ss:$24 sps:$4 sm:$0xff]  }
  0xb6   : > { %2297 = vmatpush1.bf16.msra.mxu1 %v5037_v47  ;;  %2273 = vmatprep.subr.bf16.mxu0 %v5042_v48  ;;  %v5124_v47 = vld [vmem:[%s5667_s22 + $0x2e0] ss:$24 sps:$4 sm:$0xff]   ;;  %v5986_v48 = vld [vmem:[%s5832_s11 + $0x150] ss:$24 sps:$4 sm:$0xff]  }
  0xb7   : > { %2298 = vmatprep.subr.bf16.mxu1 %v5045_v49  ;;  %2328 = vmatprep.mubr.bf16.mxu1 %v5721_v59  ;;  %v5060_v59 = vld [vmem:[%s5667_s22 + $0x54c] ss:$24 sps:$4 sm:$0xff]  }
  0xb8   : > { %v5132_v49 = vld [vmem:[%s5667_s22 + $0x314] ss:$24 sps:$4 sm:$0xff]  }
  0xb9   : > { %2274 = vmatpush1.bf16.msra.mxu0 %v5040_v50  ;;  %v5992_v50 = vld [vmem:[%s5832_s11 + $0x184] ss:$24 sps:$4 sm:$0xff]  }
  0xba   : > { %2299 = vmatpush1.bf16.msra.mxu1 %v5043_v51  ;;  %2275 = vmatprep.subr.bf16.mxu0 %v5048_v52  ;;  %v5130_v51 = vld [vmem:[%s5667_s22 + $0x310] ss:$24 sps:$4 sm:$0xff]   ;;  %v5996_v52 = vld [vmem:[%s5832_s11 + $0x180] ss:$24 sps:$4 sm:$0xff]  }
  0xbb   : > { %2300 = vmatprep.subr.bf16.mxu1 %v5051_v53  ;;  %v5138_v53 = vld [vmem:[%s5667_s22 + $0x344] ss:$24 sps:$4 sm:$0xff]  }
  0xbd   : > { %2276 = vmatpush1.bf16.msra.mxu0 %v5046_v54  ;;  %v6002_v54 = vld [vmem:[%s5832_s11 + $0x1b4] ss:$24 sps:$4 sm:$0xff]  }
  0xbe   : > { %2301 = vmatpush1.bf16.msra.mxu1 %v5049_v55  ;;  %2277 = vmatprep.subr.bf16.mxu0 %v5054_v56  ;;  %v5136_v55 = vld [vmem:[%s5667_s22 + $0x340] ss:$24 sps:$4 sm:$0xff]   ;;  %v6007_v56 = vld [vmem:[%s5832_s11 + $0x1b0] ss:$24 sps:$4 sm:$0xff]  }
  0xbf   : > { %2302 = vmatprep.subr.bf16.mxu1 %v5057_v57  ;;  %v5144_v57 = vld [vmem:[%s5667_s22 + $0x374] ss:$24 sps:$4 sm:$0xff]  }
  0xc1   : > { %2278 = vmatpush1.bf16.msra.mxu0 %v5052_v60  ;;  %v6013_v60 = vld [vmem:[%s5832_s11 + $0x1e4] ss:$24 sps:$4 sm:$0xff]  }
  0xc2   : > { %2303 = vmatpush1.bf16.msra.mxu1 %v5055_v61  ;;  %2279 = vmatprep.subr.bf16.mxu0 %v5060_v59  ;;  %v5142_v61 = vld [vmem:[%s5667_s22 + $0x370] ss:$24 sps:$4 sm:$0xff]   ;;  %v6017_v59 = vld [vmem:[%s5832_s11 + $0x1e0] ss:$24 sps:$4 sm:$0xff]  }
  0xc3   : > { %2304 = vmatprep.subr.bf16.mxu1 %v5063_v62  ;;  %v6022_v62 = vld [vmem:[%s5832_s11 + $0x214] ss:$24 sps:$4 sm:$0xff]  }
  0xc5   : > { %2280 = vmatpush1.bf16.msra.mxu0 %v5058_v63  ;;  %v5148_v63 = vld [vmem:[%s5667_s22 + $0x3a0] ss:$24 sps:$4 sm:$0xff]  }
  0xc6   : > { %2305 = vmatpush1.bf16.msra.mxu1 %v5061_v1  ;;  %2281 = vmatprep.subr.bf16.mxu0 %v5066_v2  ;;  %v6029_v1 = vld [vmem:[%s5832_s11 + $0x210] ss:$24 sps:$4 sm:$0xff]   ;;  %v6034_v2 = vld [vmem:[%s5832_s11 + $0x244] ss:$24 sps:$4 sm:$0xff]  }
  0xc7   : > { %2306 = vmatprep.subr.bf16.mxu1 %v5069_v3  ;;  %v5154_v3 = vld [vmem:[%s5667_s22 + $0x3d0] ss:$24 sps:$4 sm:$0xff]  }
  0xc9   : > { %2282 = vmatpush1.bf16.msra.mxu0 %v5064_v4  ;;  %v6039_v4 = vld [vmem:[%s5832_s11 + $0x240] ss:$24 sps:$4 sm:$0xff]  }
  0xca   : > { %2307 = vmatpush1.bf16.msra.mxu1 %v5067_v5  ;;  %2283 = vmatprep.subr.bf16.mxu0 %v5072_v6  ;;  %v5162_v5 = vld [vmem:[%s5667_s22 + $0x404] ss:$24 sps:$4 sm:$0xff]   ;;  %v6044_v6 = vld [vmem:[%s5832_s11 + $0x274] ss:$24 sps:$4 sm:$0xff]  }
  0xcb   : > { %2308 = vmatprep.subr.bf16.mxu1 %v5075_v7  ;;  %v5160_v7 = vld [vmem:[%s5667_s22 + $0x400] ss:$24 sps:$4 sm:$0xff]  }
  0xcd   : > { %2284 = vmatpush1.bf16.msra.mxu0 %v5070_v8  ;;  %v6049_v8 = vld [vmem:[%s5832_s11 + $0x270] ss:$24 sps:$4 sm:$0xff]  }
  0xce   : > { %2309 = vmatpush1.bf16.msra.mxu1 %v5073_v9  ;;  %2285 = vmatprep.subr.bf16.mxu0 %v5078_v10  ;;  %v5168_v9 = vld [vmem:[%s5667_s22 + $0x434] ss:$24 sps:$4 sm:$0xff]   ;;  %v6054_v10 = vld [vmem:[%s5832_s11 + $0x2a4] ss:$24 sps:$4 sm:$0xff]  }
  0xcf   : > { %2310 = vmatprep.subr.bf16.mxu1 %v5081_v11 }
  0xd1   : > { %2286 = vmatpush1.bf16.msra.mxu0 %v5076_v12 }
  0xd2   : > { %2311 = vmatpush1.bf16.msra.mxu1 %v5079_v13  ;;  %2964 = vmatprep.subr.bf16.mxu0 %v5908_v15 }
  0xd3   : > { %2312 = vmatprep.subr.bf16.mxu1 %v5084_v14 }
  0xd4   : > { %2288 = vmatmul.mubr.bf16.vlgmr.msra.gmra.mrb[24].mxu0 %v5866_v45 }
  0xd5   : > { %2965 = vmatpush1.bf16.msra.mxu0 %v5912_v17  ;;  %2996 = vmatprep.mubr.bf16.mxu0 %v5920_v21 }
  0xd6   : > { %2313 = vmatpush1.bf16.msra.mxu1 %v5082_v16  ;;  %2966 = vmatprep.subr.bf16.mxu0 %v5918_v20 }
  0xd7   : > { %2314 = vmatprep.subr.bf16.mxu1 %v5090_v19  ;;  %v6069_v19 = vld [vmem:[%s5832_s11 + $0x2a0] ss:$24 sps:$4 sm:$0xff]  }
  0xd8   : > { %7627 = vst [vmem:[#allocation6_spill] sm:$0xff] %v6069_v19 }
  0xd9   : > { %2967 = vmatpush1.bf16.msra.mxu0 %v5925_v23 }
  0xda   : > { %2315 = vmatpush1.bf16.msra.mxu1 %v5088_v22  ;;  %2968 = vmatprep.subr.bf16.mxu0 %v5931_v25 }
  0xdb   : > { %2316 = vmatprep.subr.bf16.mxu1 %v5096_v24 }
  0xdd   : > { %2969 = vmatpush1.bf16.msra.mxu0 %v5937_v27 }
  0xde   : > { %2317 = vmatpush1.bf16.msra.mxu1 %v5094_v26  ;;  %2970 = vmatprep.subr.bf16.mxu0 %v5942_v29  ;;  %v5174_v26 = vld [vmem:[%s5667_s22 + $0x464] ss:$24 sps:$4 sm:$0xff]  }
  0xdf   : > { %2318 = vmatprep.subr.bf16.mxu1 %v5102_v28  ;;  %v6078_v28 = vld [vmem:[%s5832_s11 + $0x2d4] ss:$24 sps:$4 sm:$0xff]  }
  0xe0   : > { %7629 = vst [vmem:[#allocation8_spill] sm:$0xff] %v6078_v28 }
  0xe1   : > { %2971 = vmatpush1.bf16.msra.mxu0 %v5946_v30 }
  0xe2   : > { %2319 = vmatpush1.bf16.msra.mxu1 %v5100_v0  ;;  %2972 = vmatprep.subr.bf16.mxu0 %v5952_v32 }
  0xe3   : > { %2320 = vmatprep.subr.bf16.mxu1 %v5108_v31  ;;  %v5172_v31 = vld [vmem:[%s5667_s22 + $0x460] ss:$24 sps:$4 sm:$0xff]  }
  0xe5   : > { %2973 = vmatpush1.bf16.msra.mxu0 %v5957_v34 }
  0xe6   : > { %2321 = vmatpush1.bf16.msra.mxu1 %v5106_v33  ;;  %2974 = vmatprep.subr.bf16.mxu0 %v5962_v36  ;;  %v6085_v33 = vld [vmem:[%s5832_s11 + $0x2d0] ss:$24 sps:$4 sm:$0xff]  }
  0xe7   : > { %2322 = vmatprep.subr.bf16.mxu1 %v5114_v35  ;;  %7630 = vst [vmem:[#allocation9_spill] sm:$0xff] %v6085_v33  ;;  %v2474_v35 = vld [vmem:[%s5905_s15] sm:$0xff] }
  0xe9   : > { %2975 = vmatpush1.bf16.msra.mxu0 %v5966_v38 }
  0xea   : > { %2323 = vmatpush1.bf16.msra.mxu1 %v5112_v37  ;;  %2976 = vmatprep.subr.bf16.mxu0 %v5972_v41  ;;  %v5180_v37 = vld [vmem:[%s5667_s22 + $0x494] ss:$24 sps:$4 sm:$0xff]  }
  0xeb   : > { %2324 = vmatprep.subr.bf16.mxu1 %v5120_v39  ;;  %v6091_v39 = vld [vmem:[%s5832_s11 + $0xc] ss:$24 sps:$4 sm:$0xff]  }
  0xed   : > { %2977 = vmatpush1.bf16.msra.mxu0 %v5977_v43 }
  0xee   : > { %2325 = vmatpush1.bf16.msra.mxu1 %v5118_v42  ;;  %2978 = vmatprep.subr.bf16.mxu0 %v5982_v46 }
  0xef   : > { %2326 = vmatprep.subr.bf16.mxu1 %v5126_v44 }
  0xf1   : > { %2979 = vmatpush1.bf16.msra.mxu0 %v5986_v48 }
  0xf2   : > { %2327 = vmatpush1.bf16.msra.mxu1 %v5124_v47  ;;  %2980 = vmatprep.subr.bf16.mxu0 %v5992_v50  ;;  %v6097_v47 = vpack.c.bf16 %v2474_v35, %v2474_v35 }
  0xf3   : > { %2337 = vmatprep.subr.bf16.mxu1 %v5132_v49 }
  0xf5   : > { %2329 = vmatmul.mubr.bf16.vlgmr.msra.gmra.mrb[16].mxu1 %v5779_v40  ;;  %2981 = vmatpush1.bf16.msra.mxu0 %v5996_v52  ;;  %v5150_v40 = vld [vmem:[%s5667_s22 + $0x3a4] ss:$24 sps:$4 sm:$0xff]  }
  0xf6   : > { %2338 = vmatpush1.bf16.msra.mxu1 %v5130_v51  ;;  %2982 = vmatprep.subr.bf16.mxu0 %v6002_v54 }
  0xf7   : > { %2339 = vmatprep.subr.bf16.mxu1 %v5138_v53  ;;  %2369 = vmatprep.mubr.bf16.mxu1 %v5805_v58  ;;  %v5156_v58 = vld [vmem:[%s5667_s22 + $0x3d4] ss:$24 sps:$4 sm:$0xff]   ;;  %v5178_v53 = vld [vmem:[%s5667_s22 + $0x490] ss:$24 sps:$4 sm:$0xff]  }
  0xf9   : > { %2983 = vmatpush1.bf16.msra.mxu0 %v6007_v56 }
  0xfa   : > { %2340 = vmatpush1.bf16.msra.mxu1 %v5136_v55  ;;  %2984 = vmatprep.subr.bf16.mxu0 %v6013_v60  ;;  %v6106_v55 = vld [vmem:[%s5832_s11 + $0x8] ss:$24 sps:$4 sm:$0xff]  }
  0xfb   : > { %2341 = vmatprep.subr.bf16.mxu1 %v5144_v57 }
  0xfd   : > { %2985 = vmatpush1.bf16.msra.mxu0 %v6017_v59 }
  0xfe   : > { %2342 = vmatpush1.bf16.msra.mxu1 %v5142_v61  ;;  %2986 = vmatprep.subr.bf16.mxu0 %v6022_v62 }
  0xff   : > { %2343 = vmatprep.subr.bf16.mxu1 %v5150_v40  ;;  %v5186_v40 = vld [vmem:[%s5667_s22 + $0x4c4] ss:$24 sps:$4 sm:$0xff]  }
 0x101   : > { %2987 = vmatpush1.bf16.msra.mxu0 %v6029_v1 }
 0x102   : > { %2344 = vmatpush1.bf16.msra.mxu1 %v5148_v63  ;;  %2988 = vmatprep.subr.bf16.mxu0 %v6034_v2  ;;  %v6115_v63 = vld [vmem:[%s5832_s11 + $0x3c] ss:$24 sps:$4 sm:$0xff]  }
 0x103   : > { %2345 = vmatprep.subr.bf16.mxu1 %v5156_v58 }
 0x105   : > { %2989 = vmatpush1.bf16.msra.mxu0 %v6039_v4 }
 0x106   : > { %2346 = vmatpush1.bf16.msra.mxu1 %v5154_v3  ;;  %2990 = vmatprep.subr.bf16.mxu0 %v6044_v6 }
 0x107   : > { %2347 = vmatprep.subr.bf16.mxu1 %v5162_v5  ;;  %v6058_v12 = vpop.f32.mrb[0].mxu0  ;;  %v5184_v5 = vld [vmem:[%s5667_s22 + $0x4c0] ss:$24 sps:$4 sm:$0xff]  }
 0x108   : > { %v6056_v11 = vpop.f32.mrb[0].mxu1  ;;  %v6062_v14 = vpop.f32.mrb[1].mxu0 }
 0x109   : > { %7624 = vst [vmem:[#allocation3_spill] sm:$0xff] %v6056_v11  ;;  %v6060_v13 = vpop.f32.mrb[1].mxu1  ;;  %2991 = vmatpush1.bf16.msra.mxu0 %v6049_v8  ;;  %v6071_v22 = vpop.f32.mrb[2].mxu0  ;;  %v5216_v11 = vld [vmem:[%s5667_s22 + $0x5b4] ss:$24 sps:$4 sm:$0xff]  }
 0x10a   : > { %7625 = vst [vmem:[#allocation4_spill] sm:$0xff] %v6060_v13  ;;  %v6064_v16 = vpop.f32.mrb[2].mxu1  ;;  %2348 = vmatpush1.bf16.msra.mxu1 %v5160_v7  ;;  %2992 = vmatprep.subr.bf16.mxu0 %v6054_v10  ;;  %v6080_v0 = vpop.f32.mrb[3].mxu0  ;;  %v6125_v7 = vld [vmem:[%s5832_s11 + $0x38] ss:$24 sps:$4 sm:$0xff]  }
 0x10b   : > { %7626 = vst [vmem:[#allocation5_spill] sm:$0xff] %v6064_v16  ;;  %v6073_v24 = vpop.f32.mrb[3].mxu1  ;;  %2349 = vmatprep.subr.bf16.mxu1 %v5168_v9  ;;  %v5192_v9 = vld [vmem:[%s5667_s22 + $0x4f4] ss:$24 sps:$4 sm:$0xff]   ;;  %v6162_v13 = vld [vmem:[%s5832_s11 + $0x98] ss:$24 sps:$4 sm:$0xff]  }
 0x10c   : > { %7628 = vst [vmem:[#allocation7_spill] sm:$0xff] %v6073_v24  ;;  %v5208_v16 = vld [vmem:[%s5667_s22 + $0x580] ss:$24 sps:$4 sm:$0xff]  }
 0x10d   : > { %2993 = vmatpush1.bf16.msra.mxu0 %v6069_v19  ;;  %v5222_v19 = vld [vmem:[%s5667_s22 + $0x5e4] ss:$24 sps:$4 sm:$0xff]  }
 0x10e   : > { %2350 = vmatpush1.bf16.msra.mxu1 %v5166_v18  ;;  %2994 = vmatprep.subr.bf16.mxu0 %v6078_v28  ;;  %v6130_v18 = vld [vmem:[%s5832_s11 + $0x6c] ss:$24 sps:$4 sm:$0xff]  }
 0x10f   : > { %2351 = vmatprep.subr.bf16.mxu1 %v5174_v26  ;;  %v6095_v44 = vpop.f32.mrb[4].mxu0 }
 0x110   : > { %v6093_v42 = vpop.f32.mrb[4].mxu1  ;;  %v6101_v51 = vpop.f32.mrb[5].mxu0 }
 0x111   : > { %7631 = vst [vmem:[#allocation10_spill] sm:$0xff] %v6093_v42  ;;  %v6099_v49 = vpop.f32.mrb[5].mxu1  ;;  %2995 = vmatpush1.bf16.msra.mxu0 %v6085_v33  ;;  %v6110_v61 = vpop.f32.mrb[6].mxu0  ;;  %v5210_v42 = vld [vmem:[%s5667_s22 + $0x584] ss:$24 sps:$4 sm:$0xff]  }
 0x112   : > { %7632 = vst [vmem:[#allocation11_spill] sm:$0xff] %v6099_v49  ;;  %2352 = vmatpush1.bf16.msra.mxu1 %v5172_v31  ;;  %v6108_v57 = vpop.f32.mrb[6].mxu1  ;;  %3005 = vmatprep.subr.bf16.mxu0 %v6091_v39  ;;  %v6119_v3 = vpop.f32.mrb[7].mxu0  ;;  %v6153_v49 = vld [vmem:[%s5832_s11 + $0x9c] ss:$24 sps:$4 sm:$0xff]  }
 0x113   : > { %7633 = vst [vmem:[#allocation12_spill] sm:$0xff] %v6108_v57  ;;  %2353 = vmatprep.subr.bf16.mxu1 %v5180_v37  ;;  %v6117_v58 = vpop.f32.mrb[7].mxu1  ;;  %v6167_v57 = vld [vmem:[%s5832_s11 + $0xcc] ss:$24 sps:$4 sm:$0xff]  }
 0x114   : > { %7634 = vst [vmem:[#allocation13_spill] sm:$0xff] %v6117_v58  ;;  %2997 = vmatmul.mubr.bf16.vlgmr.msra.gmra.mrb[28].mxu0 %v6097_v47 }
 0x115   : > { %3006 = vmatpush1.bf16.msra.mxu0 %v6106_v55  ;;  %3037 = vmatprep.mubr.bf16.mxu0 %v5920_v21 }
 0x116   : > { %2354 = vmatpush1.bf16.msra.mxu1 %v5178_v53  ;;  %3007 = vmatprep.subr.bf16.mxu0 %v6115_v63  ;;  %v5190_v53 = vld [vmem:[%s5667_s22 + $0x4f0] ss:$24 sps:$4 sm:$0xff]  }
 0x117   : > { %2355 = vmatprep.subr.bf16.mxu1 %v5186_v40  ;;  %v6134_v31 = vpop.f32.mrb[8].mxu0  ;;  %v6144_v40 = vld [vmem:[%s5832_s11 + $0x68] ss:$24 sps:$4 sm:$0xff]  }
 0x118   : > { %v6132_v26 = vpop.f32.mrb[8].mxu1  ;;  %v6139_v37 = vpop.f32.mrb[9].mxu0 }
 0x119   : > { %7635 = vst [vmem:[#allocation14_spill] sm:$0xff] %v6132_v26  ;;  %v6137_v35 = vpop.f32.mrb[9].mxu1  ;;  %7637 = vst [vmem:[#allocation16_spill] sm:$0xff] %v6139_v37  ;;  %3008 = vmatpush1.bf16.msra.mxu0 %v6125_v7  ;;  %v6148_v26 = vpop.f32.mrb[10].mxu0 }
 0x11a   : > { %7636 = vst [vmem:[#allocation15_spill] sm:$0xff] %v6137_v35  ;;  %2356 = vmatpush1.bf16.msra.mxu1 %v5184_v5  ;;  %v6146_v58 = vpop.f32.mrb[10].mxu1  ;;  %7639 = vst [vmem:[#allocation18_spill] sm:$0xff] %v6148_v26  ;;  %3009 = vmatprep.subr.bf16.mxu0 %v6130_v18  ;;  %v5198_v35 = vld [vmem:[%s5667_s22 + $0x524] ss:$24 sps:$4 sm:$0xff]   ;;  %v6157_v24 = vpop.f32.mrb[11].mxu0 }
 0x11b   : > { %7638 = vst [vmem:[#allocation17_spill] sm:$0xff] %v6146_v58  ;;  %2357 = vmatprep.subr.bf16.mxu1 %v5192_v9  ;;  %v6155_v5 = vpop.f32.mrb[11].mxu1  ;;  %7641 = vst [vmem:[#allocation20_spill] sm:$0xff] %v6157_v24  ;;  %v5196_v58 = vld [vmem:[%s5667_s22 + $0x520] ss:$24 sps:$4 sm:$0xff]  }
 0x11c   : > { %7640 = vst [vmem:[#allocation19_spill] sm:$0xff] %v6155_v5  ;;  %v5204_v9 = vld [vmem:[%s5667_s22 + $0x554] ss:$24 sps:$4 sm:$0xff]   ;;  %v5202_v5 = vld [vmem:[%s5667_s22 + $0x550] ss:$24 sps:$4 sm:$0xff]  }
 0x11d   : > { %3010 = vmatpush1.bf16.msra.mxu0 %v6144_v40  ;;  %v6196_v24 = vld [vmem:[%s5832_s11 + $0x128] ss:$24 sps:$4 sm:$0xff]   ;;  %v6203_v26 = vld [vmem:[%s5832_s11 + $0x15c] ss:$24 sps:$4 sm:$0xff]  }
 0x11e   : > { %2358 = vmatpush1.bf16.msra.mxu1 %v5190_v53  ;;  %3011 = vmatprep.subr.bf16.mxu0 %v6153_v49  ;;  %v6172_v53 = vld [vmem:[%s5832_s11 + $0xc8] ss:$24 sps:$4 sm:$0xff]   ;;  %7646 = vst [vmem:[#allocation25_spill] sm:$0xff] %v6196_v24  ;;  %7648 = vst [vmem:[#allocation27_spill] sm:$0xff] %v6203_v26 }
 0x11f   : > { %2359 = vmatprep.subr.bf16.mxu1 %v5198_v35  ;;  %7642 = vst [vmem:[#allocation21_spill] sm:$0xff] %v6172_v53  ;;  %v6177_v35 = vld [vmem:[%s5832_s11 + $0xfc] ss:$24 sps:$4 sm:$0xff]  }
 0x120   : > { %7643 = vst [vmem:[#allocation22_spill] sm:$0xff] %v6177_v35 }
 0x121   : > { %3012 = vmatpush1.bf16.msra.mxu0 %v6162_v13 }
 0x122   : > { %2360 = vmatpush1.bf16.msra.mxu1 %v5196_v58  ;;  %3013 = vmatprep.subr.bf16.mxu0 %v6167_v57  ;;  %v6182_v58 = vld [vmem:[%s5832_s11 + $0xf8] ss:$24 sps:$4 sm:$0xff]  }
 0x123   : > { %2361 = vmatprep.subr.bf16.mxu1 %v5204_v9  ;;  %v6187_v9 = vld [vmem:[%s5832_s11 + $0x12c] ss:$24 sps:$4 sm:$0xff]  }
 0x125   : > { %3014 = vmatpush1.bf16.msra.mxu0 %v6172_v53 }
 0x126   : > { %2362 = vmatpush1.bf16.msra.mxu1 %v5202_v5  ;;  %3015 = vmatprep.subr.bf16.mxu0 %v6177_v35  ;;  %v5214_v5 = vld [vmem:[%s5667_s22 + $0x5b0] ss:$24 sps:$4 sm:$0xff]  }
 0x127   : > { %2363 = vmatprep.subr.bf16.mxu1 %v5210_v42  ;;  %v6189_v33 = vpop.f32.mrb[12].mxu0 }
 0x128   : > { %7644 = vst [vmem:[#allocation23_spill] sm:$0xff] %v6189_v33  ;;  %v6191_v28 = vpop.f32.mrb[13].mxu0 }
 0x129   : > { %7645 = vst [vmem:[#allocation24_spill] sm:$0xff] %v6191_v28  ;;  %3016 = vmatpush1.bf16.msra.mxu0 %v6182_v58  ;;  %v6198_v42 = vpop.f32.mrb[14].mxu0  ;;  %v6210_v28 = vld [vmem:[%s5832_s11 + $0x158] ss:$24 sps:$4 sm:$0xff]  }
 0x12a   : > { %2364 = vmatpush1.bf16.msra.mxu1 %v5208_v16  ;;  %7647 = vst [vmem:[#allocation26_spill] sm:$0xff] %v6198_v42  ;;  %3017 = vmatprep.subr.bf16.mxu0 %v6187_v9  ;;  %v6205_v33 = vpop.f32.mrb[15].mxu0  ;;  %v5220_v16 = vld [vmem:[%s5667_s22 + $0x5e0] ss:$24 sps:$4 sm:$0xff]   ;;  %7650 = vst [vmem:[#allocation29_spill] sm:$0xff] %v6210_v28 }
 0x12b   : > { %2365 = vmatprep.subr.bf16.mxu1 %v5216_v11  ;;  %7649 = vst [vmem:[#allocation28_spill] sm:$0xff] %v6205_v33  ;;  %v6214_v11 = vld [vmem:[%s5832_s11 + $0x18c] ss:$24 sps:$4 sm:$0xff]  }
 0x12c   : > { %7651 = vst [vmem:[#allocation30_spill] sm:$0xff] %v6214_v11  ;;  %v6217_v42 = vld [vmem:[%s5832_s11 + $0x14] ss:$24 sps:$4 sm:$0xff]  }
 0x12d   : > { %3018 = vmatpush1.bf16.msra.mxu0 %v6196_v24  ;;  %7652 = vst [vmem:[#allocation31_spill] sm:$0xff] %v6217_v42  ;;  %v6235_v24 = vld [vmem:[%s5832_s11 + $0x1bc] ss:$24 sps:$4 sm:$0xff]  }
 0x12e   : > { %2366 = vmatpush1.bf16.msra.mxu1 %v5214_v5  ;;  %3019 = vmatprep.subr.bf16.mxu0 %v6203_v26  ;;  %v6225_v5 = vld [vmem:[%s5832_s11 + $0x188] ss:$24 sps:$4 sm:$0xff]   ;;  %7658 = vst [vmem:[#allocation37_spill] sm:$0xff] %v6235_v24 }
 0x12f   : > { %2367 = vmatprep.subr.bf16.mxu1 %v5222_v19  ;;  %v6219_v37 = vpop.f32.mrb[16].mxu0  ;;  %7655 = vst [vmem:[#allocation34_spill] sm:$0xff] %v6225_v5  ;;  %v6228_v19 = vld [vmem:[%s5832_s11 + $0x10] ss:$24 sps:$4 sm:$0xff]  }
 0x130   : > { %7653 = vst [vmem:[#allocation32_spill] sm:$0xff] %v6219_v37  ;;  %v6221_v33 = vpop.f32.mrb[17].mxu0  ;;  %7656 = vst [vmem:[#allocation35_spill] sm:$0xff] %v6228_v19  ;;  %v6238_v37 = vld [vmem:[%s5832_s11 + $0x44] ss:$24 sps:$4 sm:$0xff]  }
 0x131   : > { %7654 = vst [vmem:[#allocation33_spill] sm:$0xff] %v6221_v33  ;;  %3020 = vmatpush1.bf16.msra.mxu0 %v6210_v28  ;;  %v6230_v26 = vpop.f32.mrb[18].mxu0  ;;  %7659 = vst [vmem:[#allocation38_spill] sm:$0xff] %v6238_v37  ;;  %v6246_v33 = vld [vmem:[%s5832_s11 + $0x1b8] ss:$24 sps:$4 sm:$0xff]  }
 0x132   : > { %2368 = vmatpush1.bf16.msra.mxu1 %v5220_v16  ;;  %7657 = vst [vmem:[#allocation36_spill] sm:$0xff] %v6230_v26  ;;  %3021 = vmatprep.subr.bf16.mxu0 %v6214_v11  ;;  %v6240_v16 = vpop.f32.mrb[19].mxu0  ;;  %7661 = vst [vmem:[#allocation40_spill] sm:$0xff] %v6246_v33  ;;  %v6249_v26 = vld [vmem:[%s5832_s11 + $0x40] ss:$24 sps:$4 sm:$0xff]  }
 0x133   : > { %3046 = vmatprep.subr.bf16.mxu1 %v6217_v42  ;;  %7660 = vst [vmem:[#allocation39_spill] sm:$0xff] %v6240_v16  ;;  %7662 = vst [vmem:[#allocation41_spill] sm:$0xff] %v6249_v26  ;;  %v6254_v42 = vld [vmem:[%s5832_s11 + $0x1ec] ss:$24 sps:$4 sm:$0xff]  }
 0x134   : > { %7663 = vst [vmem:[#allocation42_spill] sm:$0xff] %v6254_v42  ;;  %v6257_v16 = vld [vmem:[%s5832_s11 + $0x74] ss:$24 sps:$4 sm:$0xff]  }
 0x135   : > { %2370 = vmatmul.mubr.bf16.vlgmr.msra.gmra.mrb[16].mxu1 %v5866_v45  ;;  %3022 = vmatpush1.bf16.msra.mxu0 %v6225_v5  ;;  %7664 = vst [vmem:[#allocation43_spill] sm:$0xff] %v6257_v16 }
 0x136   : > { %3047 = vmatpush1.bf16.msra.mxu1 %v6228_v19  ;;  %3023 = vmatprep.subr.bf16.mxu0 %v6235_v24  ;;  %v6267_v24 = vld [vmem:[%s5832_s11 + $0x1e8] ss:$24 sps:$4 sm:$0xff]  }
 0x137   : > { %3048 = vmatprep.subr.bf16.mxu1 %v6238_v37  ;;  %3078 = vmatprep.mubr.bf16.mxu1 %v5920_v21  ;;  %v6260_v45 = vpop.f32.mrb[20].mxu0  ;;  %7667 = vst [vmem:[#allocation46_spill] sm:$0xff] %v6267_v24  ;;  %v6270_v37 = vld [vmem:[%s5832_s11 + $0x70] ss:$24 sps:$4 sm:$0xff]   ;;  %v6277_v21 = vld [vmem:[%s5832_s11 + $0x21c] ss:$24 sps:$4 sm:$0xff]  }
 0x138   : > { %7665 = vst [vmem:[#allocation44_spill] sm:$0xff] %v6260_v45  ;;  %v6262_v19 = vpop.f32.mrb[21].mxu0  ;;  %7668 = vst [vmem:[#allocation47_spill] sm:$0xff] %v6270_v37 }
 0x139   : > { %7666 = vst [vmem:[#allocation45_spill] sm:$0xff] %v6262_v19  ;;  %3024 = vmatpush1.bf16.msra.mxu0 %v6246_v33  ;;  %v6272_v5 = vpop.f32.mrb[22].mxu0  ;;  %7670 = vst [vmem:[#allocation49_spill] sm:$0xff] %v6277_v21  ;;  %v6280_v19 = vld [vmem:[%s5832_s11 + $0xa4] ss:$24 sps:$4 sm:$0xff]  }
 0x13a   : > { %3049 = vmatpush1.bf16.msra.mxu1 %v6249_v26  ;;  %7669 = vst [vmem:[#allocation48_spill] sm:$0xff] %v6272_v5  ;;  %3025 = vmatprep.subr.bf16.mxu0 %v6254_v42  ;;  %7671 = vst [vmem:[#allocation50_spill] sm:$0xff] %v6280_v19  ;;  %v6282_v45 = vpop.f32.mrb[23].mxu0  ;;  %v6287_v26 = vld [vmem:[%s5832_s11 + $0x218] ss:$24 sps:$4 sm:$0xff]  }
 0x13b   : > { %3050 = vmatprep.subr.bf16.mxu1 %v6257_v16  ;;  %7672 = vst [vmem:[#allocation51_spill] sm:$0xff] %v6282_v45  ;;  %7673 = vst [vmem:[#allocation52_spill] sm:$0xff] %v6287_v26  ;;  %v6290_v5 = vld [vmem:[%s5832_s11 + $0xa0] ss:$24 sps:$4 sm:$0xff]   ;;  %v6295_v16 = vld [vmem:[%s5832_s11 + $0x24c] ss:$24 sps:$4 sm:$0xff]  }
 0x13c   : > { %7674 = vst [vmem:[#allocation53_spill] sm:$0xff] %v6290_v5  ;;  %7675 = vst [vmem:[#allocation54_spill] sm:$0xff] %v6295_v16  ;;  %v6298_v42 = vld [vmem:[%s5832_s11 + $0xd4] ss:$24 sps:$4 sm:$0xff]   ;;  %v6306_v45 = vld [vmem:[%s5832_s11 + $0xd0] ss:$24 sps:$4 sm:$0xff]  }
 0x13d   : > { %3026 = vmatpush1.bf16.msra.mxu0 %v6267_v24  ;;  %7676 = vst [vmem:[#allocation55_spill] sm:$0xff] %v6298_v42  ;;  %7678 = vst [vmem:[#allocation57_spill] sm:$0xff] %v6306_v45 }
 0x13e   : > { %3051 = vmatpush1.bf16.msra.mxu1 %v6270_v37  ;;  %3027 = vmatprep.subr.bf16.mxu0 %v6277_v21  ;;  %v6303_v37 = vld [vmem:[%s5832_s11 + $0x248] ss:$24 sps:$4 sm:$0xff]   ;;  %v6314_v21 = vld [vmem:[%s5832_s11 + $0x104] ss:$24 sps:$4 sm:$0xff]  }
 0x13f   : > { %3052 = vmatprep.subr.bf16.mxu1 %v6280_v19  ;;  %7677 = vst [vmem:[#allocation56_spill] sm:$0xff] %v6303_v37  ;;  %v6311_v19 = vld [vmem:[%s5832_s11 + $0x27c] ss:$24 sps:$4 sm:$0xff]   ;;  %7680 = vst [vmem:[#allocation59_spill] sm:$0xff] %v6314_v21 }
 0x140   : > { %7679 = vst [vmem:[#allocation58_spill] sm:$0xff] %v6311_v19 }
 0x141   : > { %3028 = vmatpush1.bf16.msra.mxu0 %v6287_v26  ;;  %v6322_v26 = vld [vmem:[%s5832_s11 + $0x100] ss:$24 sps:$4 sm:$0xff]  }
 0x142   : > { %3053 = vmatpush1.bf16.msra.mxu1 %v6290_v5  ;;  %3029 = vmatprep.subr.bf16.mxu0 %v6295_v16  ;;  %v6319_v5 = vld [vmem:[%s5832_s11 + $0x278] ss:$24 sps:$4 sm:$0xff]   ;;  %7682 = vst [vmem:[#allocation61_spill] sm:$0xff] %v6322_v26  ;;  %v6330_v16 = vld [vmem:[%s5832_s11 + $0x134] ss:$24 sps:$4 sm:$0xff]  }
 0x143   : > { %3054 = vmatprep.subr.bf16.mxu1 %v6298_v42  ;;  %7681 = vst [vmem:[#allocation60_spill] sm:$0xff] %v6319_v5  ;;  %v6327_v42 = vld [vmem:[%s5832_s11 + $0x2ac] ss:$24 sps:$4 sm:$0xff]   ;;  %7684 = vst [vmem:[#allocation63_spill] sm:$0xff] %v6330_v16 }
 0x144   : > { %7683 = vst [vmem:[#allocation62_spill] sm:$0xff] %v6327_v42 }
 0x145   : > { %3030 = vmatpush1.bf16.msra.mxu0 %v6303_v37  ;;  %v6338_v37 = vld [vmem:[%s5832_s11 + $0x130] ss:$24 sps:$4 sm:$0xff]  }
 0x146   : > { %3055 = vmatpush1.bf16.msra.mxu1 %v6306_v45  ;;  %3031 = vmatprep.subr.bf16.mxu0 %v6311_v19  ;;  %v6335_v45 = vld [vmem:[%s5832_s11 + $0x2a8] ss:$24 sps:$4 sm:$0xff]   ;;  %7686 = vst [vmem:[#allocation65_spill] sm:$0xff] %v6338_v37  ;;  %v6346_v19 = vld [vmem:[%s5832_s11 + $0x164] ss:$24 sps:$4 sm:$0xff]  }
 0x147   : > { %3056 = vmatprep.subr.bf16.mxu1 %v6314_v21  ;;  %7685 = vst [vmem:[#allocation64_spill] sm:$0xff] %v6335_v45  ;;  %v6343_v21 = vld [vmem:[%s5832_s11 + $0x2dc] ss:$24 sps:$4 sm:$0xff]   ;;  %7688 = vst [vmem:[#allocation67_spill] sm:$0xff] %v6346_v19 }
 0x148   : > { %7687 = vst [vmem:[#allocation66_spill] sm:$0xff] %v6343_v21 }
 0x149   : > { %3032 = vmatpush1.bf16.msra.mxu0 %v6319_v5  ;;  %v6354_v5 = vld [vmem:[%s5832_s11 + $0x160] ss:$24 sps:$4 sm:$0xff]  }
 0x14a   : > { %3057 = vmatpush1.bf16.msra.mxu1 %v6322_v26  ;;  %3033 = vmatprep.subr.bf16.mxu0 %v6327_v42  ;;  %v6351_v26 = vld [vmem:[%s5832_s11 + $0x2d8] ss:$24 sps:$4 sm:$0xff]   ;;  %7690 = vst [vmem:[#allocation69_spill] sm:$0xff] %v6354_v5 }
 0x14b   : > { %3058 = vmatprep.subr.bf16.mxu1 %v6330_v16  ;;  %7689 = vst [vmem:[#allocation68_spill] sm:$0xff] %v6351_v26  ;;  %v6359_v16 = vld [vmem:[%s5832_s11 + $0x194] ss:$24 sps:$4 sm:$0xff]  }
 0x14d   : > { %3034 = vmatpush1.bf16.msra.mxu0 %v6335_v45  ;;  %v6364_v45 = vld [vmem:[%s5832_s11 + $0x190] ss:$24 sps:$4 sm:$0xff]  }
 0x14e   : > { %3059 = vmatpush1.bf16.msra.mxu1 %v6338_v37  ;;  %3035 = vmatprep.subr.bf16.mxu0 %v6343_v21  ;;  %7691 = vst [vmem:[#allocation70_spill] sm:$0xff] %v6364_v45  ;;  %v6368_v37 = vld [vmem:[%s5832_s11 + $0x1c4] ss:$24 sps:$4 sm:$0xff]  }
 0x14f   : > { %3060 = vmatprep.subr.bf16.mxu1 %v6346_v19  ;;  %v6374_v19 = vld [vmem:[%s5832_s11 + $0x1c0] ss:$24 sps:$4 sm:$0xff]  }
 0x151   : > { %3036 = vmatpush1.bf16.msra.mxu0 %v6351_v26 }
 0x152   : > { %3061 = vmatpush1.bf16.msra.mxu1 %v6354_v5  ;;  %3135 = vmatprep.subr.bf16.mxu0 %v5908_v15  ;;  %v6379_v5 = vld [vmem:[%s5832_s11 + $0x1f4] ss:$24 sps:$4 sm:$0xff]   ;;  %v6384_v15 = vld [vmem:[%s5832_s11 + $0x1f0] ss:$24 sps:$4 sm:$0xff]  }
 0x153   : > { %3062 = vmatprep.subr.bf16.mxu1 %v6359_v16 }
 0x154   : > { %3038 = vmatmul.mubr.bf16.vlgmr.msra.gmra.mrb[32].mxu0 %v6097_v47 }
 0x155   : > { %3136 = vmatpush1.bf16.msra.mxu0 %v5912_v17  ;;  %v6394_v17 = vld [vmem:[%s5832_s11 + $0x220] ss:$24 sps:$4 sm:$0xff]  }
 0x156   : > { %3063 = vmatpush1.bf16.msra.mxu1 %v6364_v45  ;;  %3137 = vmatprep.subr.bf16.mxu0 %v5918_v20  ;;  %v6389_v45 = vld [vmem:[%s5832_s11 + $0x224] ss:$24 sps:$4 sm:$0xff]   ;;  %v6399_v20 = vld [vmem:[%s5832_s11 + $0x254] ss:$24 sps:$4 sm:$0xff]  }
 0x157   : > { %3064 = vmatprep.subr.bf16.mxu1 %v6368_v37 }
 0x159   : > { %3138 = vmatpush1.bf16.msra.mxu0 %v5925_v23  ;;  %v6404_v23 = vld [vmem:[%s5832_s11 + $0x250] ss:$24 sps:$4 sm:$0xff]  }
 0x15a   : > { %3065 = vmatpush1.bf16.msra.mxu1 %v6374_v19  ;;  %3139 = vmatprep.subr.bf16.mxu0 %v5931_v25  ;;  %v6409_v25 = vld [vmem:[%s5832_s11 + $0x284] ss:$24 sps:$4 sm:$0xff]  }
 0x15b   : > { %3066 = vmatprep.subr.bf16.mxu1 %v6379_v5 }
 0x15d   : > { %3140 = vmatpush1.bf16.msra.mxu0 %v5937_v27  ;;  %v6414_v27 = vld [vmem:[%s5832_s11 + $0x280] ss:$24 sps:$4 sm:$0xff]  }
 0x15e   : > { %3067 = vmatpush1.bf16.msra.mxu1 %v6384_v15  ;;  %3141 = vmatprep.subr.bf16.mxu0 %v5942_v29  ;;  %v6419_v29 = vld [vmem:[%s5832_s11 + $0x2b4] ss:$24 sps:$4 sm:$0xff]  }
 0x15f   : > { %3068 = vmatprep.subr.bf16.mxu1 %v6389_v45 }
 0x161   : > { %3142 = vmatpush1.bf16.msra.mxu0 %v5946_v30  ;;  %v6424_v30 = vld [vmem:[%s5832_s11 + $0x2b0] ss:$24 sps:$4 sm:$0xff]  }
 0x162   : > { %3069 = vmatpush1.bf16.msra.mxu1 %v6394_v17  ;;  %3143 = vmatprep.subr.bf16.mxu0 %v5952_v32  ;;  %v6429_v32 = vld [vmem:[%s5832_s11 + $0x2e4] ss:$24 sps:$4 sm:$0xff]  }
 0x163   : > { %3070 = vmatprep.subr.bf16.mxu1 %v6399_v20 }
 0x165   : > { %3144 = vmatpush1.bf16.msra.mxu0 %v5957_v34  ;;  %v6434_v34 = vld [vmem:[%s5832_s11 + $0x2e0] ss:$24 sps:$4 sm:$0xff]  }
 0x166   : > { %3071 = vmatpush1.bf16.msra.mxu1 %v6404_v23  ;;  %3145 = vmatprep.subr.bf16.mxu0 %v5962_v36  ;;  %v1128_v36 = vlaneseq }
 0x167   : > { %3072 = vmatprep.subr.bf16.mxu1 %v6409_v25 }
 0x169   : > { %3146 = vmatpush1.bf16.msra.mxu0 %v5966_v38  ;;  %v6453_v38 = vshrl.u32 %v1128_v36, 7 }
 0x16a   : > { %3073 = vmatpush1.bf16.msra.mxu1 %v6414_v27  ;;  %3147 = vmatprep.subr.bf16.mxu0 %v5972_v41 }
 0x16b   : > { %3074 = vmatprep.subr.bf16.mxu1 %v6419_v29  ;;  %v1130_v41 = vsub.s32 0, %v6453_v38 }
 0x16d   : > { %3148 = vmatpush1.bf16.msra.mxu0 %v5977_v43  ;;  %v6463_v43 = vld [vmem:[%s419_s19] sm:$0x3f]  ;;  %s7425_s19 = scalar_lea.vmem %s7453_s9, %s4777_s14 }
 0x16e   : > { %3075 = vmatpush1.bf16.msra.mxu1 %v6424_v30  ;;  %3149 = vmatprep.subr.bf16.mxu0 %v5982_v46  ;;  %v1134_v46 = vsub.s32 1, %v6453_v38 }
 0x16f   : > { %3076 = vmatprep.subr.bf16.mxu1 %v6429_v32 }
 0x171   : > { %3150 = vmatpush1.bf16.msra.mxu0 %v5986_v48  ;;  %v1131_v48 = vrot.slane %v6463_v43, %v1130_v41 }
 0x172   : > { %3077 = vmatpush1.bf16.msra.mxu1 %v6434_v34  ;;  %3151 = vmatprep.subr.bf16.mxu0 %v5992_v50  ;;  %v1135_v50 = vrot.slane %v6463_v43, %v1134_v46 }
 0x173   : > { %3176 = vmatprep.subr.bf16.mxu1 %v6091_v39 }
 0x175   : > { %3079 = vmatmul.mubr.bf16.vlgmr.msra.gmra.mrb[20].mxu1 %v6097_v47  ;;  %3152 = vmatpush1.bf16.msra.mxu0 %v5996_v52 }
 0x176   : > { %3177 = vmatpush1.bf16.msra.mxu1 %v6106_v55  ;;  %3153 = vmatprep.subr.bf16.mxu0 %v6002_v54 }
 0x177   : > { %3178 = vmatprep.subr.bf16.mxu1 %v6115_v63 }
 0x179   : > { %3154 = vmatpush1.bf16.msra.mxu0 %v6007_v56 }
 0x17a   : > { %3179 = vmatpush1.bf16.msra.mxu1 %v6125_v7  ;;  %3155 = vmatprep.subr.bf16.mxu0 %v6013_v60 }
 0x17b   : > { %3180 = vmatprep.subr.bf16.mxu1 %v6130_v18 }
 0x17d   : > { %3156 = vmatpush1.bf16.msra.mxu0 %v6017_v59 }
 0x17e   : > { %3181 = vmatpush1.bf16.msra.mxu1 %v6144_v40  ;;  %3157 = vmatprep.subr.bf16.mxu0 %v6022_v62 }
 0x17f   : > { %3182 = vmatprep.subr.bf16.mxu1 %v6153_v49 }
 0x181   : > { %3158 = vmatpush1.bf16.msra.mxu0 %v6029_v1 }
 0x182   : > { %3183 = vmatpush1.bf16.msra.mxu1 %v6162_v13  ;;  %3159 = vmatprep.subr.bf16.mxu0 %v6034_v2 }
 0x183   : > { %3184 = vmatprep.subr.bf16.mxu1 %v6167_v57 }
 0x185   : > { %3160 = vmatpush1.bf16.msra.mxu0 %v6039_v4 }
 0x186   : > { %3185 = vmatpush1.bf16.msra.mxu1 %v6172_v53  ;;  %3161 = vmatprep.subr.bf16.mxu0 %v6044_v6 }
 0x187   : > { %3186 = vmatprep.subr.bf16.mxu1 %v6177_v35 }
 0x188   : > { %v2207_v52 = vpop.f32.mrb[12].mxu1 }
 0x189   : > { %v4754_v54 = vadd.f32 %v2207_v52, %v1131_v48  ;;  %v2209_v56 = vpop.f32.mrb[13].mxu1  ;;  %3162 = vmatpush1.bf16.msra.mxu0 %v6049_v8 }
 0x18a   : > { %v4755_v47 = vadd.f32 %v2209_v56, %v1135_v50  ;;  %v2211_v36 = vpop.f32.mrb[14].mxu1  ;;  %3187 = vmatpush1.bf16.msra.mxu1 %v6182_v58  ;;  %3163 = vmatprep.subr.bf16.mxu0 %v6054_v10 }
 0x18b   : > { %v2212_v41 = vpop.f32.mrb[15].mxu1  ;;  %v2476_v46 = vadd.f32 %v4754_v54, %v6058_v12  ;;  %3188 = vmatprep.subr.bf16.mxu1 %v6187_v9  ;;  %v6482_v35 = vadd.f32 %v4754_v54, %v6071_v22  ;;  %v6485_v53 = vadd.f32 %v4754_v54, %v6095_v44  ;;  %v6495_v12 = vadd.f32 %v4754_v54, %v6110_v61  ;;  %v7699_v36 = vld [vmem:[#allocation16_spill] sm:$0xff]  ;;  %v7707_v61 = vld [vmem:[#allocation27_spill] sm:$0xff] }
 0x18c   : > { %v2477_v48 = vadd.f32 %v4755_v47, %v6062_v14  ;;  %v6489_v50 = vadd.f32 %v4755_v47, %v6080_v0  ;;  %v6492_v52 = vadd.f32 %v4755_v47, %v6101_v51  ;;  %v6498_v56 = vadd.f32 %v4755_v47, %v6119_v3  ;;  %v7701_v41 = vld [vmem:[#allocation18_spill] sm:$0xff]  ;;  %v7703_v0 = vld [vmem:[#allocation25_spill] sm:$0xff]  ;;  %v7705_v51 = vld [vmem:[#allocation20_spill] sm:$0xff] }
 0x18d   : > { %7692 = vst [vmem:[#allocation71_spill] sm:$0xff] %v6482_v35  ;;  %7693 = vst [vmem:[#allocation72_spill] sm:$0xff] %v6485_v53  ;;  %v6501_v22 = vadd.f32 %v4754_v54, %v6134_v31  ;;  %v6504_v44 = vadd.f32 %v4755_v47, %v7699_v36  ;;  %v6507_v14 = vadd.f32 %v4754_v54, %v7701_v41  ;;  %v7704_v53 = vld [vmem:[#allocation6_spill] sm:$0xff]  ;;  %v7708_v3 = vld [vmem:[#allocation8_spill] sm:$0xff] }
 0x18e   : > { %7694 = vst [vmem:[#allocation73_spill] sm:$0xff] %v6489_v50  ;;  %7695 = vst [vmem:[#allocation74_spill] sm:$0xff] %v6492_v52  ;;  %3189 = vmatpush1.bf16.msra.mxu1 %v7703_v0  ;;  %3164 = vmatpush1.bf16.msra.mxu0 %v7704_v53  ;;  %v6512_v52 = vadd.f32 %v4755_v47, %v7705_v51  ;;  %v7709_v31 = vld [vmem:[#allocation9_spill] sm:$0xff]  ;;  %v7710_v36 = vld [vmem:[#allocation31_spill] sm:$0xff] }
 0x18f   : > { %7696 = vst [vmem:[#allocation75_spill] sm:$0xff] %v6495_v12  ;;  %7697 = vst [vmem:[#allocation76_spill] sm:$0xff] %v6498_v56  ;;  %3190 = vmatprep.subr.bf16.mxu1 %v7707_v61  ;;  %3165 = vmatprep.subr.bf16.mxu0 %v7708_v3  ;;  %v7711_v54 = vld [vmem:[#allocation34_spill] sm:$0xff]  ;;  %v7712_v41 = vld [vmem:[#allocation37_spill] sm:$0xff] }
 0x190   : > { %7698 = vst [vmem:[#allocation77_spill] sm:$0xff] %v6501_v22  ;;  %7700 = vst [vmem:[#allocation16_spill] sm:$0xff] %v6504_v44  ;;  %v7713_v47 = vld [vmem:[#allocation42_spill] sm:$0xff]  ;;  %v7714_v51 = vld [vmem:[#allocation49_spill] sm:$0xff] }
 0x191   : > { %7702 = vst [vmem:[#allocation18_spill] sm:$0xff] %v6507_v14  ;;  %7706 = vst [vmem:[#allocation25_spill] sm:$0xff] %v6512_v52  ;;  %v1138_v52 = vsub.s32 2, %v6453_v38  ;;  %v1142_v14 = vsub.s32 3, %v6453_v38  ;;  %v7715_v44 = vld [vmem:[#allocation52_spill] sm:$0xff]  ;;  %v7716_v22 = vld [vmem:[#allocation54_spill] sm:$0xff] }
 0x192   : > { %3191 = vmatpush1.bf16.msra.mxu1 %v6210_v28  ;;  %3166 = vmatpush1.bf16.msra.mxu0 %v7709_v31  ;;  %v7717_v50 = vld [vmem:[#allocation56_spill] sm:$0xff]  ;;  %v7718_v35 = vld [vmem:[#allocation58_spill] sm:$0xff]  ;;  %v7720_v28 = vld [vmem:[#allocation3_spill] sm:$0xff] }
 0x193   : > { %3192 = vmatprep.subr.bf16.mxu1 %v6214_v11  ;;  %3217 = vmatprep.subr.bf16.mxu0 %v7710_v36  ;;  %v1139_v56 = vrot.slane %v6463_v43, %v1138_v52  ;;  %v1143_v12 = vrot.slane %v6463_v43, %v1142_v14  ;;  %v7721_v52 = vld [vmem:[#allocation5_spill] sm:$0xff]  ;;  %v7723_v14 = vld [vmem:[#allocation10_spill] sm:$0xff] }
 0x196   : > { %3193 = vmatpush1.bf16.msra.mxu1 %v7711_v54  ;;  %v7719_v54 = vld [vmem:[#allocation60_spill] sm:$0xff] }
 0x197   : > { %3194 = vmatprep.subr.bf16.mxu1 %v7712_v41 }
 0x19a   : > { %3195 = vmatpush1.bf16.msra.mxu1 %v6246_v33 }
 0x19b   : > { %3196 = vmatprep.subr.bf16.mxu1 %v7713_v47 }
 0x19e   : > { %3197 = vmatpush1.bf16.msra.mxu1 %v6267_v24 }
 0x19f   : > { %3198 = vmatprep.subr.bf16.mxu1 %v7714_v51 }
 0x1a2   : > { %3199 = vmatpush1.bf16.msra.mxu1 %v7715_v44 }
 0x1a3   : > { %3200 = vmatprep.subr.bf16.mxu1 %v7716_v22 }
 0x1a6   : > { %3201 = vmatpush1.bf16.msra.mxu1 %v7717_v50 }
 0x1a7   : > { %3202 = vmatprep.subr.bf16.mxu1 %v7718_v35  ;;  %v2289_v47 = vpop.f32.mrb[24].mxu0  ;;  %v7725_v35 = vld [vmem:[#allocation12_spill] sm:$0xff] }
 0x1a8   : > { %v4756_v24 = vadd.f32 %v2289_v47, %v1139_v56  ;;  %v2291_v33 = vpop.f32.mrb[25].mxu0  ;;  %v7727_v56 = vld [vmem:[#allocation4_spill] sm:$0xff] }
 0x1a9   : > { %v4757_v51 = vadd.f32 %v2291_v33, %v1143_v12  ;;  %v2293_v41 = vpop.f32.mrb[26].mxu0  ;;  %v7728_v12 = vld [vmem:[#allocation7_spill] sm:$0xff] }
 0x1aa   : > { %3203 = vmatpush1.bf16.msra.mxu1 %v7719_v54  ;;  %v2294_v11 = vpop.f32.mrb[27].mxu0  ;;  %v2478_v44 = vadd.f32 %v4756_v24, %v7720_v28  ;;  %v6538_v22 = vadd.f32 %v4756_v24, %v7721_v52  ;;  %v6541_v50 = vadd.f32 %v4756_v24, %v7723_v14  ;;  %v6544_v61 = vadd.f32 %v4756_v24, %v7725_v35  ;;  %v7732_v28 = vld [vmem:[#allocation13_spill] sm:$0xff] }
 0x1ab   : > { %3204 = vmatprep.subr.bf16.mxu1 %v6327_v42  ;;  %v2479_v33 = vadd.f32 %v4757_v51, %v7727_v56  ;;  %v6548_v41 = vadd.f32 %v4757_v51, %v7728_v12  ;;  %v7730_v11 = vld [vmem:[#allocation11_spill] sm:$0xff]  ;;  %v6554_v54 = vadd.f32 %v4757_v51, %v7732_v28  ;;  %v7734_v42 = vld [vmem:[#allocation14_spill] sm:$0xff]  ;;  %v7742_v12 = vld [vmem:[#allocation64_spill] sm:$0xff] }
 0x1ac   : > { %7722 = vst [vmem:[#allocation6_spill] sm:$0xff] %v6538_v22  ;;  %7724 = vst [vmem:[#allocation20_spill] sm:$0xff] %v6541_v50  ;;  %v6551_v47 = vadd.f32 %v4757_v51, %v7730_v11  ;;  %v6557_v52 = vadd.f32 %v4756_v24, %v7734_v42  ;;  %v7736_v22 = vld [vmem:[#allocation15_spill] sm:$0xff]  ;;  %v7738_v50 = vld [vmem:[#allocation17_spill] sm:$0xff] }
 0x1ad   : > { %7726 = vst [vmem:[#allocation8_spill] sm:$0xff] %v6544_v61  ;;  %7729 = vst [vmem:[#allocation9_spill] sm:$0xff] %v6548_v41  ;;  %v6560_v14 = vadd.f32 %v4757_v51, %v7736_v22  ;;  %v6563_v35 = vadd.f32 %v4756_v24, %v7738_v50  ;;  %v7740_v61 = vld [vmem:[#allocation19_spill] sm:$0xff]  ;;  %v6572_v11 = vld [vmem:[%s5832_s11 + $0x4] ss:$24 sps:$4 sm:$0xff]   ;;  %v1146_v50 = vsub.s32 4, %v6453_v38 }
 0x1ae   : > { %7731 = vst [vmem:[#allocation31_spill] sm:$0xff] %v6551_v47  ;;  %7733 = vst [vmem:[#allocation3_spill] sm:$0xff] %v6554_v54  ;;  %v6566_v56 = vadd.f32 %v4757_v51, %v7740_v61  ;;  %3205 = vmatpush1.bf16.msra.mxu1 %v7742_v12  ;;  %v1150_v61 = vsub.s32 5, %v6453_v38 }
 0x1af   : > { %7735 = vst [vmem:[#allocation5_spill] sm:$0xff] %v6557_v52  ;;  %7737 = vst [vmem:[#allocation10_spill] sm:$0xff] %v6560_v14  ;;  %3206 = vmatprep.subr.bf16.mxu1 %v6343_v21  ;;  %v1147_v51 = vrot.slane %v6463_v43, %v1146_v50  ;;  %v7744_v21 = vld [vmem:[#allocation23_spill] sm:$0xff]  ;;  %v7750_v50 = vld [vmem:[#allocation24_spill] sm:$0xff] }
 0x1b0   : > { %7739 = vst [vmem:[#allocation12_spill] sm:$0xff] %v6563_v35  ;;  %7741 = vst [vmem:[#allocation4_spill] sm:$0xff] %v6566_v56  ;;  %v1151_v56 = vrot.slane %v6463_v43, %v1150_v61  ;;  %v7751_v43 = vld [vmem:[#allocation28_spill] sm:$0xff] }
 0x1b1   : > { %7743 = vst [vmem:[#allocation7_spill] sm:$0xff] %v6572_v11 }
 0x1b2   : > { %3207 = vmatpush1.bf16.msra.mxu1 %v6351_v26 }
 0x1b3   : > { %3312 = vmatprep.subr.bf16.mxu1 %v6572_v11 }
 0x1e7   : > { %v2998_v42 = vpop.f32.mrb[28].mxu0 }
 0x1e8   : > { %v3087_v28 = vadd.f32 %v2998_v42, %v2476_v46  ;;  %v3000_v22 = vpop.f32.mrb[29].mxu0  ;;  %v7745_v42 = vld [vmem:[#allocation26_spill] sm:$0xff] }
 0x1e9   : > { %v3088_v14 = vadd.f32 %v3000_v22, %v2477_v48  ;;  %v3002_v52 = vpop.f32.mrb[30].mxu0 }
 0x1ea   : > { %v3003_v24 = vpop.f32.mrb[31].mxu0  ;;  %v7746_v52 = vld [vmem:[#allocation32_spill] sm:$0xff] }
 0x1eb   : > { %v7748_v24 = vld [vmem:[#allocation36_spill] sm:$0xff] }
 0x208   : > { %v2371_v35 = vpop.f32.mrb[16].mxu1 }
 0x209   : > { %v4758_v54 = vadd.f32 %v2371_v35, %v1147_v51  ;;  %v2373_v47 = vpop.f32.mrb[17].mxu1  ;;  %v7753_v35 = vld [vmem:[#allocation33_spill] sm:$0xff] }
 0x20a   : > { %v4759_v41 = vadd.f32 %v2373_v47, %v1151_v56  ;;  %v2375_v26 = vpop.f32.mrb[18].mxu1  ;;  %v7759_v51 = vld [vmem:[#allocation45_spill] sm:$0xff] }
 0x20b   : > { %v2376_v11 = vpop.f32.mrb[19].mxu1  ;;  %v2480_v46 = vadd.f32 %v4758_v54, %v7744_v21  ;;  %v6581_v48 = vadd.f32 %v4758_v54, %v7745_v42  ;;  %v6584_v22 = vadd.f32 %v4758_v54, %v7746_v52  ;;  %v6587_v38 = vadd.f32 %v4758_v54, %v7748_v24  ;;  %v7755_v26 = vld [vmem:[#allocation39_spill] sm:$0xff]  ;;  %v7757_v21 = vld [vmem:[#allocation44_spill] sm:$0xff] }
 0x20c   : > { %v2481_v12 = vadd.f32 %v4759_v41, %v7750_v50  ;;  %v6591_v61 = vadd.f32 %v4759_v41, %v7751_v43  ;;  %v6594_v47 = vadd.f32 %v4759_v41, %v7753_v35  ;;  %v6597_v56 = vadd.f32 %v4759_v41, %v7755_v26  ;;  %v7761_v52 = vld [vmem:[#allocation48_spill] sm:$0xff] }
 0x20d   : > { %7747 = vst [vmem:[#allocation11_spill] sm:$0xff] %v6584_v22  ;;  %7749 = vst [vmem:[#allocation13_spill] sm:$0xff] %v6587_v38  ;;  %v6600_v11 = vadd.f32 %v4758_v54, %v7757_v21  ;;  %v6603_v42 = vadd.f32 %v4759_v41, %v7759_v51  ;;  %v6606_v24 = vadd.f32 %v4758_v54, %v7761_v52  ;;  %v7763_v38 = vld [vmem:[#allocation51_spill] sm:$0xff]  ;;  %v4676_v43 = vmul.f32 -1.442695, %v3087_v28 }
 0x20e   : > { %7752 = vst [vmem:[#allocation14_spill] sm:$0xff] %v6591_v61  ;;  %7754 = vst [vmem:[#allocation15_spill] sm:$0xff] %v6594_v47  ;;  %v6609_v50 = vadd.f32 %v4759_v41, %v7763_v38  ;;  %v4677_v22 = vmul.f32 -1.442695, %v3088_v14 }
 0x20f   : > { %7756 = vst [vmem:[#allocation17_spill] sm:$0xff] %v6597_v56  ;;  %7758 = vst [vmem:[#allocation19_spill] sm:$0xff] %v6600_v11  ;;  %5314 = vpow2.f32 %v4676_v43 }
 0x210   : > { %7760 = vst [vmem:[#allocation23_spill] sm:$0xff] %v6603_v42  ;;  %7762 = vst [vmem:[#allocation26_spill] sm:$0xff] %v6606_v24  ;;  %5316 = vpow2.f32 %v4677_v22 }
 0x211   : > { %7764 = vst [vmem:[#allocation32_spill] sm:$0xff] %v6609_v50 }
 0x219   : > { %v5315_v35 = vpop.eup %5314 }
 0x21a   : > { %v5317_v47 = vpop.eup %5316  ;;  %v3099_v26 = vadd.f32 1.0, %v5315_v35 }
 0x21b   : > { %v3100_v56 = vadd.f32 1.0, %v5317_v47 }
 0x21c   : > { %5318 = vrcp.f32 %v3099_v26 }
 0x21d   : > { %5320 = vrcp.f32 %v3100_v56 }
 0x226   : > { %v5319_v41 = vpop.eup %5318 }
 0x227   : > { %v3039_v61 = vpop.f32.mrb[32].mxu0  ;;  %v5321_v38 = vpop.eup %5320 }
 0x228   : > { %v3089_v21 = vadd.f32 %v3039_v61, %v2478_v44  ;;  %v3041_v11 = vpop.f32.mrb[33].mxu0 }
 0x229   : > { %v3090_v51 = vadd.f32 %v3041_v11, %v2479_v33  ;;  %v3043_v42 = vpop.f32.mrb[34].mxu0 }
 0x22a   : > { %5322 = vtanh.f32 %v3089_v21  ;;  %v3044_v54 = vpop.f32.mrb[35].mxu0 }
 0x22b   : > { %5324 = vtanh.f32 %v3090_v51 }
 0x234   : > { %v5323_v28 = vpop.eup %5322 }
 0x235   : > { %v5325_v14 = vpop.eup %5324  ;;  %v3119_v52 = vmul.f32 %v5323_v28, %v5319_v41  ;;  %v7766_v28 = vld [vmem:[#allocation38_spill] sm:$0xff] }
 0x236   : > { %v3120_v22 = vmul.f32 %v5325_v14, %v5321_v38  ;;  %v7765_v38 = vld [vmem:[#allocation35_spill] sm:$0xff]  ;;  %v6619_v14 = vld [vmem:[%s5832_s11] ss:$24 sps:$4 sm:$0xff]  }
 0x248   : > { %v3080_v43 = vpop.f32.mrb[20].mxu1 }
 0x249   : > { %v3091_v50 = vadd.f32 %v3080_v43, %v2480_v46  ;;  %v3082_v35 = vpop.f32.mrb[21].mxu1  ;;  %v7768_v43 = vld [vmem:[#allocation43_spill] sm:$0xff] }
 0x24a   : > { %v3092_v47 = vadd.f32 %v3082_v35, %v2481_v12  ;;  %v3084_v24 = vpop.f32.mrb[22].mxu1  ;;  %v6629_v35 = vld [vmem:[%s5832_s11 + $0x30] ss:$24 sps:$4 sm:$0xff]  }
 0x24b   : > { %v4678_v26 = vmul.f32 -1.442695, %v3091_v50  ;;  %v3085_v44 = vpop.f32.mrb[23].mxu1 }
 0x24c   : > { %v4679_v61 = vmul.f32 -1.442695, %v3092_v47  ;;  %v6633_v47 = vld [vmem:[%s5832_s11 + $0x64] ss:$24 sps:$4 sm:$0xff]   ;;  %v7770_v44 = vld [vmem:[#allocation50_spill] sm:$0xff] }
 0x24d   : > { %5326 = vpow2.f32 %v4678_v26  ;;  %v7769_v26 = vld [vmem:[#allocation47_spill] sm:$0xff] }
 0x24e   : > { %5328 = vpow2.f32 %v4679_v61  ;;  %v6639_v61 = vld [vmem:[%s5832_s11 + $0x60] ss:$24 sps:$4 sm:$0xff]  }
 0x24f   : > { %5330 = vtanh.f32 %v3119_v52  ;;  %v6623_v52 = vld [vmem:[%s5832_s11 + $0x34] ss:$24 sps:$4 sm:$0xff]  }
 0x250   : > { %5332 = vtanh.f32 %v3120_v22  ;;  %v7767_v22 = vld [vmem:[#allocation41_spill] sm:$0xff] }
 0x257   : > { %v5327_v33 = vpop.eup %5326 }
 0x258   : > { %v5329_v56 = vpop.eup %5328  ;;  %v3113_v11 = vadd.f32 1.0, %v5327_v33  ;;  %v6643_v33 = vld [vmem:[%s5832_s11 + $0x94] ss:$24 sps:$4 sm:$0xff]  }
 0x259   : > { %v3114_v42 = vadd.f32 1.0, %v5329_v56  ;;  %v5331_v21 = vpop.eup %5330  ;;  %v7771_v56 = vld [vmem:[#allocation53_spill] sm:$0xff] }
 0x25a   : > { %5334 = vrcp.f32 %v3113_v11  ;;  %v5333_v51 = vpop.eup %5332  ;;  %v7772_v11 = vld [vmem:[#allocation55_spill] sm:$0xff] }
 0x25b   : > { %5336 = vrcp.f32 %v3114_v42  ;;  %v6649_v42 = vld [vmem:[%s5832_s11 + $0x90] ss:$24 sps:$4 sm:$0xff]  }
 0x264   : > { %v5335_v46 = vpop.eup %5334 }
 0x265   : > { %v5337_v54 = vpop.eup %5336  ;;  %v3123_v12 = vmul.f32 %v5335_v46, %v5331_v21  ;;  %v6653_v21 = vld [vmem:[%s5832_s11 + $0xc4] ss:$24 sps:$4 sm:$0xff]   ;;  %v7775_v46 = vld [vmem:[#allocation59_spill] sm:$0xff] }
 0x266   : > { %v3124_v24 = vmul.f32 %v5337_v54, %v5333_v51  ;;  %7773 = vst [vmem:[#allocation36_spill] sm:$0xff] %v6653_v21  ;;  %v7774_v51 = vld [vmem:[#allocation57_spill] sm:$0xff] }
 0x267   : > { %v6611_v50 = vpack.c.bf16 %v3123_v12, %v3123_v12  ;;  %v6659_v54 = vld [vmem:[%s5832_s11 + $0xc0] ss:$24 sps:$4 sm:$0xff]   ;;  %v6663_v12 = vld [vmem:[%s5832_s11 + $0xf4] ss:$24 sps:$4 sm:$0xff]  }
 0x268   : > { %v3126_v41 = vpack.c.bf16 %v3124_v24, %v3124_v24  ;;  %7776 = vst [vmem:[#allocation24_spill] sm:$0xff] %v6659_v54  ;;  %7777 = vst [vmem:[#allocation28_spill] sm:$0xff] %v6663_v12  ;;  %v7778_v24 = vld [vmem:[#allocation61_spill] sm:$0xff] }
 0x269   : > { %3127 = vst [vmem:[#allocation2] sm:$0xf] %v6611_v50 }
 0x26a   : > { %3128 = vst [vmem:[#allocation2 + $0x8] sm:$0xf] %v3126_v41  ;;  %3167 = vmatprep.mubr.bf16.mxu0 %v3126_v41  ;;  %3208 = vmatprep.mubr.bf16.mxu1 %v3126_v41 }
 0x26b   : > { %3168 = vmatmul.mubr.bf16.vlgmr.msra.gmra.mrb[36].mxu0 %v6611_v50  ;;  %3209 = vmatmul.mubr.bf16.vlgmr.msra.gmra.mrb[24].mxu1 %v6611_v50 }
 0x26c   : > { %3218 = vmatpush1.bf16.msra.mxu0 %v7765_v38  ;;  %3249 = vmatprep.mubr.bf16.mxu0 %v3126_v41  ;;  %v7779_v41 = vld [vmem:[#allocation63_spill] sm:$0xff] }
 0x26d   : > { %3219 = vmatprep.subr.bf16.mxu0 %v7766_v28  ;;  %3313 = vmatpush1.bf16.msra.mxu1 %v6619_v14 }
 0x26e   : > { %3314 = vmatprep.subr.bf16.mxu1 %v6623_v52 }
 0x270   : > { %3220 = vmatpush1.bf16.msra.mxu0 %v7767_v22 }
 0x271   : > { %3221 = vmatprep.subr.bf16.mxu0 %v7768_v43  ;;  %3315 = vmatpush1.bf16.msra.mxu1 %v6629_v35 }
 0x272   : > { %3316 = vmatprep.subr.bf16.mxu1 %v6633_v47 }
 0x274   : > { %3222 = vmatpush1.bf16.msra.mxu0 %v7769_v26 }
 0x275   : > { %3223 = vmatprep.subr.bf16.mxu0 %v7770_v44  ;;  %3317 = vmatpush1.bf16.msra.mxu1 %v6639_v61 }
 0x276   : > { %3318 = vmatprep.subr.bf16.mxu1 %v6643_v33 }
 0x278   : > { %3224 = vmatpush1.bf16.msra.mxu0 %v7771_v56 }
 0x279   : > { %3225 = vmatprep.subr.bf16.mxu0 %v7772_v11  ;;  %3319 = vmatpush1.bf16.msra.mxu1 %v6649_v42 }
 0x27a   : > { %3320 = vmatprep.subr.bf16.mxu1 %v6653_v21  ;;  %v6669_v21 = vld [vmem:[%s5832_s11 + $0xf0] ss:$24 sps:$4 sm:$0xff]  }
 0x27b   : > { %7780 = vst [vmem:[#allocation33_spill] sm:$0xff] %v6669_v21 }
 0x27c   : > { %3226 = vmatpush1.bf16.msra.mxu0 %v7774_v51  ;;  %v6673_v51 = vld [vmem:[%s5832_s11 + $0x124] ss:$24 sps:$4 sm:$0xff]  }
 0x27d   : > { %3227 = vmatprep.subr.bf16.mxu0 %v7775_v46  ;;  %3321 = vmatpush1.bf16.msra.mxu1 %v6659_v54  ;;  %v7781_v54 = vld [vmem:[#allocation65_spill] sm:$0xff]  ;;  %v7782_v46 = vld [vmem:[#allocation67_spill] sm:$0xff] }
 0x27e   : > { %3322 = vmatprep.subr.bf16.mxu1 %v6663_v12  ;;  %v6679_v12 = vld [vmem:[%s5832_s11 + $0x120] ss:$24 sps:$4 sm:$0xff]  }
 0x27f   : > { %7783 = vst [vmem:[#allocation39_spill] sm:$0xff] %v6679_v12 }
 0x280   : > { %3228 = vmatpush1.bf16.msra.mxu0 %v7778_v24  ;;  %v6683_v24 = vld [vmem:[%s5832_s11 + $0x154] ss:$24 sps:$4 sm:$0xff]  }
 0x281   : > { %3229 = vmatprep.subr.bf16.mxu0 %v7779_v41  ;;  %3323 = vmatpush1.bf16.msra.mxu1 %v6669_v21  ;;  %7784 = vst [vmem:[#allocation44_spill] sm:$0xff] %v6683_v24  ;;  %v7785_v21 = vld [vmem:[#allocation69_spill] sm:$0xff]  ;;  %v6689_v41 = vld [vmem:[%s5832_s11 + $0x150] ss:$24 sps:$4 sm:$0xff]  }
 0x282   : > { %3324 = vmatprep.subr.bf16.mxu1 %v6673_v51  ;;  %7786 = vst [vmem:[#allocation45_spill] sm:$0xff] %v6689_v41 }
 0x284   : > { %3230 = vmatpush1.bf16.msra.mxu0 %v7781_v54  ;;  %v6693_v54 = vld [vmem:[%s5832_s11 + $0x184] ss:$24 sps:$4 sm:$0xff]  }
 0x285   : > { %3231 = vmatprep.subr.bf16.mxu0 %v7782_v46  ;;  %3325 = vmatpush1.bf16.msra.mxu1 %v6679_v12  ;;  %v7787_v46 = vld [vmem:[#allocation70_spill] sm:$0xff]  ;;  %v6699_v12 = vld [vmem:[%s5832_s11 + $0x180] ss:$24 sps:$4 sm:$0xff]  }
 0x286   : > { %3326 = vmatprep.subr.bf16.mxu1 %v6683_v24  ;;  %7788 = vst [vmem:[#allocation48_spill] sm:$0xff] %v6699_v12  ;;  %v6703_v24 = vld [vmem:[%s5832_s11 + $0x1b4] ss:$24 sps:$4 sm:$0xff]  }
 0x288   : > { %3232 = vmatpush1.bf16.msra.mxu0 %v7785_v21 }
 0x289   : > { %3233 = vmatprep.subr.bf16.mxu0 %v6359_v16  ;;  %3327 = vmatpush1.bf16.msra.mxu1 %v6689_v41  ;;  %v6709_v41 = vld [vmem:[%s5832_s11 + $0x1b0] ss:$24 sps:$4 sm:$0xff]  }
 0x28a   : > { %3328 = vmatprep.subr.bf16.mxu1 %v6693_v54  ;;  %7789 = vst [vmem:[#allocation51_spill] sm:$0xff] %v6709_v41 }
 0x28c   : > { %3234 = vmatpush1.bf16.msra.mxu0 %v7787_v46 }
 0x28d   : > { %3235 = vmatprep.subr.bf16.mxu0 %v6368_v37  ;;  %3329 = vmatpush1.bf16.msra.mxu1 %v6699_v12 }
 0x28e   : > { %3330 = vmatprep.subr.bf16.mxu1 %v6703_v24 }
 0x290   : > { %3236 = vmatpush1.bf16.msra.mxu0 %v6374_v19 }
 0x291   : > { %3237 = vmatprep.subr.bf16.mxu0 %v6379_v5  ;;  %3331 = vmatpush1.bf16.msra.mxu1 %v6709_v41 }
 0x292   : > { %3332 = vmatprep.subr.bf16.mxu1 %v6013_v60  ;;  %v7790_v60 = vld [vmem:[#allocation21_spill] sm:$0xff] }
 0x294   : > { %3238 = vmatpush1.bf16.msra.mxu0 %v6384_v15 }
 0x295   : > { %3239 = vmatprep.subr.bf16.mxu0 %v6389_v45  ;;  %3333 = vmatpush1.bf16.msra.mxu1 %v6017_v59  ;;  %v7791_v59 = vld [vmem:[#allocation22_spill] sm:$0xff] }
 0x296   : > { %3334 = vmatprep.subr.bf16.mxu1 %v6022_v62  ;;  %v7792_v62 = vld [vmem:[#allocation27_spill] sm:$0xff] }
 0x298   : > { %3240 = vmatpush1.bf16.msra.mxu0 %v6394_v17 }
 0x299   : > { %3241 = vmatprep.subr.bf16.mxu0 %v6399_v20  ;;  %3335 = vmatpush1.bf16.msra.mxu1 %v6029_v1  ;;  %v7793_v1 = vld [vmem:[#allocation29_spill] sm:$0xff] }
 0x29a   : > { %3336 = vmatprep.subr.bf16.mxu1 %v6034_v2  ;;  %v7794_v2 = vld [vmem:[#allocation30_spill] sm:$0xff] }
 0x29c   : > { %3242 = vmatpush1.bf16.msra.mxu0 %v6404_v23 }
 0x29d   : > { %3243 = vmatprep.subr.bf16.mxu0 %v6409_v25  ;;  %3337 = vmatpush1.bf16.msra.mxu1 %v6039_v4  ;;  %v7795_v4 = vld [vmem:[#allocation34_spill] sm:$0xff] }
 0x29e   : > { %3338 = vmatprep.subr.bf16.mxu1 %v6044_v6  ;;  %v7796_v6 = vld [vmem:[#allocation37_spill] sm:$0xff] }
 0x2a0   : > { %3244 = vmatpush1.bf16.msra.mxu0 %v6414_v27 }
 0x2a1   : > { %3245 = vmatprep.subr.bf16.mxu0 %v6419_v29  ;;  %3339 = vmatpush1.bf16.msra.mxu1 %v6049_v8  ;;  %v7797_v8 = vld [vmem:[#allocation40_spill] sm:$0xff] }
 0x2a2   : > { %3340 = vmatprep.subr.bf16.mxu1 %v6054_v10  ;;  %v7798_v10 = vld [vmem:[#allocation42_spill] sm:$0xff] }
 0x2a4   : > { %3246 = vmatpush1.bf16.msra.mxu0 %v6424_v30 }
 0x2a5   : > { %3247 = vmatprep.subr.bf16.mxu0 %v6429_v32  ;;  %3341 = vmatpush1.bf16.msra.mxu1 %v7704_v53  ;;  %v7808_v53 = vld [vmem:[#allocation66_spill] sm:$0xff] }
 0x2a6   : > { %3342 = vmatprep.subr.bf16.mxu1 %v7708_v3 }
 0x2a8   : > { %3248 = vmatpush1.bf16.msra.mxu0 %v6434_v34 }
 0x2a9   : > { %3353 = vmatprep.subr.bf16.mxu0 %v6091_v39  ;;  %3343 = vmatpush1.bf16.msra.mxu1 %v7709_v31  ;;  %v7800_v39 = vld [vmem:[#allocation49_spill] sm:$0xff]  ;;  %v7811_v31 = vld [vmem:[#allocation71_spill] sm:$0xff] }
 0x2aa   : > { %3394 = vmatprep.subr.bf16.mxu1 %v7710_v36 }
 0x2ab   : > { %3250 = vmatmul.mubr.bf16.vlgmr.msra.gmra.mrb[40].mxu0 %v6611_v50  ;;  %v7812_v50 = vld [vmem:[#allocation6_spill] sm:$0xff] }
 0x2ac   : > { %3354 = vmatpush1.bf16.msra.mxu0 %v6106_v55  ;;  %v7802_v55 = vld [vmem:[#allocation54_spill] sm:$0xff] }
 0x2ad   : > { %3355 = vmatprep.subr.bf16.mxu0 %v6115_v63  ;;  %v7804_v63 = vld [vmem:[#allocation58_spill] sm:$0xff] }
 0x2b0   : > { %3356 = vmatpush1.bf16.msra.mxu0 %v6125_v7  ;;  %v7805_v7 = vld [vmem:[#allocation60_spill] sm:$0xff] }
 0x2b1   : > { %3357 = vmatprep.subr.bf16.mxu0 %v6130_v18  ;;  %v7806_v18 = vld [vmem:[#allocation62_spill] sm:$0xff] }
 0x2b4   : > { %3358 = vmatpush1.bf16.msra.mxu0 %v6144_v40  ;;  %v7807_v40 = vld [vmem:[#allocation64_spill] sm:$0xff] }
 0x2b5   : > { %3359 = vmatprep.subr.bf16.mxu0 %v6153_v49  ;;  %v7801_v49 = vld [vmem:[#allocation52_spill] sm:$0xff] }
 0x2b8   : > { %3360 = vmatpush1.bf16.msra.mxu0 %v6162_v13  ;;  %v7799_v13 = vld [vmem:[#allocation46_spill] sm:$0xff] }
 0x2b9   : > { %3361 = vmatprep.subr.bf16.mxu0 %v6167_v57  ;;  %v7803_v57 = vld [vmem:[#allocation56_spill] sm:$0xff] }
 0x2bc   : > { %3362 = vmatpush1.bf16.msra.mxu0 %v7790_v60 }
 0x2bd   : > { %3363 = vmatprep.subr.bf16.mxu0 %v7791_v59 }
 0x2c0   : > { %3364 = vmatpush1.bf16.msra.mxu0 %v6182_v58  ;;  %v7809_v58 = vld [vmem:[#allocation68_spill] sm:$0xff] }
 0x2c1   : > { %3365 = vmatprep.subr.bf16.mxu0 %v6187_v9  ;;  %v7810_v9 = vld [vmem:[#allocation7_spill] sm:$0xff] }
 0x2c4   : > { %3366 = vmatpush1.bf16.msra.mxu0 %v7703_v0 }
 0x2c5   : > { %3367 = vmatprep.subr.bf16.mxu0 %v7792_v62 }
 0x2c8   : > { %3368 = vmatpush1.bf16.msra.mxu0 %v7793_v1  ;;  %v7813_v1 = vld [vmem:[#allocation73_spill] sm:$0xff] }
 0x2c9   : > { %3369 = vmatprep.subr.bf16.mxu0 %v7794_v2 }
 0x2cc   : > { %3370 = vmatpush1.bf16.msra.mxu0 %v7795_v4  ;;  %v7814_v4 = vld [vmem:[#allocation9_spill] sm:$0xff] }
 0x2cd   : > { %3371 = vmatprep.subr.bf16.mxu0 %v7796_v6 }
 0x2d0   : > { %3372 = vmatpush1.bf16.msra.mxu0 %v7797_v8 }
 0x2d1   : > { %3373 = vmatprep.subr.bf16.mxu0 %v7798_v10 }
 0x2d4   : > { %3374 = vmatpush1.bf16.msra.mxu0 %v7799_v13 }
 0x2d5   : > { %3375 = vmatprep.subr.bf16.mxu0 %v7800_v39 }
 0x2d8   : > { %3376 = vmatpush1.bf16.msra.mxu0 %v7801_v49 }
 0x2d9   : > { %3377 = vmatprep.subr.bf16.mxu0 %v7802_v55 }
 0x2dc   : > { %3378 = vmatpush1.bf16.msra.mxu0 %v7803_v57 }
 0x2dd   : > { %3379 = vmatprep.subr.bf16.mxu0 %v7804_v63 }
 0x2e0   : > { %3380 = vmatpush1.bf16.msra.mxu0 %v7805_v7 }
 0x2e1   : > { %3381 = vmatprep.subr.bf16.mxu0 %v7806_v18 }
 0x2e4   : > { %3382 = vmatpush1.bf16.msra.mxu0 %v7807_v40 }
 0x2e5   : > { %3383 = vmatprep.subr.bf16.mxu0 %v7808_v53 }
 0x2e8   : > { %3384 = vmatpush1.bf16.msra.mxu0 %v7809_v58 }
 0x2e9   : > { %3483 = vmatprep.subr.bf16.mxu0 %v7810_v9 }
 0x33e   : > { %v3169_v0 = vpop.f32.mrb[36].mxu0  ;;  %v3210_v3 = vpop.f32.mrb[24].mxu1 }
 0x33f   : > { %v3258_v36 = vadd.f32 %v3169_v0, %v7811_v31  ;;  %v3260_v60 = vadd.f32 %v3210_v3, %v7812_v50  ;;  %v3171_v59 = vpop.f32.mrb[37].mxu0  ;;  %v3212_v62 = vpop.f32.mrb[25].mxu1 }
 0x340   : > { %v3259_v2 = vadd.f32 %v3171_v59, %v7813_v1  ;;  %v3261_v6 = vadd.f32 %v3212_v62, %v7814_v4  ;;  %v3173_v8 = vpop.f32.mrb[38].mxu0  ;;  %v3214_v10 = vpop.f32.mrb[26].mxu1 }
 0x341   : > { %v4680_v13 = vmul.f32 -1.442695, %v3258_v36  ;;  %v3174_v39 = vpop.f32.mrb[39].mxu0  ;;  %v3215_v49 = vpop.f32.mrb[27].mxu1  ;;  %v7815_v8 = vld [vmem:[#allocation14_spill] sm:$0xff] }
 0x342   : > { %v4681_v55 = vmul.f32 -1.442695, %v3259_v2 }
 0x343   : > { %5338 = vpow2.f32 %v4680_v13 }
 0x344   : > { %5340 = vpow2.f32 %v4681_v55 }
 0x345   : > { %5342 = vtanh.f32 %v3260_v60 }
 0x346   : > { %5344 = vtanh.f32 %v3261_v6 }
 0x34d   : > { %v5339_v57 = vpop.eup %5338 }
 0x34e   : > { %v5341_v63 = vpop.eup %5340  ;;  %v3270_v9 = vadd.f32 1.0, %v5339_v57 }
 0x34f   : > { %v3271_v0 = vadd.f32 1.0, %v5341_v63  ;;  %v5343_v3 = vpop.eup %5342 }
 0x350   : > { %5346 = vrcp.f32 %v3270_v9  ;;  %v5345_v31 = vpop.eup %5344 }
 0x351   : > { %5348 = vrcp.f32 %v3271_v0 }
 0x35a   : > { %v5347_v50 = vpop.eup %5346 }
 0x35b   : > { %v5349_v59 = vpop.eup %5348  ;;  %v3290_v62 = vmul.f32 %v5347_v50, %v5343_v3 }
 0x35c   : > { %v3291_v1 = vmul.f32 %v5349_v59, %v5345_v31 }
 0x37e   : > { %v3251_v36 = vpop.f32.mrb[40].mxu0 }
 0x37f   : > { %v3262_v4 = vadd.f32 %v3251_v36, %v6581_v48  ;;  %v3253_v2 = vpop.f32.mrb[41].mxu0 }
 0x380   : > { %v3263_v10 = vadd.f32 %v3253_v2, %v7815_v8  ;;  %v3255_v13 = vpop.f32.mrb[42].mxu0  ;;  %v7826_v8 = vld [vmem:[#allocation39_spill] sm:$0xff] }
 0x381   : > { %v4682_v39 = vmul.f32 -1.442695, %v3262_v4  ;;  %v3256_v49 = vpop.f32.mrb[43].mxu0  ;;  %v7828_v13 = vld [vmem:[#allocation45_spill] sm:$0xff] }
 0x382   : > { %v4683_v60 = vmul.f32 -1.442695, %v3263_v10  ;;  %v7827_v10 = vld [vmem:[#allocation44_spill] sm:$0xff]  ;;  %v6905_v49 = vld [vmem:[%s5832_s11 + $0x68] ss:$24 sps:$4 sm:$0xff]  }
 0x383   : > { %5350 = vpow2.f32 %v4682_v39  ;;  %v6901_v39 = vld [vmem:[%s5832_s11 + $0x6c] ss:$24 sps:$4 sm:$0xff]   ;;  %7842 = vst [vmem:[#allocation29_spill] sm:$0xff] %v6905_v49 }
 0x384   : > { %5352 = vpow2.f32 %v4683_v60  ;;  %7841 = vst [vmem:[#allocation27_spill] sm:$0xff] %v6901_v39  ;;  %v6909_v60 = vld [vmem:[%s5832_s11 + $0x9c] ss:$24 sps:$4 sm:$0xff]  }
 0x385   : > { %5354 = vtanh.f32 %v3290_v62  ;;  %v7822_v62 = vld [vmem:[#allocation63_spill] sm:$0xff]  ;;  %7843 = vst [vmem:[#allocation30_spill] sm:$0xff] %v6909_v60 }
 0x386   : > { %5356 = vtanh.f32 %v3291_v1  ;;  %v7823_v1 = vld [vmem:[#allocation33_spill] sm:$0xff] }
 0x38d   : > { %v5351_v9 = vpop.eup %5350 }
 0x38e   : > { %v5353_v6 = vpop.eup %5352  ;;  %v3284_v55 = vadd.f32 1.0, %v5351_v9  ;;  %v6913_v9 = vld [vmem:[%s5832_s11 + $0x98] ss:$24 sps:$4 sm:$0xff]  }
 0x38f   : > { %v3285_v57 = vadd.f32 1.0, %v5353_v6  ;;  %v5355_v63 = vpop.eup %5354  ;;  %7844 = vst [vmem:[#allocation34_spill] sm:$0xff] %v6913_v9  ;;  %v6917_v6 = vld [vmem:[%s5832_s11 + $0xcc] ss:$24 sps:$4 sm:$0xff]  }
 0x390   : > { %5358 = vrcp.f32 %v3284_v55  ;;  %v5357_v0 = vpop.eup %5356  ;;  %7845 = vst [vmem:[#allocation37_spill] sm:$0xff] %v6917_v6  ;;  %v6921_v55 = vld [vmem:[%s5832_s11 + $0xc8] ss:$24 sps:$4 sm:$0xff]  }
 0x391   : > { %5360 = vrcp.f32 %v3285_v57  ;;  %7846 = vst [vmem:[#allocation40_spill] sm:$0xff] %v6921_v55  ;;  %v6925_v57 = vld [vmem:[%s5832_s11 + $0xfc] ss:$24 sps:$4 sm:$0xff]  }
 0x392   : > { %7847 = vst [vmem:[#allocation42_spill] sm:$0xff] %v6925_v57 }
 0x39a   : > { %v5359_v48 = vpop.eup %5358 }
 0x39b   : > { %v5361_v3 = vpop.eup %5360  ;;  %v3294_v31 = vmul.f32 %v5359_v48, %v5355_v63  ;;  %v6929_v63 = vld [vmem:[%s5832_s11 + $0xf8] ss:$24 sps:$4 sm:$0xff]   ;;  %v6937_v48 = vld [vmem:[%s5832_s11 + $0x128] ss:$24 sps:$4 sm:$0xff]  }
 0x39c   : > { %v3295_v50 = vmul.f32 %v5361_v3, %v5357_v0  ;;  %7848 = vst [vmem:[#allocation46_spill] sm:$0xff] %v6929_v63  ;;  %v6933_v0 = vld [vmem:[%s5832_s11 + $0x12c] ss:$24 sps:$4 sm:$0xff]   ;;  %7850 = vst [vmem:[#allocation52_spill] sm:$0xff] %v6937_v48  ;;  %v6941_v3 = vld [vmem:[%s5832_s11 + $0x15c] ss:$24 sps:$4 sm:$0xff]  }
 0x39d   : > { %v6776_v59 = vpack.c.bf16 %v3294_v31, %v3294_v31  ;;  %7849 = vst [vmem:[#allocation49_spill] sm:$0xff] %v6933_v0  ;;  %7851 = vst [vmem:[#allocation54_spill] sm:$0xff] %v6941_v3  ;;  %v6945_v31 = vld [vmem:[%s5832_s11 + $0x158] ss:$24 sps:$4 sm:$0xff]  }
 0x39e   : > { %v3297_v36 = vpack.c.bf16 %v3295_v50, %v3295_v50  ;;  %7852 = vst [vmem:[#allocation56_spill] sm:$0xff] %v6945_v31  ;;  %v6949_v50 = vld [vmem:[%s5832_s11 + $0x18c] ss:$24 sps:$4 sm:$0xff]  }
 0x39f   : > { %v3300_v4 = vrot.slane %v6776_v59, 4  ;;  %7853 = vst [vmem:[#allocation58_spill] sm:$0xff] %v6949_v50 }
 0x3a0   : > { %v3301_v2 = vrot.slane %v3297_v36, 4  ;;  %3344 = vmatprep.mubr.bf16.mxu1 %v3297_v36  ;;  %3385 = vmatprep.mubr.bf16.mxu0 %v3297_v36 }
 0x3a1   : > { %3304 = vst [vmem:[#allocation2] sm:$0xf0] %v3300_v4  ;;  %3345 = vmatmul.mubr.bf16.vlgmr.msra.gmra.mrb[28].mxu1 %v6776_v59  ;;  %3386 = vmatmul.mubr.bf16.vlgmr.msra.gmra.mrb[44].mxu0 %v6776_v59  ;;  %v6961_v4 = vld [vmem:[%s5832_s11 + $0x1b8] ss:$24 sps:$4 sm:$0xff]  }
 0x3a2   : > { %3305 = vst [vmem:[#allocation2 + $0x8] sm:$0xf0] %v3301_v2  ;;  %3395 = vmatpush1.bf16.msra.mxu1 %v7765_v38  ;;  %3426 = vmatprep.mubr.bf16.mxu1 %v3297_v36  ;;  %v7816_v38 = vld [vmem:[#allocation36_spill] sm:$0xff]  ;;  %7856 = vst [vmem:[#allocation64_spill] sm:$0xff] %v6961_v4  ;;  %v6965_v2 = vld [vmem:[%s5832_s11 + $0x1ec] ss:$24 sps:$4 sm:$0xff]  }
 0x3a3   : > { %3396 = vmatprep.subr.bf16.mxu1 %v7766_v28  ;;  %3484 = vmatpush1.bf16.msra.mxu0 %v6619_v14  ;;  %v7817_v28 = vld [vmem:[#allocation57_spill] sm:$0xff]  ;;  %v6957_v36 = vld [vmem:[%s5832_s11 + $0x1bc] ss:$24 sps:$4 sm:$0xff]   ;;  %7857 = vst [vmem:[#allocation66_spill] sm:$0xff] %v6965_v2 }
 0x3a4   : > { %3485 = vmatprep.subr.bf16.mxu0 %v6623_v52  ;;  %7855 = vst [vmem:[#allocation62_spill] sm:$0xff] %v6957_v36 }
 0x3a6   : > { %3397 = vmatpush1.bf16.msra.mxu1 %v7767_v22  ;;  %v7818_v22 = vld [vmem:[#allocation59_spill] sm:$0xff] }
 0x3a7   : > { %3398 = vmatprep.subr.bf16.mxu1 %v7768_v43  ;;  %3486 = vmatpush1.bf16.msra.mxu0 %v6629_v35  ;;  %v7819_v43 = vld [vmem:[#allocation24_spill] sm:$0xff] }
 0x3a8   : > { %3487 = vmatprep.subr.bf16.mxu0 %v6633_v47 }
 0x3aa   : > { %3399 = vmatpush1.bf16.msra.mxu1 %v7769_v26  ;;  %v7820_v26 = vld [vmem:[#allocation28_spill] sm:$0xff] }
 0x3ab   : > { %3400 = vmatprep.subr.bf16.mxu1 %v7770_v44  ;;  %3488 = vmatpush1.bf16.msra.mxu0 %v6639_v61  ;;  %v7821_v44 = vld [vmem:[#allocation61_spill] sm:$0xff] }
 0x3ac   : > { %3489 = vmatprep.subr.bf16.mxu0 %v6643_v33 }
 0x3ae   : > { %3401 = vmatpush1.bf16.msra.mxu1 %v7771_v56  ;;  %v7824_v56 = vld [vmem:[#allocation65_spill] sm:$0xff] }
 0x3af   : > { %3402 = vmatprep.subr.bf16.mxu1 %v7772_v11  ;;  %3490 = vmatpush1.bf16.msra.mxu0 %v6649_v42  ;;  %v7825_v11 = vld [vmem:[#allocation67_spill] sm:$0xff] }
 0x3b0   : > { %3491 = vmatprep.subr.bf16.mxu0 %v7816_v38 }
 0x3b2   : > { %3403 = vmatpush1.bf16.msra.mxu1 %v7817_v28  ;;  %v6969_v28 = vld [vmem:[%s5832_s11 + $0x1e8] ss:$24 sps:$4 sm:$0xff]  }
 0x3b3   : > { %3404 = vmatprep.subr.bf16.mxu1 %v7818_v22  ;;  %3492 = vmatpush1.bf16.msra.mxu0 %v7819_v43  ;;  %7858 = vst [vmem:[#allocation68_spill] sm:$0xff] %v6969_v28  ;;  %v6973_v22 = vld [vmem:[%s5832_s11 + $0x21c] ss:$24 sps:$4 sm:$0xff]  }
 0x3b4   : > { %3493 = vmatprep.subr.bf16.mxu0 %v7820_v26  ;;  %7859 = vst [vmem:[#allocation71_spill] sm:$0xff] %v6973_v22 }
 0x3b6   : > { %3405 = vmatpush1.bf16.msra.mxu1 %v7821_v44  ;;  %v6977_v44 = vld [vmem:[%s5832_s11 + $0x218] ss:$24 sps:$4 sm:$0xff]  }
 0x3b7   : > { %3406 = vmatprep.subr.bf16.mxu1 %v7822_v62  ;;  %3494 = vmatpush1.bf16.msra.mxu0 %v7823_v1  ;;  %7860 = vst [vmem:[#allocation6_spill] sm:$0xff] %v6977_v44  ;;  %v6981_v62 = vld [vmem:[%s5832_s11 + $0x24c] ss:$24 sps:$4 sm:$0xff]  }
 0x3b8   : > { %3495 = vmatprep.subr.bf16.mxu0 %v6673_v51  ;;  %7861 = vst [vmem:[#allocation73_spill] sm:$0xff] %v6981_v62 }
 0x3ba   : > { %3407 = vmatpush1.bf16.msra.mxu1 %v7824_v56  ;;  %v6985_v56 = vld [vmem:[%s5832_s11 + $0x248] ss:$24 sps:$4 sm:$0xff]  }
 0x3bb   : > { %3408 = vmatprep.subr.bf16.mxu1 %v7825_v11  ;;  %3496 = vmatpush1.bf16.msra.mxu0 %v7826_v8  ;;  %7862 = vst [vmem:[#allocation9_spill] sm:$0xff] %v6985_v56  ;;  %v6989_v11 = vld [vmem:[%s5832_s11 + $0x27c] ss:$24 sps:$4 sm:$0xff]  }
 0x3bc   : > { %3497 = vmatprep.subr.bf16.mxu0 %v7827_v10  ;;  %7863 = vst [vmem:[#allocation14_spill] sm:$0xff] %v6989_v11 }
 0x3be   : > { %3409 = vmatpush1.bf16.msra.mxu1 %v7785_v21  ;;  %v6831_v21 = vld [vmem:[%s5832_s11 + $0x214] ss:$24 sps:$4 sm:$0xff]  }
 0x3bf   : > { %3410 = vmatprep.subr.bf16.mxu1 %v6359_v16  ;;  %3498 = vmatpush1.bf16.msra.mxu0 %v7828_v13  ;;  %v6821_v16 = vld [vmem:[%s5832_s11 + $0x1e4] ss:$24 sps:$4 sm:$0xff]  }
 0x3c0   : > { %3499 = vmatprep.subr.bf16.mxu0 %v6693_v54 }
 0x3c2   : > { %3411 = vmatpush1.bf16.msra.mxu1 %v7787_v46  ;;  %v6897_v46 = vld [vmem:[%s5832_s11 + $0x38] ss:$24 sps:$4 sm:$0xff]  }
 0x3c3   : > { %3412 = vmatprep.subr.bf16.mxu1 %v6368_v37  ;;  %3500 = vmatpush1.bf16.msra.mxu0 %v6699_v12  ;;  %v6827_v37 = vld [vmem:[%s5832_s11 + $0x1e0] ss:$24 sps:$4 sm:$0xff]   ;;  %7840 = vst [vmem:[#allocation22_spill] sm:$0xff] %v6897_v46 }
 0x3c4   : > { %3501 = vmatprep.subr.bf16.mxu0 %v6703_v24  ;;  %7829 = vst [vmem:[#allocation35_spill] sm:$0xff] %v6827_v37 }
 0x3c6   : > { %3413 = vmatpush1.bf16.msra.mxu1 %v6374_v19  ;;  %v6841_v19 = vld [vmem:[%s5832_s11 + $0x244] ss:$24 sps:$4 sm:$0xff]  }
 0x3c7   : > { %3414 = vmatprep.subr.bf16.mxu1 %v6379_v5  ;;  %3502 = vmatpush1.bf16.msra.mxu0 %v6709_v41  ;;  %v6837_v5 = vld [vmem:[%s5832_s11 + $0x210] ss:$24 sps:$4 sm:$0xff]  }
 0x3c8   : > { %3503 = vmatprep.subr.bf16.mxu0 %v6821_v16  ;;  %7830 = vst [vmem:[#allocation38_spill] sm:$0xff] %v6837_v5 }
 0x3ca   : > { %3415 = vmatpush1.bf16.msra.mxu1 %v6384_v15  ;;  %v6851_v15 = vld [vmem:[%s5832_s11 + $0x274] ss:$24 sps:$4 sm:$0xff]  }
 0x3cb   : > { %3416 = vmatprep.subr.bf16.mxu1 %v6389_v45  ;;  %3504 = vmatpush1.bf16.msra.mxu0 %v6827_v37  ;;  %v6847_v45 = vld [vmem:[%s5832_s11 + $0x240] ss:$24 sps:$4 sm:$0xff]  }
 0x3cc   : > { %3505 = vmatprep.subr.bf16.mxu0 %v6831_v21 }
 0x3ce   : > { %3417 = vmatpush1.bf16.msra.mxu1 %v6394_v17  ;;  %v6857_v17 = vld [vmem:[%s5832_s11 + $0x270] ss:$24 sps:$4 sm:$0xff]  }
 0x3cf   : > { %3418 = vmatprep.subr.bf16.mxu1 %v6399_v20  ;;  %3506 = vmatpush1.bf16.msra.mxu0 %v6837_v5  ;;  %7831 = vst [vmem:[#allocation41_spill] sm:$0xff] %v6857_v17  ;;  %v6861_v20 = vld [vmem:[%s5832_s11 + $0x2a4] ss:$24 sps:$4 sm:$0xff]  }
 0x3d0   : > { %3507 = vmatprep.subr.bf16.mxu0 %v6841_v19  ;;  %7832 = vst [vmem:[#allocation43_spill] sm:$0xff] %v6861_v20 }
 0x3d2   : > { %3419 = vmatpush1.bf16.msra.mxu1 %v6404_v23  ;;  %v6867_v23 = vld [vmem:[%s5832_s11 + $0x2a0] ss:$24 sps:$4 sm:$0xff]  }
 0x3d3   : > { %3420 = vmatprep.subr.bf16.mxu1 %v6409_v25  ;;  %3508 = vmatpush1.bf16.msra.mxu0 %v6847_v45  ;;  %7833 = vst [vmem:[#allocation47_spill] sm:$0xff] %v6867_v23  ;;  %v6871_v25 = vld [vmem:[%s5832_s11 + $0x2d4] ss:$24 sps:$4 sm:$0xff]  }
 0x3d4   : > { %3509 = vmatprep.subr.bf16.mxu0 %v6851_v15  ;;  %7834 = vst [vmem:[#allocation50_spill] sm:$0xff] %v6871_v25 }
 0x3d6   : > { %3421 = vmatpush1.bf16.msra.mxu1 %v6414_v27  ;;  %v6876_v27 = vld [vmem:[%s5832_s11 + $0xc] ss:$24 sps:$4 sm:$0xff]  }
 0x3d7   : > { %3422 = vmatprep.subr.bf16.mxu1 %v6419_v29  ;;  %3510 = vmatpush1.bf16.msra.mxu0 %v6857_v17  ;;  %7835 = vst [vmem:[#allocation53_spill] sm:$0xff] %v6876_v27  ;;  %v6880_v29 = vld [vmem:[%s5832_s11 + $0x2d0] ss:$24 sps:$4 sm:$0xff]  }
 0x3d8   : > { %3511 = vmatprep.subr.bf16.mxu0 %v6861_v20  ;;  %7836 = vst [vmem:[#allocation55_spill] sm:$0xff] %v6880_v29 }
 0x3da   : > { %3423 = vmatpush1.bf16.msra.mxu1 %v6424_v30  ;;  %v6884_v30 = vld [vmem:[%s5832_s11 + $0x14] ss:$24 sps:$4 sm:$0xff]  }
 0x3db   : > { %3424 = vmatprep.subr.bf16.mxu1 %v6429_v32  ;;  %3512 = vmatpush1.bf16.msra.mxu0 %v6867_v23  ;;  %7837 = vst [vmem:[#allocation69_spill] sm:$0xff] %v6884_v30  ;;  %v6889_v32 = vld [vmem:[%s5832_s11 + $0x8] ss:$24 sps:$4 sm:$0xff]  }
 0x3dc   : > { %3513 = vmatprep.subr.bf16.mxu0 %v6871_v25  ;;  %7838 = vst [vmem:[#allocation70_spill] sm:$0xff] %v6889_v32 }
 0x3de   : > { %3425 = vmatpush1.bf16.msra.mxu1 %v6434_v34  ;;  %v6893_v34 = vld [vmem:[%s5832_s11 + $0x3c] ss:$24 sps:$4 sm:$0xff]  }
 0x3df   : > { %3524 = vmatprep.subr.bf16.mxu1 %v6876_v27  ;;  %3514 = vmatpush1.bf16.msra.mxu0 %v6880_v29  ;;  %7839 = vst [vmem:[#allocation21_spill] sm:$0xff] %v6893_v34 }
 0x3e0   : > { %3565 = vmatprep.subr.bf16.mxu0 %v6884_v30 }
 0x3e1   : > { %3427 = vmatmul.mubr.bf16.vlgmr.msra.gmra.mrb[32].mxu1 %v6776_v59  ;;  %v6953_v59 = vld [vmem:[%s5832_s11 + $0x188] ss:$24 sps:$4 sm:$0xff]  }
 0x3e2   : > { %3525 = vmatpush1.bf16.msra.mxu1 %v6889_v32  ;;  %7854 = vst [vmem:[#allocation60_spill] sm:$0xff] %v6953_v59 }
 0x3e3   : > { %3526 = vmatprep.subr.bf16.mxu1 %v6893_v34 }
 0x3e6   : > { %3527 = vmatpush1.bf16.msra.mxu1 %v6897_v46 }
 0x3e7   : > { %3528 = vmatprep.subr.bf16.mxu1 %v6901_v39 }
 0x3ea   : > { %3529 = vmatpush1.bf16.msra.mxu1 %v6905_v49 }
 0x3eb   : > { %3530 = vmatprep.subr.bf16.mxu1 %v6909_v60 }
 0x3ee   : > { %3531 = vmatpush1.bf16.msra.mxu1 %v6913_v9 }
 0x3ef   : > { %3532 = vmatprep.subr.bf16.mxu1 %v6917_v6 }
 0x3f2   : > { %3533 = vmatpush1.bf16.msra.mxu1 %v6921_v55 }
 0x3f3   : > { %3534 = vmatprep.subr.bf16.mxu1 %v6925_v57 }
 0x3f6   : > { %3535 = vmatpush1.bf16.msra.mxu1 %v6929_v63 }
 0x3f7   : > { %3536 = vmatprep.subr.bf16.mxu1 %v6933_v0 }
 0x3fa   : > { %3537 = vmatpush1.bf16.msra.mxu1 %v6937_v48 }
 0x3fb   : > { %3538 = vmatprep.subr.bf16.mxu1 %v6941_v3 }
 0x3fe   : > { %3539 = vmatpush1.bf16.msra.mxu1 %v6945_v31 }
 0x3ff   : > { %3540 = vmatprep.subr.bf16.mxu1 %v6949_v50  ;;  %v7868_v50 = vld [vmem:[#allocation31_spill] sm:$0xff] }
 0x402   : > { %3541 = vmatpush1.bf16.msra.mxu1 %v6953_v59  ;;  %v7867_v59 = vld [vmem:[#allocation74_spill] sm:$0xff] }
 0x403   : > { %3542 = vmatprep.subr.bf16.mxu1 %v6957_v36 }
 0x406   : > { %3543 = vmatpush1.bf16.msra.mxu1 %v6961_v4 }
 0x407   : > { %3544 = vmatprep.subr.bf16.mxu1 %v6965_v2  ;;  %v7866_v2 = vld [vmem:[#allocation20_spill] sm:$0xff] }
 0x40a   : > { %3545 = vmatpush1.bf16.msra.mxu1 %v6969_v28  ;;  %v7865_v28 = vld [vmem:[#allocation72_spill] sm:$0xff] }
 0x40b   : > { %3546 = vmatprep.subr.bf16.mxu1 %v6973_v22 }
 0x40e   : > { %3547 = vmatpush1.bf16.msra.mxu1 %v6977_v44  ;;  %v7864_v44 = vld [vmem:[#allocation7_spill] sm:$0xff] }
 0x40f   : > { %3548 = vmatprep.subr.bf16.mxu1 %v6981_v62 }
 0x412   : > { %3549 = vmatpush1.bf16.msra.mxu1 %v6985_v56 }
 0x413   : > { %3550 = vmatprep.subr.bf16.mxu1 %v6989_v11 }
 0x416   : > { %3551 = vmatpush1.bf16.msra.mxu1 %v7805_v7 }
 0x417   : > { %3552 = vmatprep.subr.bf16.mxu1 %v7806_v18 }
 0x41a   : > { %3553 = vmatpush1.bf16.msra.mxu1 %v7807_v40 }
 0x41b   : > { %3554 = vmatprep.subr.bf16.mxu1 %v7808_v53 }
 0x41e   : > { %3555 = vmatpush1.bf16.msra.mxu1 %v7809_v58 }
 0x41f   : > { %3660 = vmatprep.subr.bf16.mxu1 %v7864_v44 }
 0x474   : > { %v3346_v62 = vpop.f32.mrb[28].mxu1  ;;  %v3387_v22 = vpop.f32.mrb[44].mxu0 }
 0x475   : > { %v3435_v56 = vadd.f32 %v3346_v62, %v7865_v28  ;;  %v3437_v4 = vadd.f32 %v3387_v22, %v7866_v2  ;;  %v3348_v36 = vpop.f32.mrb[29].mxu1  ;;  %v3389_v11 = vpop.f32.mrb[45].mxu0 }
 0x476   : > { %v3436_v7 = vadd.f32 %v3348_v36, %v7867_v59  ;;  %v3438_v18 = vadd.f32 %v3389_v11, %v7868_v50  ;;  %v3350_v31 = vpop.f32.mrb[30].mxu1  ;;  %v3391_v40 = vpop.f32.mrb[46].mxu0 }
 0x477   : > { %v4684_v3 = vmul.f32 -1.442695, %v3435_v56  ;;  %v3351_v53 = vpop.f32.mrb[31].mxu1  ;;  %v3392_v48 = vpop.f32.mrb[47].mxu0  ;;  %v7869_v56 = vld [vmem:[#allocation11_spill] sm:$0xff] }
 0x478   : > { %v4685_v58 = vmul.f32 -1.442695, %v3436_v7 }
 0x479   : > { %5362 = vpow2.f32 %v4684_v3  ;;  %v7870_v3 = vld [vmem:[#allocation15_spill] sm:$0xff] }
 0x47a   : > { %5364 = vpow2.f32 %v4685_v58 }
 0x47b   : > { %5366 = vtanh.f32 %v3437_v4 }
 0x47c   : > { %5368 = vtanh.f32 %v3438_v18 }
 0x483   : > { %v5363_v44 = vpop.eup %5362 }
 0x484   : > { %v5365_v0 = vpop.eup %5364  ;;  %v3447_v63 = vadd.f32 1.0, %v5363_v44 }
 0x485   : > { %v3448_v28 = vadd.f32 1.0, %v5365_v0  ;;  %v5367_v2 = vpop.eup %5366 }
 0x486   : > { %5370 = vrcp.f32 %v3447_v63  ;;  %v5369_v59 = vpop.eup %5368 }
 0x487   : > { %5372 = vrcp.f32 %v3448_v28 }
 0x490   : > { %v5371_v36 = vpop.eup %5370 }
 0x491   : > { %v5373_v50 = vpop.eup %5372  ;;  %v3467_v31 = vmul.f32 %v5371_v36, %v5367_v2 }
 0x492   : > { %v3468_v22 = vmul.f32 %v5373_v50, %v5369_v59 }
 0x4b4   : > { %v3428_v62 = vpop.f32.mrb[32].mxu1 }
 0x4b5   : > { %v3439_v48 = vadd.f32 %v3428_v62, %v7869_v56  ;;  %v3430_v11 = vpop.f32.mrb[33].mxu1 }
 0x4b6   : > { %v3440_v7 = vadd.f32 %v3430_v11, %v7870_v3  ;;  %v3432_v40 = vpop.f32.mrb[34].mxu1  ;;  %v7020_v11 = vld [vmem:[%s5832_s11 + $0x40] ss:$24 sps:$4 sm:$0xff]   ;;  %v7024_v3 = vld [vmem:[%s5832_s11 + $0x74] ss:$24 sps:$4 sm:$0xff]  }
 0x4b7   : > { %v4686_v53 = vmul.f32 -1.442695, %v3439_v48  ;;  %v3433_v44 = vpop.f32.mrb[35].mxu1  ;;  %v7034_v40 = vld [vmem:[%s5832_s11 + $0xa4] ss:$24 sps:$4 sm:$0xff]  }
 0x4b8   : > { %v4687_v4 = vmul.f32 -1.442695, %v3440_v7  ;;  %v7030_v7 = vld [vmem:[%s5832_s11 + $0x70] ss:$24 sps:$4 sm:$0xff]   ;;  %v7044_v44 = vld [vmem:[%s5832_s11 + $0xd4] ss:$24 sps:$4 sm:$0xff]  }
 0x4b9   : > { %5374 = vpow2.f32 %v4686_v53  ;;  %v7040_v53 = vld [vmem:[%s5832_s11 + $0xa0] ss:$24 sps:$4 sm:$0xff]  }
 0x4ba   : > { %5376 = vpow2.f32 %v4687_v4  ;;  %v7050_v4 = vld [vmem:[%s5832_s11 + $0xd0] ss:$24 sps:$4 sm:$0xff]  }
 0x4bb   : > { %5378 = vtanh.f32 %v3467_v31  ;;  %v7010_v31 = vld [vmem:[%s5832_s11 + $0x10] ss:$24 sps:$4 sm:$0xff]  }
 0x4bc   : > { %5380 = vtanh.f32 %v3468_v22  ;;  %v7014_v22 = vld [vmem:[%s5832_s11 + $0x44] ss:$24 sps:$4 sm:$0xff]  }
 0x4c3   : > { %v5375_v63 = vpop.eup %5374 }
 0x4c4   : > { %v5377_v0 = vpop.eup %5376  ;;  %v3461_v18 = vadd.f32 1.0, %v5375_v63  ;;  %v7054_v63 = vld [vmem:[%s5832_s11 + $0x104] ss:$24 sps:$4 sm:$0xff]  }
 0x4c5   : > { %v3462_v58 = vadd.f32 1.0, %v5377_v0  ;;  %v5379_v28 = vpop.eup %5378  ;;  %v7060_v0 = vld [vmem:[%s5832_s11 + $0x100] ss:$24 sps:$4 sm:$0xff]  }
 0x4c6   : > { %5382 = vrcp.f32 %v3461_v18  ;;  %v5381_v2 = vpop.eup %5380  ;;  %v7064_v18 = vld [vmem:[%s5832_s11 + $0x134] ss:$24 sps:$4 sm:$0xff]  }
 0x4c7   : > { %5384 = vrcp.f32 %v3462_v58  ;;  %v7070_v58 = vld [vmem:[%s5832_s11 + $0x130] ss:$24 sps:$4 sm:$0xff]  }
 0x4d0   : > { %v5383_v59 = vpop.eup %5382 }
 0x4d1   : > { %v5385_v36 = vpop.eup %5384  ;;  %v3471_v50 = vmul.f32 %v5383_v59, %v5379_v28  ;;  %v7074_v28 = vld [vmem:[%s5832_s11 + $0x164] ss:$24 sps:$4 sm:$0xff]   ;;  %v7084_v59 = vld [vmem:[%s5832_s11 + $0x194] ss:$24 sps:$4 sm:$0xff]  }
 0x4d2   : > { %v3472_v62 = vmul.f32 %v5385_v36, %v5381_v2  ;;  %v7080_v2 = vld [vmem:[%s5832_s11 + $0x160] ss:$24 sps:$4 sm:$0xff]   ;;  %v7090_v36 = vld [vmem:[%s5832_s11 + $0x190] ss:$24 sps:$4 sm:$0xff]  }
 0x4d3   : > { %v7004_v56 = vpack.c.bf16 %v3471_v50, %v3471_v50  ;;  %v7094_v50 = vld [vmem:[%s5832_s11 + $0x1c4] ss:$24 sps:$4 sm:$0xff]  }
 0x4d4   : > { %v3474_v48 = vpack.c.bf16 %v3472_v62, %v3472_v62  ;;  %7871 = vst [vmem:[#allocation36_spill] sm:$0xff] %v7094_v50  ;;  %v7100_v62 = vld [vmem:[%s5832_s11 + $0x1c0] ss:$24 sps:$4 sm:$0xff]  }
 0x4d5   : > { %3475 = vst [vmem:[#allocation2 + $0x10] sm:$0xf] %v7004_v56 }
 0x4d6   : > { %3476 = vst [vmem:[#allocation2 + $0x18] sm:$0xf] %v3474_v48  ;;  %3515 = vmatprep.mubr.bf16.mxu0 %v3474_v48  ;;  %3556 = vmatprep.mubr.bf16.mxu1 %v3474_v48 }
 0x4d7   : > { %3516 = vmatmul.mubr.bf16.vlgmr.msra.gmra.mrb[48].mxu0 %v7004_v56  ;;  %3557 = vmatmul.mubr.bf16.vlgmr.msra.gmra.mrb[36].mxu1 %v7004_v56 }
 0x4d8   : > { %3566 = vmatpush1.bf16.msra.mxu0 %v7010_v31  ;;  %3597 = vmatprep.mubr.bf16.mxu0 %v3474_v48  ;;  %v7104_v48 = vld [vmem:[%s5832_s11 + $0x1f4] ss:$24 sps:$4 sm:$0xff]  }
 0x4d9   : > { %3567 = vmatprep.subr.bf16.mxu0 %v7014_v22  ;;  %3661 = vmatpush1.bf16.msra.mxu1 %v6619_v14  ;;  %7872 = vst [vmem:[#allocation57_spill] sm:$0xff] %v7104_v48 }
 0x4da   : > { %3662 = vmatprep.subr.bf16.mxu1 %v6623_v52 }
 0x4dc   : > { %3568 = vmatpush1.bf16.msra.mxu0 %v7020_v11 }
 0x4dd   : > { %3569 = vmatprep.subr.bf16.mxu0 %v7024_v3  ;;  %3663 = vmatpush1.bf16.msra.mxu1 %v6629_v35 }
 0x4de   : > { %3664 = vmatprep.subr.bf16.mxu1 %v6633_v47 }
 0x4e0   : > { %3570 = vmatpush1.bf16.msra.mxu0 %v7030_v7 }
 0x4e1   : > { %3571 = vmatprep.subr.bf16.mxu0 %v7034_v40  ;;  %3665 = vmatpush1.bf16.msra.mxu1 %v6639_v61 }
 0x4e2   : > { %3666 = vmatprep.subr.bf16.mxu1 %v6643_v33 }
 0x4e4   : > { %3572 = vmatpush1.bf16.msra.mxu0 %v7040_v53 }
 0x4e5   : > { %3573 = vmatprep.subr.bf16.mxu0 %v7044_v44  ;;  %3667 = vmatpush1.bf16.msra.mxu1 %v6649_v42 }
 0x4e6   : > { %3668 = vmatprep.subr.bf16.mxu1 %v7816_v38 }
 0x4e8   : > { %3574 = vmatpush1.bf16.msra.mxu0 %v7050_v4 }
 0x4e9   : > { %3575 = vmatprep.subr.bf16.mxu0 %v7054_v63  ;;  %3669 = vmatpush1.bf16.msra.mxu1 %v7819_v43 }
 0x4ea   : > { %3670 = vmatprep.subr.bf16.mxu1 %v7820_v26 }
 0x4ec   : > { %3576 = vmatpush1.bf16.msra.mxu0 %v7060_v0 }
 0x4ed   : > { %3577 = vmatprep.subr.bf16.mxu0 %v7064_v18  ;;  %3671 = vmatpush1.bf16.msra.mxu1 %v7823_v1 }
 0x4ee   : > { %3672 = vmatprep.subr.bf16.mxu1 %v6673_v51 }
 0x4f0   : > { %3578 = vmatpush1.bf16.msra.mxu0 %v7070_v58 }
 0x4f1   : > { %3579 = vmatprep.subr.bf16.mxu0 %v7074_v28  ;;  %3673 = vmatpush1.bf16.msra.mxu1 %v7826_v8 }
 0x4f2   : > { %3674 = vmatprep.subr.bf16.mxu1 %v7827_v10 }
 0x4f4   : > { %3580 = vmatpush1.bf16.msra.mxu0 %v7080_v2 }
 0x4f5   : > { %3581 = vmatprep.subr.bf16.mxu0 %v7084_v59  ;;  %3675 = vmatpush1.bf16.msra.mxu1 %v7828_v13 }
 0x4f6   : > { %3676 = vmatprep.subr.bf16.mxu1 %v6693_v54 }
 0x4f8   : > { %3582 = vmatpush1.bf16.msra.mxu0 %v7090_v36 }
 0x4f9   : > { %3583 = vmatprep.subr.bf16.mxu0 %v7094_v50  ;;  %3677 = vmatpush1.bf16.msra.mxu1 %v6699_v12  ;;  %v7110_v50 = vld [vmem:[%s5832_s11 + $0x1f0] ss:$24 sps:$4 sm:$0xff]   ;;  %v7114_v12 = vld [vmem:[%s5832_s11 + $0x224] ss:$24 sps:$4 sm:$0xff]  }
 0x4fa   : > { %3678 = vmatprep.subr.bf16.mxu1 %v6703_v24  ;;  %7873 = vst [vmem:[#allocation59_spill] sm:$0xff] %v7114_v12 }
 0x4fc   : > { %3584 = vmatpush1.bf16.msra.mxu0 %v7100_v62 }
 0x4fd   : > { %3585 = vmatprep.subr.bf16.mxu0 %v7104_v48  ;;  %3679 = vmatpush1.bf16.msra.mxu1 %v6709_v41  ;;  %v7120_v48 = vld [vmem:[%s5832_s11 + $0x220] ss:$24 sps:$4 sm:$0xff]   ;;  %v7124_v41 = vld [vmem:[%s5832_s11 + $0x254] ss:$24 sps:$4 sm:$0xff]  }
 0x4fe   : > { %3680 = vmatprep.subr.bf16.mxu1 %v6821_v16  ;;  %7874 = vst [vmem:[#allocation24_spill] sm:$0xff] %v7120_v48 }
 0x500   : > { %3586 = vmatpush1.bf16.msra.mxu0 %v7110_v50 }
 0x501   : > { %3587 = vmatprep.subr.bf16.mxu0 %v7114_v12  ;;  %3681 = vmatpush1.bf16.msra.mxu1 %v6827_v37  ;;  %v7130_v12 = vld [vmem:[%s5832_s11 + $0x250] ss:$24 sps:$4 sm:$0xff]   ;;  %v7134_v37 = vld [vmem:[%s5832_s11 + $0x284] ss:$24 sps:$4 sm:$0xff]  }
 0x502   : > { %3682 = vmatprep.subr.bf16.mxu1 %v6831_v21  ;;  %7875 = vst [vmem:[#allocation28_spill] sm:$0xff] %v7130_v12  ;;  %7876 = vst [vmem:[#allocation61_spill] sm:$0xff] %v7134_v37 }
 0x504   : > { %3588 = vmatpush1.bf16.msra.mxu0 %v7120_v48  ;;  %v7140_v48 = vld [vmem:[%s5832_s11 + $0x280] ss:$24 sps:$4 sm:$0xff]  }
 0x505   : > { %3589 = vmatprep.subr.bf16.mxu0 %v7124_v41  ;;  %3683 = vmatpush1.bf16.msra.mxu1 %v6837_v5  ;;  %7877 = vst [vmem:[#allocation63_spill] sm:$0xff] %v7140_v48  ;;  %v7144_v5 = vld [vmem:[%s5832_s11 + $0x2b4] ss:$24 sps:$4 sm:$0xff]  }
 0x506   : > { %3684 = vmatprep.subr.bf16.mxu1 %v6841_v19 }
 0x508   : > { %3590 = vmatpush1.bf16.msra.mxu0 %v7130_v12  ;;  %v7150_v12 = vld [vmem:[%s5832_s11 + $0x2b0] ss:$24 sps:$4 sm:$0xff]  }
 0x509   : > { %3591 = vmatprep.subr.bf16.mxu0 %v7134_v37  ;;  %3685 = vmatpush1.bf16.msra.mxu1 %v6847_v45  ;;  %7878 = vst [vmem:[#allocation33_spill] sm:$0xff] %v7150_v12  ;;  %v7154_v37 = vld [vmem:[%s5832_s11 + $0x2e4] ss:$24 sps:$4 sm:$0xff]  }
 0x50a   : > { %3686 = vmatprep.subr.bf16.mxu1 %v6851_v15  ;;  %7879 = vst [vmem:[#allocation65_spill] sm:$0xff] %v7154_v37 }
 0x50c   : > { %3592 = vmatpush1.bf16.msra.mxu0 %v7140_v48  ;;  %v7160_v48 = vld [vmem:[%s5832_s11 + $0x2e0] ss:$24 sps:$4 sm:$0xff]  }
 0x50d   : > { %3593 = vmatprep.subr.bf16.mxu0 %v7144_v5  ;;  %3687 = vmatpush1.bf16.msra.mxu1 %v6857_v17  ;;  %7880 = vst [vmem:[#allocation67_spill] sm:$0xff] %v7160_v48 }
 0x50e   : > { %3688 = vmatprep.subr.bf16.mxu1 %v6861_v20 }
 0x510   : > { %3594 = vmatpush1.bf16.msra.mxu0 %v7150_v12 }
 0x511   : > { %3595 = vmatprep.subr.bf16.mxu0 %v7154_v37  ;;  %3689 = vmatpush1.bf16.msra.mxu1 %v6867_v23 }
 0x512   : > { %3690 = vmatprep.subr.bf16.mxu1 %v6871_v25 }
 0x514   : > { %3596 = vmatpush1.bf16.msra.mxu0 %v7160_v48 }
 0x515   : > { %3701 = vmatprep.subr.bf16.mxu0 %v6876_v27  ;;  %3691 = vmatpush1.bf16.msra.mxu1 %v6880_v29  ;;  %v7905_v29 = vld [vmem:[#allocation76_spill] sm:$0xff]  ;;  %v7906_v27 = vld [vmem:[#allocation3_spill] sm:$0xff] }
 0x516   : > { %3742 = vmatprep.subr.bf16.mxu1 %v6884_v30 }
 0x517   : > { %3598 = vmatmul.mubr.bf16.vlgmr.msra.gmra.mrb[52].mxu0 %v7004_v56  ;;  %v7881_v56 = vld [vmem:[#allocation46_spill] sm:$0xff] }
 0x518   : > { %3702 = vmatpush1.bf16.msra.mxu0 %v6889_v32  ;;  %v7882_v32 = vld [vmem:[#allocation49_spill] sm:$0xff] }
 0x519   : > { %3703 = vmatprep.subr.bf16.mxu0 %v6893_v34 }
 0x51c   : > { %3704 = vmatpush1.bf16.msra.mxu0 %v6897_v46  ;;  %v7883_v46 = vld [vmem:[#allocation52_spill] sm:$0xff] }
 0x51d   : > { %3705 = vmatprep.subr.bf16.mxu0 %v6901_v39  ;;  %v7884_v39 = vld [vmem:[#allocation54_spill] sm:$0xff] }
 0x520   : > { %3706 = vmatpush1.bf16.msra.mxu0 %v6905_v49  ;;  %v7885_v49 = vld [vmem:[#allocation56_spill] sm:$0xff] }
 0x521   : > { %3707 = vmatprep.subr.bf16.mxu0 %v6909_v60  ;;  %v7886_v60 = vld [vmem:[#allocation58_spill] sm:$0xff] }
 0x524   : > { %3708 = vmatpush1.bf16.msra.mxu0 %v6913_v9  ;;  %v7895_v9 = vld [vmem:[#allocation9_spill] sm:$0xff] }
 0x525   : > { %3709 = vmatprep.subr.bf16.mxu0 %v6917_v6  ;;  %v7887_v6 = vld [vmem:[#allocation60_spill] sm:$0xff] }
 0x528   : > { %3710 = vmatpush1.bf16.msra.mxu0 %v6921_v55  ;;  %v7888_v55 = vld [vmem:[#allocation62_spill] sm:$0xff] }
 0x529   : > { %3711 = vmatprep.subr.bf16.mxu0 %v6925_v57  ;;  %v7889_v57 = vld [vmem:[#allocation64_spill] sm:$0xff] }
 0x52c   : > { %3712 = vmatpush1.bf16.msra.mxu0 %v7881_v56  ;;  %v7890_v56 = vld [vmem:[#allocation66_spill] sm:$0xff] }
 0x52d   : > { %3713 = vmatprep.subr.bf16.mxu0 %v7882_v32  ;;  %v7891_v32 = vld [vmem:[#allocation68_spill] sm:$0xff] }
 0x530   : > { %3714 = vmatpush1.bf16.msra.mxu0 %v7883_v46  ;;  %v7892_v46 = vld [vmem:[#allocation71_spill] sm:$0xff] }
 0x531   : > { %3715 = vmatprep.subr.bf16.mxu0 %v7884_v39  ;;  %v7893_v39 = vld [vmem:[#allocation6_spill] sm:$0xff] }
 0x534   : > { %3716 = vmatpush1.bf16.msra.mxu0 %v7885_v49  ;;  %v7894_v49 = vld [vmem:[#allocation73_spill] sm:$0xff] }
 0x535   : > { %3717 = vmatprep.subr.bf16.mxu0 %v7886_v60  ;;  %v7896_v60 = vld [vmem:[#allocation14_spill] sm:$0xff] }
 0x538   : > { %3718 = vmatpush1.bf16.msra.mxu0 %v7887_v6  ;;  %v7194_v6 = vld [vmem:[%s5832_s11 + $0x278] ss:$24 sps:$4 sm:$0xff]  }
 0x539   : > { %3719 = vmatprep.subr.bf16.mxu0 %v7888_v55  ;;  %7897 = vst [vmem:[#allocation39_spill] sm:$0xff] %v7194_v6  ;;  %v7904_v55 = vld [vmem:[#allocation8_spill] sm:$0xff] }
 0x53c   : > { %3720 = vmatpush1.bf16.msra.mxu0 %v7889_v57  ;;  %v7198_v57 = vld [vmem:[%s5832_s11 + $0x2ac] ss:$24 sps:$4 sm:$0xff]  }
 0x53d   : > { %3721 = vmatprep.subr.bf16.mxu0 %v7890_v56  ;;  %7898 = vst [vmem:[#allocation44_spill] sm:$0xff] %v7198_v57  ;;  %v7202_v56 = vld [vmem:[%s5832_s11 + $0x2a8] ss:$24 sps:$4 sm:$0xff]  }
 0x53e   : > { %7899 = vst [vmem:[#allocation45_spill] sm:$0xff] %v7202_v56 }
 0x540   : > { %3722 = vmatpush1.bf16.msra.mxu0 %v7891_v32 }
 0x541   : > { %3723 = vmatprep.subr.bf16.mxu0 %v7892_v46  ;;  %v7206_v46 = vld [vmem:[%s5832_s11 + $0x2dc] ss:$24 sps:$4 sm:$0xff]  }
 0x542   : > { %7900 = vst [vmem:[#allocation72_spill] sm:$0xff] %v7206_v46 }
 0x544   : > { %3724 = vmatpush1.bf16.msra.mxu0 %v7893_v39  ;;  %v7903_v39 = vld [vmem:[#allocation75_spill] sm:$0xff] }
 0x545   : > { %3725 = vmatprep.subr.bf16.mxu0 %v7894_v49  ;;  %v7210_v49 = vld [vmem:[%s5832_s11 + $0x2d8] ss:$24 sps:$4 sm:$0xff]  }
 0x546   : > { %7901 = vst [vmem:[#allocation20_spill] sm:$0xff] %v7210_v49 }
 0x548   : > { %3726 = vmatpush1.bf16.msra.mxu0 %v7895_v9 }
 0x549   : > { %3727 = vmatprep.subr.bf16.mxu0 %v7896_v60  ;;  %v7902_v60 = vld [vmem:[#allocation7_spill] sm:$0xff] }
 0x54c   : > { %3728 = vmatpush1.bf16.msra.mxu0 %v7194_v6 }
 0x54d   : > { %3729 = vmatprep.subr.bf16.mxu0 %v7198_v57 }
 0x550   : > { %3730 = vmatpush1.bf16.msra.mxu0 %v7202_v56 }
 0x551   : > { %3731 = vmatprep.subr.bf16.mxu0 %v7206_v46 }
 0x554   : > { %3732 = vmatpush1.bf16.msra.mxu0 %v7210_v49 }
 0x555   : > { %3831 = vmatprep.subr.bf16.mxu0 %v7902_v60 }
 0x5aa   : > { %v3517_v9 = vpop.f32.mrb[48].mxu0  ;;  %v3558_v6 = vpop.f32.mrb[36].mxu1 }
 0x5ab   : > { %v3606_v32 = vadd.f32 %v3517_v9, %v7903_v39  ;;  %v3608_v57 = vadd.f32 %v3558_v6, %v7904_v55  ;;  %v3519_v34 = vpop.f32.mrb[49].mxu0  ;;  %v3560_v30 = vpop.f32.mrb[37].mxu1 }
 0x5ac   : > { %v3607_v56 = vadd.f32 %v3519_v34, %v7905_v29  ;;  %v3609_v48 = vadd.f32 %v3560_v30, %v7906_v27  ;;  %v3521_v25 = vpop.f32.mrb[50].mxu0  ;;  %v3562_v46 = vpop.f32.mrb[38].mxu1 }
 0x5ad   : > { %v4688_v23 = vmul.f32 -1.442695, %v3606_v32  ;;  %v3522_v37 = vpop.f32.mrb[51].mxu0  ;;  %v3563_v12 = vpop.f32.mrb[39].mxu1 }
 0x5ae   : > { %v4689_v49 = vmul.f32 -1.442695, %v3607_v56  ;;  %v7907_v37 = vld [vmem:[#allocation13_spill] sm:$0xff] }
 0x5af   : > { %5386 = vpow2.f32 %v4688_v23  ;;  %v7908_v23 = vld [vmem:[#allocation17_spill] sm:$0xff] }
 0x5b0   : > { %5388 = vpow2.f32 %v4689_v49 }
 0x5b1   : > { %5390 = vtanh.f32 %v3608_v57 }
 0x5b2   : > { %5392 = vtanh.f32 %v3609_v48 }
 0x5b9   : > { %v5387_v60 = vpop.eup %5386 }
 0x5ba   : > { %v5389_v20 = vpop.eup %5388  ;;  %v3618_v17 = vadd.f32 1.0, %v5387_v60 }
 0x5bb   : > { %v3619_v39 = vadd.f32 1.0, %v5389_v20  ;;  %v5391_v9 = vpop.eup %5390 }
 0x5bc   : > { %5394 = vrcp.f32 %v3618_v17  ;;  %v5393_v29 = vpop.eup %5392 }
 0x5bd   : > { %5396 = vrcp.f32 %v3619_v39 }
 0x5c6   : > { %v5395_v34 = vpop.eup %5394 }
 0x5c7   : > { %v5397_v27 = vpop.eup %5396  ;;  %v3638_v25 = vmul.f32 %v5395_v34, %v5391_v9 }
 0x5c8   : > { %v3639_v30 = vmul.f32 %v5397_v27, %v5393_v29 }
 0x5ea   : > { %v3599_v32 = vpop.f32.mrb[52].mxu0 }
 0x5eb   : > { %v3610_v12 = vadd.f32 %v3599_v32, %v7907_v37  ;;  %v3601_v46 = vpop.f32.mrb[53].mxu0 }
 0x5ec   : > { %v3611_v49 = vadd.f32 %v3601_v46, %v7908_v23  ;;  %v3603_v6 = vpop.f32.mrb[54].mxu0 }
 0x5ed   : > { %v4690_v55 = vmul.f32 -1.442695, %v3610_v12  ;;  %v3604_v56 = vpop.f32.mrb[55].mxu0  ;;  %v7934_v6 = vld [vmem:[#allocation29_spill] sm:$0xff] }
 0x5ee   : > { %v4691_v57 = vmul.f32 -1.442695, %v3611_v49  ;;  %v7933_v49 = vld [vmem:[#allocation27_spill] sm:$0xff]  ;;  %v7936_v56 = vld [vmem:[#allocation34_spill] sm:$0xff] }
 0x5ef   : > { %5398 = vpow2.f32 %v4690_v55  ;;  %v7935_v55 = vld [vmem:[#allocation30_spill] sm:$0xff] }
 0x5f0   : > { %5400 = vpow2.f32 %v4691_v57  ;;  %v7937_v57 = vld [vmem:[#allocation37_spill] sm:$0xff] }
 0x5f1   : > { %5402 = vtanh.f32 %v3638_v25  ;;  %v7931_v25 = vld [vmem:[#allocation21_spill] sm:$0xff] }
 0x5f2   : > { %5404 = vtanh.f32 %v3639_v30  ;;  %v7932_v30 = vld [vmem:[#allocation22_spill] sm:$0xff] }
 0x5f9   : > { %v5399_v17 = vpop.eup %5398 }
 0x5fa   : > { %v5401_v20 = vpop.eup %5400  ;;  %v3632_v48 = vadd.f32 1.0, %v5399_v17  ;;  %v7938_v17 = vld [vmem:[#allocation40_spill] sm:$0xff] }
 0x5fb   : > { %v3633_v60 = vadd.f32 1.0, %v5401_v20  ;;  %v5403_v39 = vpop.eup %5402  ;;  %v7939_v20 = vld [vmem:[#allocation42_spill] sm:$0xff] }
 0x5fc   : > { %5406 = vrcp.f32 %v3632_v48  ;;  %v5405_v9 = vpop.eup %5404  ;;  %v7940_v48 = vld [vmem:[#allocation46_spill] sm:$0xff] }
 0x5fd   : > { %5408 = vrcp.f32 %v3633_v60  ;;  %v7941_v60 = vld [vmem:[#allocation49_spill] sm:$0xff] }
 0x606   : > { %v5407_v29 = vpop.eup %5406 }
 0x607   : > { %v5409_v34 = vpop.eup %5408  ;;  %v3642_v27 = vmul.f32 %v5407_v29, %v5403_v39  ;;  %v7942_v39 = vld [vmem:[#allocation52_spill] sm:$0xff] }
 0x608   : > { %v3643_v32 = vmul.f32 %v5409_v34, %v5405_v9  ;;  %v7943_v9 = vld [vmem:[#allocation54_spill] sm:$0xff]  ;;  %v7944_v29 = vld [vmem:[#allocation56_spill] sm:$0xff] }
 0x609   : > { %v7220_v37 = vpack.c.bf16 %v3642_v27, %v3642_v27  ;;  %v7945_v34 = vld [vmem:[#allocation58_spill] sm:$0xff]  ;;  %v7946_v27 = vld [vmem:[#allocation60_spill] sm:$0xff] }
 0x60a   : > { %v3645_v12 = vpack.c.bf16 %v3643_v32, %v3643_v32  ;;  %v7947_v32 = vld [vmem:[#allocation62_spill] sm:$0xff] }
 0x60b   : > { %v3648_v46 = vrot.slane %v7220_v37, 4 }
 0x60c   : > { %v3649_v23 = vrot.slane %v3645_v12, 4  ;;  %3692 = vmatprep.mubr.bf16.mxu1 %v3645_v12  ;;  %3733 = vmatprep.mubr.bf16.mxu0 %v3645_v12 }
 0x60d   : > { %3652 = vst [vmem:[#allocation2 + $0x10] sm:$0xf0] %v3648_v46  ;;  %3693 = vmatmul.mubr.bf16.vlgmr.msra.gmra.mrb[40].mxu1 %v7220_v37  ;;  %3734 = vmatmul.mubr.bf16.vlgmr.msra.gmra.mrb[56].mxu0 %v7220_v37  ;;  %v7950_v46 = vld [vmem:[#allocation68_spill] sm:$0xff] }
 0x60e   : > { %3653 = vst [vmem:[#allocation2 + $0x18] sm:$0xf0] %v3649_v23  ;;  %3743 = vmatpush1.bf16.msra.mxu1 %v7010_v31  ;;  %3774 = vmatprep.mubr.bf16.mxu1 %v3645_v12  ;;  %v7949_v12 = vld [vmem:[#allocation66_spill] sm:$0xff]  ;;  %v7951_v23 = vld [vmem:[#allocation71_spill] sm:$0xff] }
 0x60f   : > { %3744 = vmatprep.subr.bf16.mxu1 %v7014_v22  ;;  %3832 = vmatpush1.bf16.msra.mxu0 %v6619_v14  ;;  %v7909_v14 = vld [vmem:[#allocation36_spill] sm:$0xff] }
 0x610   : > { %3833 = vmatprep.subr.bf16.mxu0 %v6623_v52  ;;  %v7910_v52 = vld [vmem:[#allocation48_spill] sm:$0xff] }
 0x612   : > { %3745 = vmatpush1.bf16.msra.mxu1 %v7020_v11 }
 0x613   : > { %3746 = vmatprep.subr.bf16.mxu1 %v7024_v3  ;;  %3834 = vmatpush1.bf16.msra.mxu0 %v6629_v35  ;;  %v7911_v35 = vld [vmem:[#allocation57_spill] sm:$0xff] }
 0x614   : > { %3835 = vmatprep.subr.bf16.mxu0 %v6633_v47  ;;  %v7912_v47 = vld [vmem:[#allocation51_spill] sm:$0xff] }
 0x616   : > { %3747 = vmatpush1.bf16.msra.mxu1 %v7030_v7 }
 0x617   : > { %3748 = vmatprep.subr.bf16.mxu1 %v7034_v40  ;;  %3836 = vmatpush1.bf16.msra.mxu0 %v6639_v61  ;;  %v7913_v61 = vld [vmem:[#allocation59_spill] sm:$0xff] }
 0x618   : > { %3837 = vmatprep.subr.bf16.mxu0 %v6643_v33  ;;  %v7914_v33 = vld [vmem:[#allocation35_spill] sm:$0xff] }
 0x61a   : > { %3749 = vmatpush1.bf16.msra.mxu1 %v7040_v53 }
 0x61b   : > { %3750 = vmatprep.subr.bf16.mxu1 %v7044_v44  ;;  %3838 = vmatpush1.bf16.msra.mxu0 %v6649_v42  ;;  %v7915_v42 = vld [vmem:[#allocation24_spill] sm:$0xff] }
 0x61c   : > { %3839 = vmatprep.subr.bf16.mxu0 %v7816_v38  ;;  %v7919_v38 = vld [vmem:[#allocation63_spill] sm:$0xff] }
 0x61e   : > { %3751 = vmatpush1.bf16.msra.mxu1 %v7050_v4 }
 0x61f   : > { %3752 = vmatprep.subr.bf16.mxu1 %v7054_v63  ;;  %3840 = vmatpush1.bf16.msra.mxu0 %v7819_v43  ;;  %v7920_v43 = vld [vmem:[#allocation41_spill] sm:$0xff] }
 0x620   : > { %3841 = vmatprep.subr.bf16.mxu0 %v7820_v26  ;;  %v7921_v26 = vld [vmem:[#allocation43_spill] sm:$0xff] }
 0x622   : > { %3753 = vmatpush1.bf16.msra.mxu1 %v7060_v0 }
 0x623   : > { %3754 = vmatprep.subr.bf16.mxu1 %v7064_v18  ;;  %3842 = vmatpush1.bf16.msra.mxu0 %v7823_v1  ;;  %v7922_v1 = vld [vmem:[#allocation33_spill] sm:$0xff] }
 0x624   : > { %3843 = vmatprep.subr.bf16.mxu0 %v6673_v51  ;;  %v7916_v51 = vld [vmem:[#allocation38_spill] sm:$0xff] }
 0x626   : > { %3755 = vmatpush1.bf16.msra.mxu1 %v7070_v58 }
 0x627   : > { %3756 = vmatprep.subr.bf16.mxu1 %v7074_v28  ;;  %3844 = vmatpush1.bf16.msra.mxu0 %v7826_v8  ;;  %v7923_v8 = vld [vmem:[#allocation65_spill] sm:$0xff] }
 0x628   : > { %3845 = vmatprep.subr.bf16.mxu0 %v7827_v10  ;;  %v7924_v10 = vld [vmem:[#allocation47_spill] sm:$0xff] }
 0x62a   : > { %3757 = vmatpush1.bf16.msra.mxu1 %v7080_v2 }
 0x62b   : > { %3758 = vmatprep.subr.bf16.mxu1 %v7084_v59  ;;  %3846 = vmatpush1.bf16.msra.mxu0 %v7828_v13  ;;  %v7925_v13 = vld [vmem:[#allocation50_spill] sm:$0xff] }
 0x62c   : > { %3847 = vmatprep.subr.bf16.mxu0 %v6693_v54  ;;  %v7917_v54 = vld [vmem:[#allocation28_spill] sm:$0xff] }
 0x62e   : > { %3759 = vmatpush1.bf16.msra.mxu1 %v7090_v36 }
 0x62f   : > { %3760 = vmatprep.subr.bf16.mxu1 %v7909_v14  ;;  %3848 = vmatpush1.bf16.msra.mxu0 %v7910_v52  ;;  %v7952_v52 = vld [vmem:[#allocation6_spill] sm:$0xff] }
 0x630   : > { %3849 = vmatprep.subr.bf16.mxu0 %v6703_v24  ;;  %v7918_v24 = vld [vmem:[#allocation61_spill] sm:$0xff] }
 0x632   : > { %3761 = vmatpush1.bf16.msra.mxu1 %v7100_v62 }
 0x633   : > { %3762 = vmatprep.subr.bf16.mxu1 %v7911_v35  ;;  %3850 = vmatpush1.bf16.msra.mxu0 %v7912_v47  ;;  %v7953_v47 = vld [vmem:[#allocation73_spill] sm:$0xff] }
 0x634   : > { %3851 = vmatprep.subr.bf16.mxu0 %v6821_v16  ;;  %v7926_v16 = vld [vmem:[#allocation67_spill] sm:$0xff] }
 0x636   : > { %3763 = vmatpush1.bf16.msra.mxu1 %v7110_v50 }
 0x637   : > { %3764 = vmatprep.subr.bf16.mxu1 %v7913_v61  ;;  %3852 = vmatpush1.bf16.msra.mxu0 %v7914_v33  ;;  %v7954_v33 = vld [vmem:[#allocation9_spill] sm:$0xff] }
 0x638   : > { %3853 = vmatprep.subr.bf16.mxu0 %v6831_v21  ;;  %v7927_v21 = vld [vmem:[#allocation53_spill] sm:$0xff] }
 0x63a   : > { %3765 = vmatpush1.bf16.msra.mxu1 %v7915_v42 }
 0x63b   : > { %3766 = vmatprep.subr.bf16.mxu1 %v7124_v41  ;;  %3854 = vmatpush1.bf16.msra.mxu0 %v7916_v51  ;;  %v7955_v51 = vld [vmem:[#allocation14_spill] sm:$0xff] }
 0x63c   : > { %3855 = vmatprep.subr.bf16.mxu0 %v6841_v19  ;;  %v7928_v19 = vld [vmem:[#allocation55_spill] sm:$0xff] }
 0x63e   : > { %3767 = vmatpush1.bf16.msra.mxu1 %v7917_v54 }
 0x63f   : > { %3768 = vmatprep.subr.bf16.mxu1 %v7918_v24  ;;  %3856 = vmatpush1.bf16.msra.mxu0 %v6847_v45  ;;  %v7929_v45 = vld [vmem:[#allocation69_spill] sm:$0xff] }
 0x640   : > { %3857 = vmatprep.subr.bf16.mxu0 %v6851_v15  ;;  %v7930_v15 = vld [vmem:[#allocation70_spill] sm:$0xff] }
 0x642   : > { %3769 = vmatpush1.bf16.msra.mxu1 %v7919_v38 }
 0x643   : > { %3770 = vmatprep.subr.bf16.mxu1 %v7144_v5  ;;  %3858 = vmatpush1.bf16.msra.mxu0 %v7920_v43  ;;  %v7956_v43 = vld [vmem:[#allocation39_spill] sm:$0xff] }
 0x644   : > { %3859 = vmatprep.subr.bf16.mxu0 %v7921_v26  ;;  %v7957_v26 = vld [vmem:[#allocation44_spill] sm:$0xff] }
 0x646   : > { %3771 = vmatpush1.bf16.msra.mxu1 %v7922_v1 }
 0x647   : > { %3772 = vmatprep.subr.bf16.mxu1 %v7923_v8  ;;  %3860 = vmatpush1.bf16.msra.mxu0 %v7924_v10  ;;  %v7958_v10 = vld [vmem:[#allocation45_spill] sm:$0xff] }
 0x648   : > { %3861 = vmatprep.subr.bf16.mxu0 %v7925_v13  ;;  %v7959_v13 = vld [vmem:[#allocation72_spill] sm:$0xff] }
 0x64a   : > { %3773 = vmatpush1.bf16.msra.mxu1 %v7926_v16 }
 0x64b   : > { %3872 = vmatprep.subr.bf16.mxu1 %v7927_v21  ;;  %3862 = vmatpush1.bf16.msra.mxu0 %v7928_v19  ;;  %v7960_v21 = vld [vmem:[#allocation20_spill] sm:$0xff]  ;;  %v5298_v19 = vld [vmem:[%s7450_s6 + $0x40] sm:$0xff]  }
 0x64c   : > { %3913 = vmatprep.subr.bf16.mxu0 %v7929_v45 }
 0x64d   : > { %3775 = vmatmul.mubr.bf16.vlgmr.msra.gmra.mrb[44].mxu1 %v7220_v37  ;;  %v7948_v37 = vld [vmem:[#allocation64_spill] sm:$0xff] }
 0x64e   : > { %3873 = vmatpush1.bf16.msra.mxu1 %v7930_v15 }
 0x64f   : > { %3874 = vmatprep.subr.bf16.mxu1 %v7931_v25  ;;  %v7961_v25 = vld [vmem:[#allocation77_spill] sm:$0xff] }
 0x652   : > { %3875 = vmatpush1.bf16.msra.mxu1 %v7932_v30 }
 0x653   : > { %3876 = vmatprep.subr.bf16.mxu1 %v7933_v49  ;;  %v7962_v49 = vld [vmem:[#allocation5_spill] sm:$0xff] }
 0x656   : > { %3877 = vmatpush1.bf16.msra.mxu1 %v7934_v6 }
 0x657   : > { %3878 = vmatprep.subr.bf16.mxu1 %v7935_v55 }
 0x65a   : > { %3879 = vmatpush1.bf16.msra.mxu1 %v7936_v56 }
 0x65b   : > { %3880 = vmatprep.subr.bf16.mxu1 %v7937_v57  ;;  %v7963_v57 = vld [vmem:[#allocation16_spill] sm:$0xff] }
 0x65e   : > { %3881 = vmatpush1.bf16.msra.mxu1 %v7938_v17 }
 0x65f   : > { %3882 = vmatprep.subr.bf16.mxu1 %v7939_v20  ;;  %v7964_v20 = vld [vmem:[#allocation10_spill] sm:$0xff] }
 0x662   : > { %3883 = vmatpush1.bf16.msra.mxu1 %v7940_v48 }
 0x663   : > { %3884 = vmatprep.subr.bf16.mxu1 %v7941_v60 }
 0x666   : > { %3885 = vmatpush1.bf16.msra.mxu1 %v7942_v39 }
 0x667   : > { %3886 = vmatprep.subr.bf16.mxu1 %v7943_v9 }
 0x66a   : > { %3887 = vmatpush1.bf16.msra.mxu1 %v7944_v29 }
 0x66b   : > { %3888 = vmatprep.subr.bf16.mxu1 %v7945_v34 }
 0x66e   : > { %3889 = vmatpush1.bf16.msra.mxu1 %v7946_v27 }
 0x66f   : > { %3890 = vmatprep.subr.bf16.mxu1 %v7947_v32 }
 0x672   : > { %3891 = vmatpush1.bf16.msra.mxu1 %v7948_v37 }
 0x673   : > { %3892 = vmatprep.subr.bf16.mxu1 %v7949_v12 }
 0x676   : > { %3893 = vmatpush1.bf16.msra.mxu1 %v7950_v46 }
 0x677   : > { %3894 = vmatprep.subr.bf16.mxu1 %v7951_v23 }
 0x67a   : > { %3895 = vmatpush1.bf16.msra.mxu1 %v7952_v52 }
 0x67b   : > { %3896 = vmatprep.subr.bf16.mxu1 %v7953_v47 }
 0x67e   : > { %3897 = vmatpush1.bf16.msra.mxu1 %v7954_v33 }
 0x67f   : > { %3898 = vmatprep.subr.bf16.mxu1 %v7955_v51 }
 0x682   : > { %3899 = vmatpush1.bf16.msra.mxu1 %v7956_v43 }
 0x683   : > { %3900 = vmatprep.subr.bf16.mxu1 %v7957_v26 }
 0x686   : > { %3901 = vmatpush1.bf16.msra.mxu1 %v7958_v10  ;;  %v7965_v10 = vld [vmem:[#allocation19_spill] sm:$0xff] }
 0x687   : > { %3902 = vmatprep.subr.bf16.mxu1 %v7959_v13 }
 0x68a   : > { %3903 = vmatpush1.bf16.msra.mxu1 %v7960_v21 }
 0x68b   : > { %4720 = vmatprep.subr.bf16.mxu1 %v5298_v19  ;;  %v7966_v19 = vld [vmem:[#allocation23_spill] sm:$0xff] }
 0x6e0   : > { %v3694_v45 = vpop.f32.mrb[40].mxu1  ;;  %v3735_v15 = vpop.f32.mrb[56].mxu0 }
 0x6e1   : > { %v3783_v30 = vadd.f32 %v3694_v45, %v7961_v25  ;;  %v3785_v6 = vadd.f32 %v3735_v15, %v7962_v49  ;;  %v3696_v55 = vpop.f32.mrb[41].mxu1  ;;  %v3737_v56 = vpop.f32.mrb[57].mxu0 }
 0x6e2   : > { %v3784_v17 = vadd.f32 %v3696_v55, %v7963_v57  ;;  %v3786_v48 = vadd.f32 %v3737_v56, %v7964_v20  ;;  %v3698_v60 = vpop.f32.mrb[42].mxu1  ;;  %v3739_v39 = vpop.f32.mrb[58].mxu0 }
 0x6e3   : > { %v4692_v9 = vmul.f32 -1.442695, %v3783_v30  ;;  %v3699_v29 = vpop.f32.mrb[43].mxu1  ;;  %v3740_v34 = vpop.f32.mrb[59].mxu0 }
 0x6e4   : > { %v4693_v27 = vmul.f32 -1.442695, %v3784_v17 }
 0x6e5   : > { %5410 = vpow2.f32 %v4692_v9 }
 0x6e6   : > { %5412 = vpow2.f32 %v4693_v27  ;;  %v5299_v27 = vld [vmem:[%s7450_s6] sm:$0xff]  }
 0x6e7   : > { %5414 = vtanh.f32 %v3785_v6 }
 0x6e8   : > { %5416 = vtanh.f32 %v3786_v48 }
 0x6ef   : > { %v5411_v32 = vpop.eup %5410 }
 0x6f0   : > { %v5413_v37 = vpop.eup %5412  ;;  %v3795_v12 = vadd.f32 1.0, %v5411_v32  ;;  %v5300_v32 = vld [vmem:[%s7450_s6 + $0x48] sm:$0xff]  }
 0x6f1   : > { %v3796_v46 = vadd.f32 1.0, %v5413_v37  ;;  %v5415_v23 = vpop.eup %5414  ;;  %v4003_v37 = vld [vmem:[#allocation2 + $0x8] sm:$0xff] }
 0x6f2   : > { %5418 = vrcp.f32 %v3795_v12  ;;  %v5417_v52 = vpop.eup %5416  ;;  %v5301_v12 = vld [vmem:[%s7450_s6 + $0x8] sm:$0xff]  }
 0x6f3   : > { %5420 = vrcp.f32 %v3796_v46  ;;  %v5302_v46 = vld [vmem:[%s7450_s6 + $0x50] sm:$0xff]  }
 0x6fc   : > { %v5419_v47 = vpop.eup %5418 }
 0x6fd   : > { %v5421_v33 = vpop.eup %5420  ;;  %v3815_v51 = vmul.f32 %v5419_v47, %v5415_v23  ;;  %v5304_v23 = vld [vmem:[%s7450_s6 + $0x58] sm:$0xff]  }
 0x6fe   : > { %v3816_v43 = vmul.f32 %v5421_v33, %v5417_v52 }
 0x720   : > { %v3776_v26 = vpop.f32.mrb[44].mxu1 }
 0x721   : > { %v3787_v13 = vadd.f32 %v3776_v26, %v7965_v10  ;;  %v3778_v21 = vpop.f32.mrb[45].mxu1 }
 0x722   : > { %v3788_v45 = vadd.f32 %v3778_v21, %v7966_v19  ;;  %v3780_v15 = vpop.f32.mrb[46].mxu1 }
 0x723   : > { %v4694_v25 = vmul.f32 -1.442695, %v3787_v13  ;;  %v3781_v30 = vpop.f32.mrb[47].mxu1  ;;  %v7420_v15 = vld [vmem:[%s7451_s7] ss:$0 sm:$0xff] }
 0x724   : > { %v4695_v49 = vmul.f32 -1.442695, %v3788_v45 }
 0x725   : > { %5422 = vpow2.f32 %v4694_v25 }
 0x726   : > { %5424 = vpow2.f32 %v4695_v49 }
 0x727   : > { %5426 = vtanh.f32 %v3815_v51 }
 0x728   : > { %5428 = vtanh.f32 %v3816_v43 }
 0x72f   : > { %v5423_v6 = vpop.eup %5422 }
 0x730   : > { %v5425_v55 = vpop.eup %5424  ;;  %v3809_v56 = vadd.f32 1.0, %v5423_v6 }
 0x731   : > { %v3810_v57 = vadd.f32 1.0, %v5425_v55  ;;  %v5427_v17 = vpop.eup %5426 }
 0x732   : > { %5430 = vrcp.f32 %v3809_v56  ;;  %v5429_v20 = vpop.eup %5428 }
 0x733   : > { %5432 = vrcp.f32 %v3810_v57 }
 0x73c   : > { %v5431_v48 = vpop.eup %5430 }
 0x73d   : > { %v5433_v60 = vpop.eup %5432  ;;  %v3819_v39 = vmul.f32 %v5431_v48, %v5427_v17 }
 0x73e   : > { %v3820_v9 = vmul.f32 %v5433_v60, %v5429_v20 }
 0x73f   : > { %v7330_v29 = vpack.c.bf16 %v3819_v39, %v3819_v39 }
 0x740   : > { %v3822_v34 = vpack.c.bf16 %v3820_v9, %v3820_v9 }
 0x741   : > { %3823 = vst [vmem:[#allocation2 + $0x20] sm:$0xf] %v7330_v29 }
 0x742   : > { %3824 = vst [vmem:[#allocation2 + $0x28] sm:$0xf] %v3822_v34  ;;  %3863 = vmatprep.mubr.bf16.mxu0 %v3822_v34  ;;  %3904 = vmatprep.mubr.bf16.mxu1 %v3822_v34 }
 0x743   : > { %3864 = vmatmul.mubr.bf16.vlgmr.msra.gmra.mrb[60].mxu0 %v7330_v29  ;;  %3905 = vmatmul.mubr.bf16.vlgmr.msra.gmra.mrb[48].mxu1 %v7330_v29 }
 0x744   : > { %3914 = vmatpush1.bf16.msra.mxu0 %v7010_v31  ;;  %4721 = vmatpush3.bf16.msra.mxu1 %v5299_v27  ;;  %v5303_v31 = vld [vmem:[%s7450_s6 + $0x10] sm:$0xff]  }
 0x745   : > { %3945 = vmatprep.mubr.bf16.mxu0 %v3822_v34  ;;  %4175 = vmatprep.mubr.bf16.mxu1 %v4003_v37 }
 0x746   : > { %3915 = vmatprep.subr.bf16.mxu0 %v7014_v22  ;;  %4722 = vmatprep.subr.bf16.mxu1 %v5300_v32  ;;  %v5305_v22 = vld [vmem:[%s7450_s6 + $0x18] sm:$0xff]   ;;  %v7971_v32 = vld [vmem:[#allocation26_spill] sm:$0xff] }
 0x748   : > { %3916 = vmatpush1.bf16.msra.mxu0 %v7020_v11  ;;  %4723 = vmatpush3.bf16.msra.mxu1 %v5301_v12  ;;  %v5306_v11 = vld [vmem:[%s7450_s6 + $0x60] sm:$0xff]  }
 0x749   : > { %3917 = vmatprep.subr.bf16.mxu0 %v7024_v3  ;;  %4724 = vmatprep.subr.bf16.mxu1 %v5302_v46  ;;  %v5307_v3 = vld [vmem:[%s7450_s6 + $0x20] sm:$0xff]   ;;  %v7972_v46 = vld [vmem:[#allocation32_spill] sm:$0xff] }
 0x74c   : > { %3918 = vmatpush1.bf16.msra.mxu0 %v7030_v7  ;;  %4725 = vmatpush3.bf16.msra.mxu1 %v5303_v31  ;;  %v5308_v7 = vld [vmem:[%s7450_s6 + $0x68] sm:$0xff]  }
 0x74d   : > { %3919 = vmatprep.subr.bf16.mxu0 %v7034_v40  ;;  %4726 = vmatprep.subr.bf16.mxu1 %v5304_v23  ;;  %v5309_v40 = vld [vmem:[%s7450_s6 + $0x28] sm:$0xff]  }
 0x750   : > { %3920 = vmatpush1.bf16.msra.mxu0 %v7040_v53  ;;  %4727 = vmatpush3.bf16.msra.mxu1 %v5305_v22  ;;  %v5310_v53 = vld [vmem:[%s7450_s6 + $0x70] sm:$0xff]  }
 0x751   : > { %3921 = vmatprep.subr.bf16.mxu0 %v7044_v44  ;;  %4728 = vmatprep.subr.bf16.mxu1 %v5306_v11  ;;  %v5311_v44 = vld [vmem:[%s7450_s6 + $0x30] sm:$0xff]  }
 0x754   : > { %3922 = vmatpush1.bf16.msra.mxu0 %v7050_v4  ;;  %4729 = vmatpush3.bf16.msra.mxu1 %v5307_v3  ;;  %v5312_v4 = vld [vmem:[%s7450_s6 + $0x78] sm:$0xff]  }
 0x755   : > { %3923 = vmatprep.subr.bf16.mxu0 %v7054_v63  ;;  %4730 = vmatprep.subr.bf16.mxu1 %v5308_v7  ;;  %v5313_v63 = vld [vmem:[%s7450_s6 + $0x38] sm:$0xff]  }
 0x758   : > { %3924 = vmatpush1.bf16.msra.mxu0 %v7060_v0  ;;  %4731 = vmatpush3.bf16.msra.mxu1 %v5309_v40  ;;  %v4002_v0 = vld [vmem:[#allocation2] sm:$0xff] }
 0x759   : > { %3925 = vmatprep.subr.bf16.mxu0 %v7064_v18  ;;  %4732 = vmatprep.subr.bf16.mxu1 %v5310_v53  ;;  %v4005_v18 = vld [vmem:[#allocation2 + $0x18] sm:$0xff] }
 0x75c   : > { %3926 = vmatpush1.bf16.msra.mxu0 %v7070_v58  ;;  %4733 = vmatpush3.bf16.msra.mxu1 %v5311_v44  ;;  %v4004_v58 = vld [vmem:[#allocation2 + $0x10] sm:$0xff] }
 0x75d   : > { %3927 = vmatprep.subr.bf16.mxu0 %v7074_v28  ;;  %4734 = vmatprep.subr.bf16.mxu1 %v5312_v4 }
 0x760   : > { %3928 = vmatpush1.bf16.msra.mxu0 %v7080_v2  ;;  %4735 = vmatpush3.bf16.msra.mxu1 %v5313_v63 }
 0x761   : > { %3929 = vmatprep.subr.bf16.mxu0 %v7084_v59  ;;  %v7967_v59 = vld [vmem:[#allocation18_spill] sm:$0xff] }
 0x763   : > { %4176 = vmatmul.mubr.bf16.vlgmr.msra.gmra.mrb[52].mxu1 %v4002_v0 }
 0x764   : > { %3930 = vmatpush1.bf16.msra.mxu0 %v7090_v36  ;;  %4183 = vmatprep.mubr.bf16.mxu1 %v4005_v18  ;;  %v7968_v36 = vld [vmem:[#allocation12_spill] sm:$0xff] }
 0x765   : > { %3931 = vmatprep.subr.bf16.mxu0 %v7909_v14 }
 0x768   : > { %3932 = vmatpush1.bf16.msra.mxu0 %v7100_v62 }
 0x769   : > { %3933 = vmatprep.subr.bf16.mxu0 %v7911_v35  ;;  %v7969_v35 = vld [vmem:[#allocation25_spill] sm:$0xff] }
 0x76b   : > { %4184 = vmatmul.mubr.bf16.gmra.mrb[56].mxu1 %v4004_v58 }
 0x76c   : > { %3934 = vmatpush1.bf16.msra.mxu0 %v7110_v50 }
 0x76d   : > { %3935 = vmatprep.subr.bf16.mxu0 %v7913_v61 }
 0x770   : > { %3936 = vmatpush1.bf16.msra.mxu0 %v7915_v42  ;;  %v7970_v42 = vld [vmem:[#allocation4_spill] sm:$0xff] }
 0x771   : > { %3937 = vmatprep.subr.bf16.mxu0 %v7124_v41 }
 0x774   : > { %3938 = vmatpush1.bf16.msra.mxu0 %v7917_v54 }
 0x775   : > { %3939 = vmatprep.subr.bf16.mxu0 %v7918_v24 }
 0x778   : > { %3940 = vmatpush1.bf16.msra.mxu0 %v7919_v38 }
 0x779   : > { %3941 = vmatprep.subr.bf16.mxu0 %v7144_v5 }
 0x77c   : > { %3942 = vmatpush1.bf16.msra.mxu0 %v7922_v1 }
 0x77d   : > { %3943 = vmatprep.subr.bf16.mxu0 %v7923_v8 }
 0x780   : > { %3944 = vmatpush1.bf16.msra.mxu0 %v7926_v16 }
 0x783   : > { %3946 = vmatmul.mubr.bf16.vlgmr.msra.gmra.mrb[64].mxu0 %v7330_v29 }
 0x816   : > { %v3865_v28 = vpop.f32.mrb[60].mxu0  ;;  %v3906_v2 = vpop.f32.mrb[48].mxu1 }
 0x817   : > { %v3954_v41 = vadd.f32 %v3865_v28, %v7967_v59  ;;  %v3956_v50 = vadd.f32 %v3906_v2, %v7968_v36  ;;  %v3867_v62 = vpop.f32.mrb[61].mxu0  ;;  %v3908_v14 = vpop.f32.mrb[49].mxu1 }
 0x818   : > { %v3955_v61 = vadd.f32 %v3867_v62, %v7969_v35  ;;  %v3957_v5 = vadd.f32 %v3908_v14, %v7970_v42  ;;  %v3869_v54 = vpop.f32.mrb[62].mxu0  ;;  %v3910_v24 = vpop.f32.mrb[50].mxu1 }
 0x819   : > { %v4696_v38 = vmul.f32 -1.442695, %v3954_v41  ;;  %v3870_v1 = vpop.f32.mrb[63].mxu0  ;;  %v3911_v8 = vpop.f32.mrb[51].mxu1 }
 0x81a   : > { %v4697_v16 = vmul.f32 -1.442695, %v3955_v61 }
 0x81b   : > { %5434 = vpow2.f32 %v4696_v38 }
 0x81c   : > { %5436 = vpow2.f32 %v4697_v16 }
 0x81d   : > { %5438 = vtanh.f32 %v3956_v50 }
 0x81e   : > { %5440 = vtanh.f32 %v3957_v5 }
 0x825   : > { %v5435_v52 = vpop.eup %5434 }
 0x826   : > { %v5437_v47 = vpop.eup %5436  ;;  %v3966_v33 = vadd.f32 1.0, %v5435_v52 }
 0x827   : > { %v3967_v51 = vadd.f32 1.0, %v5437_v47  ;;  %v5439_v43 = vpop.eup %5438 }
 0x828   : > { %5442 = vrcp.f32 %v3966_v33  ;;  %v5441_v26 = vpop.eup %5440 }
 0x829   : > { %5444 = vrcp.f32 %v3967_v51 }
 0x832   : > { %v5443_v10 = vpop.eup %5442 }
 0x833   : > { %v5445_v13 = vpop.eup %5444  ;;  %v3986_v21 = vmul.f32 %v5443_v10, %v5439_v43 }
 0x834   : > { %v3987_v19 = vmul.f32 %v5445_v13, %v5441_v26 }
 0x836   : > { %v4736_v45 = vpop.f32.mrb[52].mxu1 }
 0x837   : > { %v4737_v25 = vpop.f32.mrb[53].mxu1 }
 0x838   : > { %v4738_v30 = vadd.f32 %v4737_v25, %v4736_v45  ;;  %v4739_v49 = vpop.f32.mrb[54].mxu1 }
 0x839   : > { %v4740_v6 = vpop.f32.mrb[55].mxu1 }
 0x83a   : > { %v4178_v55 = vadd.f32 %v4738_v30, %v7420_v15  ;;  %v4741_v56 = vadd.f32 %v4740_v6, %v4739_v49 }
 0x83c   : > { %4200 = vst [vmem:[%s7425_s19] sm:$0xff] %v4178_v55  ;;  %v4181_v57 = vadd.f32 %v4741_v56, %v7420_v15 }
 0x83e   : > { %4201 = vst [vmem:[%s7425_s19 + $0x8] sm:$0xff] %v4181_v57  ;;  %v4742_v17 = vpop.f32.mrb[56].mxu1 }
 0x83f   : > { %v4743_v20 = vpop.f32.mrb[57].mxu1 }
 0x840   : > { %v4744_v48 = vadd.f32 %v4743_v20, %v4742_v17  ;;  %v4745_v60 = vpop.f32.mrb[58].mxu1 }
 0x841   : > { %v4746_v39 = vpop.f32.mrb[59].mxu1 }
 0x842   : > { %v4186_v9 = vadd.f32 %v4744_v48, %v7420_v15  ;;  %v4747_v29 = vadd.f32 %v4746_v39, %v4745_v60 }
 0x844   : > { %4202 = vst [vmem:[%s7425_s19 + $0x10] sm:$0xff] %v4186_v9  ;;  %v4189_v34 = vadd.f32 %v4747_v29, %v7420_v15 }
 0x846   : > { %4203 = vst [vmem:[%s7425_s19 + $0x18] sm:$0xff] %v4189_v34 }
 0x856   : > { %v3947_v27 = vpop.f32.mrb[64].mxu0 }
 0x857   : > { %v3958_v37 = vadd.f32 %v3947_v27, %v7971_v32  ;;  %v3949_v12 = vpop.f32.mrb[65].mxu0 }
 0x858   : > { %v3959_v31 = vadd.f32 %v3949_v12, %v7972_v46  ;;  %v3951_v23 = vpop.f32.mrb[66].mxu0 }
 0x859   : > { %v4698_v22 = vmul.f32 -1.442695, %v3958_v37  ;;  %v3952_v11 = vpop.f32.mrb[67].mxu0 }
 0x85a   : > { %v4699_v3 = vmul.f32 -1.442695, %v3959_v31 }
 0x85b   : > { %5446 = vpow2.f32 %v4698_v22 }
 0x85c   : > { %5448 = vpow2.f32 %v4699_v3 }
 0x85d   : > { %5450 = vtanh.f32 %v3986_v21 }
 0x85e   : > { %5452 = vtanh.f32 %v3987_v19 }
 0x865   : > { %v5447_v7 = vpop.eup %5446 }
 0x866   : > { %v5449_v40 = vpop.eup %5448  ;;  %v3980_v53 = vadd.f32 1.0, %v5447_v7 }
 0x867   : > { %v3981_v44 = vadd.f32 1.0, %v5449_v40  ;;  %v5451_v4 = vpop.eup %5450 }
 0x868   : > { %5454 = vrcp.f32 %v3980_v53  ;;  %v5453_v63 = vpop.eup %5452 }
 0x869   : > { %5456 = vrcp.f32 %v3981_v44 }
 0x872   : > { %v5455_v0 = vpop.eup %5454 }
 0x873   : > { %v5457_v18 = vpop.eup %5456  ;;  %v3990_v58 = vmul.f32 %v5455_v0, %v5451_v4 }
 0x874   : > { %v3991_v28 = vmul.f32 %v5457_v18, %v5453_v63 }
 0x875   : > { %v3992_v2 = vpack.c.bf16 %v3990_v58, %v3990_v58 }
 0x876   : > { %v3993_v59 = vpack.c.bf16 %v3991_v28, %v3991_v28 }
 0x877   : > { %v3996_v41 = vrot.slane %v3992_v2, 4 }
 0x878   : > { %v3997_v36 = vrot.slane %v3993_v59, 4 }
 0x879   : > { %4000 = vst [vmem:[#allocation2 + $0x20] sm:$0xf0] %v3996_v41 }
 0x87a   : > { %4001 = vst [vmem:[#allocation2 + $0x28] sm:$0xf0] %v3997_v36 }
 0x880   : > { %v4006_v62 = vld [vmem:[#allocation2 + $0x20] sm:$0xff] }
 0x881   : > { %v4007_v50 = vld [vmem:[#allocation2 + $0x28] sm:$0xff] }
 0x882   : > { %4191 = vmatprep.mubr.bf16.mxu1 %v4007_v50 }
 0x883   : > { %4192 = vmatmul.mubr.bf16.gmra.mrb[60].mxu1 %v4006_v62 }
 0x956   : > { %v4748_v14 = vpop.f32.mrb[60].mxu1 }
 0x957   : > { %v4749_v35 = vpop.f32.mrb[61].mxu1 }
 0x958   : > { %v4750_v61 = vadd.f32 %v4749_v35, %v4748_v14  ;;  %v4751_v42 = vpop.f32.mrb[62].mxu1 }
 0x959   : > { %v4752_v5 = vpop.f32.mrb[63].mxu1 }
 0x95a   : > { %v4194_v54 = vadd.f32 %v4750_v61, %v7420_v15  ;;  %v4753_v24 = vadd.f32 %v4752_v5, %v4751_v42 }
 0x95c   : > { %4204 = vst [vmem:[%s7425_s19 + $0x20] sm:$0xff] %v4194_v54  ;;  %v4197_v38 = vadd.f32 %v4753_v24, %v7420_v15 }
 0x95e   : > { %4205 = vst [vmem:[%s7425_s19 + $0x28] sm:$0xff] %v4197_v38 }
 0x95f PF: > { %s19_s30 = sadd.s32 1, %s5560_s30  }
 0x960   : > { %p16_p4 = scmp.ge.s32.totalorder %s19_s30, 4  }
 0x962   :  { %18 = sbr.rel (!%p16_p4) target bundleno = 1 (0x1), region = 101 }

</bundles_post_ra>
